<compile_context>
chip_gen: v7x
topology: tpu7x:2x2x1
jax: 0.10.0
libtpu: 0.0.40
codegen_flags: <defaults>
</compile_context>

<pallas_src>
import math

import jax
import jax.numpy as jnp
from jax import lax
from jax.experimental import pallas as pl
from jax.experimental.pallas import tpu as pltpu


def _make_kernel(N, H, W, Cin, Cmid, Cout):
    M = N * H * W
    eps = 1e-5

    def write_cat(cat_ref, xv, C):
        """Fill the dx-folded cat buffer (N, H+2, W, 3C) bf16 from an f32 NHWC
        value.  W shifts happen on the f32 value; each lane-aligned C block is
        written once; only the 1-wide H halos are zero-filled."""
        zrow = jnp.zeros((N, 1, W, 3 * C), jnp.bfloat16)
        cat_ref[:, 0:1, :, :] = zrow
        cat_ref[:, H + 1:H + 2, :, :] = zrow
        zcol = jnp.zeros((N, H, 1, C), jnp.float32)
        # dx = 0 block holds x[w-1]  (shift right along W, zero first column)
        cat_ref[:, 1:H + 1, :, 0:C] = jnp.concatenate(
            [zcol, xv[:, :, :W - 1, :]], axis=2).astype(jnp.bfloat16)
        # dx = 1 block: center tap
        cat_ref[:, 1:H + 1, :, C:2 * C] = xv.astype(jnp.bfloat16)
        # dx = 2 block holds x[w+1]  (shift left along W, zero last column)
        cat_ref[:, 1:H + 1, :, 2 * C:3 * C] = jnp.concatenate(
            [xv[:, :, 1:, :], zcol], axis=2).astype(jnp.bfloat16)

    def conv3x3(cat_ref, w_ref, C):
        """3x3 conv as three deep-K (K = 3C) bf16 MXU matmuls, summed in
        values (f32 accumulation, no scratch-ref read-modify-writes)."""
        acc = jnp.dot(cat_ref[:, 1:H + 1, :, :].reshape(M, 3 * C), w_ref[1],
                      preferred_element_type=jnp.float32)
        acc = acc + jnp.dot(cat_ref[:, 0:H, :, :].reshape(M, 3 * C), w_ref[0],
                            preferred_element_type=jnp.float32)
        acc = acc + jnp.dot(cat_ref[:, 2:H + 2, :, :].reshape(M, 3 * C), w_ref[2],
                            preferred_element_type=jnp.float32)
        return acc

    def kernel(x_ref, w1_ref, b1_ref, g_ref, bt_ref, w2_ref, b2_ref,
               out_ref, cat1_ref, cat2_ref):
        # ---- 1) Conv2d(Cin -> Cmid, 3x3, pad 1), bias fused in values -------
        write_cat(cat1_ref, x_ref[...], Cin)
        c1 = conv3x3(cat1_ref, w1_ref, Cin) + b1_ref[...]       # (M, Cmid) f32

        # ---- 2) BatchNorm2d (training-mode batch stats, one pass) + ReLU ----
        inv_m = 1.0 / float(M)
        mean = jnp.sum(c1, axis=0, keepdims=True) * inv_m
        ex2 = jnp.sum(c1 * c1, axis=0, keepdims=True) * inv_m
        var = ex2 - mean * mean                                  # biased var
        scale = g_ref[...] * lax.rsqrt(var + eps)                # EUP rsqrt
        shift = bt_ref[...] - mean * scale
        y1 = jnp.maximum(c1 * scale + shift, 0.0)                # (M, Cmid) f32

        # ---- 3) Conv2d(Cmid -> Cout, 3x3, pad 1) + ReLU ----------------------
        write_cat(cat2_ref, y1.reshape(N, H, W, Cmid), Cmid)
        y2 = jnp.maximum(conv3x3(cat2_ref, w2_ref, Cmid) + b2_ref[...], 0.0)

        # ---- 4) MaxPool2d(2, 2) entirely in values ---------------------------
        # H pair-max via a leading-dim reshape (layout-preserving), W pair-max
        # via a sublane deinterleave (XLU), written straight to out_ref.
        y2h = y2.reshape(N, H // 2, 2, W, Cout)
        hp = jnp.maximum(y2h[:, :, 0], y2h[:, :, 1])             # (N,H/2,W,C)
        hp = hp.reshape(N, H // 2, W // 2, 2, Cout)
        out_ref[...] = jnp.maximum(hp[:, :, :, 0, :], hp[:, :, :, 1, :])

    return kernel


def blockc_forward(t, params):
    """Mirrors BlockC.forward: t is a list/tuple of NCHW arrays."""
    if len(t) == 0:
        return 0
    shape = t[0].shape
    if len(shape) <= 1:
        return 0

    w1, b1, gamma, beta, w2, b2 = params
    N, Cin, H, W = shape
    Cmid = w1.shape[-1]
    Cout = w2.shape[-1]
    M = N * H * W

    # Explicit assumptions (lane alignment of the dx*C blocks, 2x2 pooling).
    if H % 2 != 0 or W % 2 != 0:
        raise ValueError("BlockC kernel requires even H and W (MaxPool 2x2).")
    if Cin % 128 != 0 or Cmid % 128 != 0 or Cout % 128 != 0:
        raise ValueError("BlockC kernel requires channel counts divisible by 128.")

    # Sum the input list + single NCHW->NHWC transpose in XLA (fused), so the
    # kernel reads exactly one NHWC tensor.
    x = t[0].astype(jnp.float32)
    for a in t[1:]:
        x = x + a.astype(jnp.float32)
    x_nhwc = jnp.transpose(x, (0, 2, 3, 1))

    # Fold the dx taps into the contraction axis:
    #   w[dy, dx, ci, co] -> wcat[dy, dx*C + ci, co];  bf16 for the MXU.
    w1cat = w1.reshape(3, 3 * Cin, Cmid).astype(jnp.bfloat16)
    w2cat = w2.reshape(3, 3 * Cmid, Cout).astype(jnp.bfloat16)

    kernel = _make_kernel(N, H, W, Cin, Cmid, Cout)

    flops = 2 * M * 9 * (Cin * Cmid + Cmid * Cout) + 12 * M * Cmid
    bytes_accessed = (4 * M * Cin                               # summed input
                      + 2 * 9 * (Cin * Cmid + Cmid * Cout)      # bf16 weights
                      + 4 * (Cmid + Cout + 2 * Cmid)            # biases/affine
                      + 4 * N * (H // 2) * (W // 2) * Cout)     # output
    cost = pl.CostEstimate(flops=flops, transcendentals=Cmid,
                           bytes_accessed=bytes_accessed)

    # Realistic VMEM budget: operands + scratch + value-spill headroom, capped
    # well under the 32 MiB default scoped limit (and v7x's 64 MiB physical).
    cat_bytes = 2 * (N * (H + 2) * W * 3 * Cin + N * (H + 2) * W * 3 * Cmid)
    io_bytes = (4 * M * Cin + 2 * 9 * (Cin * Cmid + Cmid * Cout)
                + 4 * N * (H // 2) * (W // 2) * Cout)
    spill_bytes = 4 * M * (2 * Cmid + Cout)      # c1 / y1 / y2 live f32 values
    vmem_limit = int(min(32 * 1024 * 1024,
                         max(8 * 1024 * 1024,
                             4 * (cat_bytes + io_bytes + spill_bytes))))

    out_nhwc = pl.pallas_call(
        kernel,
        out_shape=jax.ShapeDtypeStruct((N, H // 2, W // 2, Cout), jnp.float32),
        in_specs=[pl.BlockSpec(memory_space=pltpu.MemorySpace.VMEM)] * 7,
        out_specs=pl.BlockSpec(memory_space=pltpu.MemorySpace.VMEM),
        scratch_shapes=[
            pltpu.VMEM((N, H + 2, W, 3 * Cin), jnp.bfloat16),   # cat1 (dx folded)
            pltpu.VMEM((N, H + 2, W, 3 * Cmid), jnp.bfloat16),  # cat2 (dx folded)
        ],
        compiler_params=pltpu.CompilerParams(vmem_limit_bytes=vmem_limit),
        cost_estimate=cost,
    )(x_nhwc, w1cat,
      b1.reshape(1, -1).astype(jnp.float32),
      gamma.reshape(1, -1).astype(jnp.float32),
      beta.reshape(1, -1).astype(jnp.float32),
      w2cat,
      b2.reshape(1, -1).astype(jnp.float32))

    return jnp.transpose(out_nhwc, (0, 3, 1, 2))                # back to NCHW


def _ref_forward(t, params):
    """Pure-JAX f32 reference (module semantics) for verification."""
    w1, b1, gamma, beta, w2, b2 = params
    x = jnp.zeros_like(t[0])
    for a in t:
        x = x + a
    x = jnp.transpose(x, (0, 2, 3, 1))
    dn = ('NHWC', 'HWIO', 'NHWC')
    y = lax.conv_general_dilated(x, w1, (1, 1), 'SAME', dimension_numbers=dn) + b1
    mean = jnp.mean(y, axis=(0, 1, 2), keepdims=True)
    var = jnp.mean((y - mean) ** 2, axis=(0, 1, 2), keepdims=True)
    y = (y - mean) / jnp.sqrt(var + 1e-5) * gamma + beta
    y = jnp.maximum(y, 0.0)
    y = lax.conv_general_dilated(y, w2, (1, 1), 'SAME', dimension_numbers=dn) + b2
    y = jnp.maximum(y, 0.0)
    N, H, W, C = y.shape
    y = y.reshape(N, H // 2, 2, W // 2, 2, C).max(axis=(2, 4))
    return jnp.transpose(y, (0, 3, 1, 2))


if __name__ == "__main__":
    key = jax.random.PRNGKey(0)
    N, Cin, H, W = 2, 128, 8, 8        # Cin fixed to 128 by the module
    Cmid, Cout = 256, 256
    T = 3                              # number of tensors in the input tuple

    keys = jax.random.split(key, T + 4)
    t = [jax.random.normal(keys[i], (N, Cin, H, W), jnp.float32) for i in range(T)]

    # Deterministic parameter init (kaiming-uniform-ish bounds, BN gamma=1/beta=0).
    bound1 = 1.0 / math.sqrt(Cin * 9)
    bound2 = 1.0 / math.sqrt(Cmid * 9)
    w1 = jax.random.uniform(keys[T + 0], (3, 3, Cin, Cmid), jnp.float32, -bound1, bound1)
    b1 = jax.random.uniform(keys[T + 1], (Cmid,), jnp.float32, -bound1, bound1)
    gamma = jnp.ones((Cmid,), jnp.float32)
    beta = jnp.zeros((Cmid,), jnp.float32)
    w2 = jax.random.uniform(keys[T + 2], (3, 3, Cmid, Cout), jnp.float32, -bound2, bound2)
    b2 = jax.random.uniform(keys[T + 3], (Cout,), jnp.float32, -bound2, bound2)
    params = (w1, b1, gamma, beta, w2, b2)

    out = jax.block_until_ready(blockc_forward(t, params))
    assert out.shape == (N, Cout, H // 2, W // 2), out.shape

    ref = jax.block_until_ready(_ref_forward(t, params))
    # Tolerance sized for bf16 MXU operands (f32 accumulation, f32 BN/ReLU/pool).
    if not bool(jnp.allclose(out, ref, atol=2e-2, rtol=2e-2)):
        max_err = float(jnp.max(jnp.abs(out - ref)))
        raise AssertionError(f"mismatch vs reference, max abs err = {max_err}")

    print("KERNEL_OK")
</pallas_src>

<mosaic_0001>
module attributes {stable_mosaic.version = 11 : i64} {
  func.func @kernel(%arg0: memref<2x8x8x128xf32, #tpu.memory_space<vmem>>, %arg1: memref<3x384x256xbf16, #tpu.memory_space<vmem>>, %arg2: memref<1x256xf32, #tpu.memory_space<vmem>>, %arg3: memref<1x256xf32, #tpu.memory_space<vmem>>, %arg4: memref<1x256xf32, #tpu.memory_space<vmem>>, %arg5: memref<3x768x256xbf16, #tpu.memory_space<vmem>>, %arg6: memref<1x256xf32, #tpu.memory_space<vmem>>, %arg7: memref<2x4x4x256xf32, #tpu.memory_space<vmem>>, %arg8: memref<2x10x8x384xbf16, #tpu.memory_space<vmem>>, %arg9: memref<2x10x8x768xbf16, #tpu.memory_space<vmem>>) attributes {dimension_semantics = [], scalar_prefetch = 0 : i64, scratch_operands = 2 : i64, tpu.core_type = #tpu.core_type<tc>} {
    %c0 = arith.constant 0 : index
    %c0_0 = arith.constant 0 : index
    %c0_1 = arith.constant 0 : index
    %c0_2 = arith.constant 0 : index
    %0 = vector.load %arg0[%c0, %c0_0, %c0_1, %c0_2] : memref<2x8x8x128xf32, #tpu.memory_space<vmem>>, vector<2x8x8x128xf32>
    %cst = arith.constant 0.000000e+00 : bf16
    %1 = vector.broadcast %cst : bf16 to vector<2x1x8x384xbf16>
    %c0_3 = arith.constant 0 : index
    %c0_4 = arith.constant 0 : index
    %c0_5 = arith.constant 0 : index
    %c0_6 = arith.constant 0 : index
    %2 = vector.load %arg8[%c0_3, %c0_4, %c0_5, %c0_6] : memref<2x10x8x384xbf16, #tpu.memory_space<vmem>>, vector<2x1x8x384xbf16>
    tpu.vector_store %arg8[%c0_3, %c0_4, %c0_5, %c0_6], %1 {strides = array<i32>} : memref<2x10x8x384xbf16, #tpu.memory_space<vmem>>, vector<2x1x8x384xbf16>,
    %c0_7 = arith.constant 0 : index
    %c9 = arith.constant 9 : index
    %c0_8 = arith.constant 0 : index
    %c0_9 = arith.constant 0 : index
    %3 = vector.load %arg8[%c0_7, %c9, %c0_8, %c0_9] : memref<2x10x8x384xbf16, #tpu.memory_space<vmem>>, vector<2x1x8x384xbf16>
    tpu.vector_store %arg8[%c0_7, %c9, %c0_8, %c0_9], %1 {strides = array<i32>} : memref<2x10x8x384xbf16, #tpu.memory_space<vmem>>, vector<2x1x8x384xbf16>,
    %cst_10 = arith.constant 0.000000e+00 : f32
    %4 = vector.broadcast %cst_10 : f32 to vector<2x8x1x128xf32>
    %5 = vector.extract_strided_slice %0 {offsets = [0, 0, 0, 0], sizes = [2, 8, 7, 128], strides = [1, 1, 1, 1]} : vector<2x8x8x128xf32> to vector<2x8x7x128xf32>
    %6 = tpu.concatenate %4, %5 in 2 : vector<2x8x1x128xf32>, vector<2x8x7x128xf32> -> vector<2x8x8x128xf32>
    %7 = arith.truncf %6 : vector<2x8x8x128xf32> to vector<2x8x8x128xbf16>
    %c0_11 = arith.constant 0 : index
    %c1 = arith.constant 1 : index
    %c0_12 = arith.constant 0 : index
    %c0_13 = arith.constant 0 : index
    %8 = vector.load %arg8[%c0_11, %c1, %c0_12, %c0_13] : memref<2x10x8x384xbf16, #tpu.memory_space<vmem>>, vector<2x8x8x128xbf16>
    tpu.vector_store %arg8[%c0_11, %c1, %c0_12, %c0_13], %7 {strides = array<i32>} : memref<2x10x8x384xbf16, #tpu.memory_space<vmem>>, vector<2x8x8x128xbf16>,
    %9 = arith.truncf %0 : vector<2x8x8x128xf32> to vector<2x8x8x128xbf16>
    %c0_14 = arith.constant 0 : index
    %c1_15 = arith.constant 1 : index
    %c0_16 = arith.constant 0 : index
    %c128 = arith.constant 128 : index
    %10 = vector.load %arg8[%c0_14, %c1_15, %c0_16, %c128] : memref<2x10x8x384xbf16, #tpu.memory_space<vmem>>, vector<2x8x8x128xbf16>
    tpu.vector_store %arg8[%c0_14, %c1_15, %c0_16, %c128], %9 {strides = array<i32>} : memref<2x10x8x384xbf16, #tpu.memory_space<vmem>>, vector<2x8x8x128xbf16>,
    %11 = vector.extract_strided_slice %0 {offsets = [0, 0, 1, 0], sizes = [2, 8, 7, 128], strides = [1, 1, 1, 1]} : vector<2x8x8x128xf32> to vector<2x8x7x128xf32>
    %12 = tpu.concatenate %11, %4 in 2 : vector<2x8x7x128xf32>, vector<2x8x1x128xf32> -> vector<2x8x8x128xf32>
    %13 = arith.truncf %12 : vector<2x8x8x128xf32> to vector<2x8x8x128xbf16>
    %c0_17 = arith.constant 0 : index
    %c1_18 = arith.constant 1 : index
    %c0_19 = arith.constant 0 : index
    %c256 = arith.constant 256 : index
    %14 = vector.load %arg8[%c0_17, %c1_18, %c0_19, %c256] : memref<2x10x8x384xbf16, #tpu.memory_space<vmem>>, vector<2x8x8x128xbf16>
    tpu.vector_store %arg8[%c0_17, %c1_18, %c0_19, %c256], %13 {strides = array<i32>} : memref<2x10x8x384xbf16, #tpu.memory_space<vmem>>, vector<2x8x8x128xbf16>,
    %c0_20 = arith.constant 0 : index
    %c1_21 = arith.constant 1 : index
    %c0_22 = arith.constant 0 : index
    %c0_23 = arith.constant 0 : index
    %15 = vector.load %arg8[%c0_20, %c1_21, %c0_22, %c0_23] : memref<2x10x8x384xbf16, #tpu.memory_space<vmem>>, vector<2x8x8x384xbf16>
    %16 = vector.shape_cast %15 : vector<2x8x8x384xbf16> to vector<128x384xbf16>
    %c1_24 = arith.constant 1 : index
    %c0_25 = arith.constant 0 : index
    %c0_26 = arith.constant 0 : index
    %17 = vector.load %arg1[%c1_24, %c0_25, %c0_26] : memref<3x384x256xbf16, #tpu.memory_space<vmem>>, vector<1x384x256xbf16>
    %18 = vector.shape_cast %17 : vector<1x384x256xbf16> to vector<384x256xbf16>
    %cst_27 = arith.constant dense<0.000000e+00> : vector<128x256xf32>
    %19 = tpu.matmul %16, %18, %cst_27 {dimension_numbers = #tpu.dot_dimension_numbers<[1], [0], [0], [1], [0, 0, 1, 1], [], []>} : vector<128x384xbf16>, vector<384x256xbf16>, vector<128x256xf32> -> vector<128x256xf32>
    %c0_28 = arith.constant 0 : index
    %c0_29 = arith.constant 0 : index
    %c0_30 = arith.constant 0 : index
    %c0_31 = arith.constant 0 : index
    %20 = vector.load %arg8[%c0_28, %c0_29, %c0_30, %c0_31] : memref<2x10x8x384xbf16, #tpu.memory_space<vmem>>, vector<2x8x8x384xbf16>
    %21 = vector.shape_cast %20 : vector<2x8x8x384xbf16> to vector<128x384xbf16>
    %c0_32 = arith.constant 0 : index
    %c0_33 = arith.constant 0 : index
    %c0_34 = arith.constant 0 : index
    %22 = vector.load %arg1[%c0_32, %c0_33, %c0_34] : memref<3x384x256xbf16, #tpu.memory_space<vmem>>, vector<1x384x256xbf16>
    %23 = vector.shape_cast %22 : vector<1x384x256xbf16> to vector<384x256xbf16>
    %cst_35 = arith.constant dense<0.000000e+00> : vector<128x256xf32>
    %24 = tpu.matmul %21, %23, %cst_35 {dimension_numbers = #tpu.dot_dimension_numbers<[1], [0], [0], [1], [0, 0, 1, 1], [], []>} : vector<128x384xbf16>, vector<384x256xbf16>, vector<128x256xf32> -> vector<128x256xf32>
    %25 = arith.addf %19, %24 : vector<128x256xf32>
    %c0_36 = arith.constant 0 : index
    %c2 = arith.constant 2 : index
    %c0_37 = arith.constant 0 : index
    %c0_38 = arith.constant 0 : index
    %26 = vector.load %arg8[%c0_36, %c2, %c0_37, %c0_38] : memref<2x10x8x384xbf16, #tpu.memory_space<vmem>>, vector<2x8x8x384xbf16>
    %27 = vector.shape_cast %26 : vector<2x8x8x384xbf16> to vector<128x384xbf16>
    %c2_39 = arith.constant 2 : index
    %c0_40 = arith.constant 0 : index
    %c0_41 = arith.constant 0 : index
    %28 = vector.load %arg1[%c2_39, %c0_40, %c0_41] : memref<3x384x256xbf16, #tpu.memory_space<vmem>>, vector<1x384x256xbf16>
    %29 = vector.shape_cast %28 : vector<1x384x256xbf16> to vector<384x256xbf16>
    %cst_42 = arith.constant dense<0.000000e+00> : vector<128x256xf32>
    %30 = tpu.matmul %27, %29, %cst_42 {dimension_numbers = #tpu.dot_dimension_numbers<[1], [0], [0], [1], [0, 0, 1, 1], [], []>} : vector<128x384xbf16>, vector<384x256xbf16>, vector<128x256xf32> -> vector<128x256xf32>
    %31 = arith.addf %25, %30 : vector<128x256xf32>
    %c0_43 = arith.constant 0 : index
    %c0_44 = arith.constant 0 : index
    %32 = vector.load %arg2[%c0_43, %c0_44] : memref<1x256xf32, #tpu.memory_space<vmem>>, vector<1x256xf32>
    %33 = vector.broadcast %32 : vector<1x256xf32> to vector<128x256xf32>
    %34 = arith.addf %31, %33 : vector<128x256xf32>
    %cst_45 = arith.constant dense<0.000000e+00> : vector<256xf32>
    %35 = vector.multi_reduction <add>, %34, %cst_45 [0] : vector<128x256xf32> to vector<256xf32>
    %36 = vector.shape_cast %35 : vector<256xf32> to vector<1x256xf32>
    %cst_46 = arith.constant 7.812500e-03 : f32
    %37 = vector.broadcast %cst_46 : f32 to vector<1x256xf32>
    %38 = arith.mulf %36, %37 : vector<1x256xf32>
    %39 = arith.mulf %34, %34 : vector<128x256xf32>
    %cst_47 = arith.constant dense<0.000000e+00> : vector<256xf32>
    %40 = vector.multi_reduction <add>, %39, %cst_47 [0] : vector<128x256xf32> to vector<256xf32>
    %41 = vector.shape_cast %40 : vector<256xf32> to vector<1x256xf32>
    %cst_48 = arith.constant 7.812500e-03 : f32
    %42 = vector.broadcast %cst_48 : f32 to vector<1x256xf32>
    %43 = arith.mulf %41, %42 : vector<1x256xf32>
    %44 = arith.mulf %38, %38 : vector<1x256xf32>
    %45 = arith.subf %43, %44 : vector<1x256xf32>
    %c0_49 = arith.constant 0 : index
    %c0_50 = arith.constant 0 : index
    %46 = vector.load %arg3[%c0_49, %c0_50] : memref<1x256xf32, #tpu.memory_space<vmem>>, vector<1x256xf32>
    %cst_51 = arith.constant 9.99999974E-6 : f32
    %47 = vector.broadcast %cst_51 : f32 to vector<1x256xf32>
    %48 = arith.addf %45, %47 : vector<1x256xf32>
    %49 = math.rsqrt %48 : vector<1x256xf32>
    %50 = arith.mulf %46, %49 : vector<1x256xf32>
    %c0_52 = arith.constant 0 : index
    %c0_53 = arith.constant 0 : index
    %51 = vector.load %arg4[%c0_52, %c0_53] : memref<1x256xf32, #tpu.memory_space<vmem>>, vector<1x256xf32>
    %52 = arith.mulf %38, %50 : vector<1x256xf32>
    %53 = arith.subf %51, %52 : vector<1x256xf32>
    %54 = vector.broadcast %50 : vector<1x256xf32> to vector<128x256xf32>
    %55 = arith.mulf %34, %54 : vector<128x256xf32>
    %56 = vector.broadcast %53 : vector<1x256xf32> to vector<128x256xf32>
    %57 = arith.addf %55, %56 : vector<128x256xf32>
    %cst_54 = arith.constant 0.000000e+00 : f32
    %58 = vector.broadcast %cst_54 : f32 to vector<128x256xf32>
    %59 = arith.maximumf %57, %58 : vector<128x256xf32>
    %60 = vector.shape_cast %59 : vector<128x256xf32> to vector<2x8x8x256xf32>
    %cst_55 = arith.constant 0.000000e+00 : bf16
    %61 = vector.broadcast %cst_55 : bf16 to vector<2x1x8x768xbf16>
    %c0_56 = arith.constant 0 : index
    %c0_57 = arith.constant 0 : index
    %c0_58 = arith.constant 0 : index
    %c0_59 = arith.constant 0 : index
    %62 = vector.load %arg9[%c0_56, %c0_57, %c0_58, %c0_59] : memref<2x10x8x768xbf16, #tpu.memory_space<vmem>>, vector<2x1x8x768xbf16>
    tpu.vector_store %arg9[%c0_56, %c0_57, %c0_58, %c0_59], %61 {strides = array<i32>} : memref<2x10x8x768xbf16, #tpu.memory_space<vmem>>, vector<2x1x8x768xbf16>,
    %c0_60 = arith.constant 0 : index
    %c9_61 = arith.constant 9 : index
    %c0_62 = arith.constant 0 : index
    %c0_63 = arith.constant 0 : index
    %63 = vector.load %arg9[%c0_60, %c9_61, %c0_62, %c0_63] : memref<2x10x8x768xbf16, #tpu.memory_space<vmem>>, vector<2x1x8x768xbf16>
    tpu.vector_store %arg9[%c0_60, %c9_61, %c0_62, %c0_63], %61 {strides = array<i32>} : memref<2x10x8x768xbf16, #tpu.memory_space<vmem>>, vector<2x1x8x768xbf16>,
    %cst_64 = arith.constant 0.000000e+00 : f32
    %64 = vector.broadcast %cst_64 : f32 to vector<2x8x1x256xf32>
    %65 = vector.extract_strided_slice %60 {offsets = [0, 0, 0, 0], sizes = [2, 8, 7, 256], strides = [1, 1, 1, 1]} : vector<2x8x8x256xf32> to vector<2x8x7x256xf32>
    %66 = tpu.concatenate %64, %65 in 2 : vector<2x8x1x256xf32>, vector<2x8x7x256xf32> -> vector<2x8x8x256xf32>
    %67 = arith.truncf %66 : vector<2x8x8x256xf32> to vector<2x8x8x256xbf16>
    %c0_65 = arith.constant 0 : index
    %c1_66 = arith.constant 1 : index
    %c0_67 = arith.constant 0 : index
    %c0_68 = arith.constant 0 : index
    %68 = vector.load %arg9[%c0_65, %c1_66, %c0_67, %c0_68] : memref<2x10x8x768xbf16, #tpu.memory_space<vmem>>, vector<2x8x8x256xbf16>
    tpu.vector_store %arg9[%c0_65, %c1_66, %c0_67, %c0_68], %67 {strides = array<i32>} : memref<2x10x8x768xbf16, #tpu.memory_space<vmem>>, vector<2x8x8x256xbf16>,
    %69 = arith.truncf %60 : vector<2x8x8x256xf32> to vector<2x8x8x256xbf16>
    %c0_69 = arith.constant 0 : index
    %c1_70 = arith.constant 1 : index
    %c0_71 = arith.constant 0 : index
    %c256_72 = arith.constant 256 : index
    %70 = vector.load %arg9[%c0_69, %c1_70, %c0_71, %c256_72] : memref<2x10x8x768xbf16, #tpu.memory_space<vmem>>, vector<2x8x8x256xbf16>
    tpu.vector_store %arg9[%c0_69, %c1_70, %c0_71, %c256_72], %69 {strides = array<i32>} : memref<2x10x8x768xbf16, #tpu.memory_space<vmem>>, vector<2x8x8x256xbf16>,
    %71 = vector.extract_strided_slice %60 {offsets = [0, 0, 1, 0], sizes = [2, 8, 7, 256], strides = [1, 1, 1, 1]} : vector<2x8x8x256xf32> to vector<2x8x7x256xf32>
    %72 = tpu.concatenate %71, %64 in 2 : vector<2x8x7x256xf32>, vector<2x8x1x256xf32> -> vector<2x8x8x256xf32>
    %73 = arith.truncf %72 : vector<2x8x8x256xf32> to vector<2x8x8x256xbf16>
    %c0_73 = arith.constant 0 : index
    %c1_74 = arith.constant 1 : index
    %c0_75 = arith.constant 0 : index
    %c512 = arith.constant 512 : index
    %74 = vector.load %arg9[%c0_73, %c1_74, %c0_75, %c512] : memref<2x10x8x768xbf16, #tpu.memory_space<vmem>>, vector<2x8x8x256xbf16>
    tpu.vector_store %arg9[%c0_73, %c1_74, %c0_75, %c512], %73 {strides = array<i32>} : memref<2x10x8x768xbf16, #tpu.memory_space<vmem>>, vector<2x8x8x256xbf16>,
    %c0_76 = arith.constant 0 : index
    %c1_77 = arith.constant 1 : index
    %c0_78 = arith.constant 0 : index
    %c0_79 = arith.constant 0 : index
    %75 = vector.load %arg9[%c0_76, %c1_77, %c0_78, %c0_79] : memref<2x10x8x768xbf16, #tpu.memory_space<vmem>>, vector<2x8x8x768xbf16>
    %76 = vector.shape_cast %75 : vector<2x8x8x768xbf16> to vector<128x768xbf16>
    %c1_80 = arith.constant 1 : index
    %c0_81 = arith.constant 0 : index
    %c0_82 = arith.constant 0 : index
    %77 = vector.load %arg5[%c1_80, %c0_81, %c0_82] : memref<3x768x256xbf16, #tpu.memory_space<vmem>>, vector<1x768x256xbf16>
    %78 = vector.shape_cast %77 : vector<1x768x256xbf16> to vector<768x256xbf16>
    %cst_83 = arith.constant dense<0.000000e+00> : vector<128x256xf32>
    %79 = tpu.matmul %76, %78, %cst_83 {dimension_numbers = #tpu.dot_dimension_numbers<[1], [0], [0], [1], [0, 0, 1, 1], [], []>} : vector<128x768xbf16>, vector<768x256xbf16>, vector<128x256xf32> -> vector<128x256xf32>
    %c0_84 = arith.constant 0 : index
    %c0_85 = arith.constant 0 : index
    %c0_86 = arith.constant 0 : index
    %c0_87 = arith.constant 0 : index
    %80 = vector.load %arg9[%c0_84, %c0_85, %c0_86, %c0_87] : memref<2x10x8x768xbf16, #tpu.memory_space<vmem>>, vector<2x8x8x768xbf16>
    %81 = vector.shape_cast %80 : vector<2x8x8x768xbf16> to vector<128x768xbf16>
    %c0_88 = arith.constant 0 : index
    %c0_89 = arith.constant 0 : index
    %c0_90 = arith.constant 0 : index
    %82 = vector.load %arg5[%c0_88, %c0_89, %c0_90] : memref<3x768x256xbf16, #tpu.memory_space<vmem>>, vector<1x768x256xbf16>
    %83 = vector.shape_cast %82 : vector<1x768x256xbf16> to vector<768x256xbf16>
    %cst_91 = arith.constant dense<0.000000e+00> : vector<128x256xf32>
    %84 = tpu.matmul %81, %83, %cst_91 {dimension_numbers = #tpu.dot_dimension_numbers<[1], [0], [0], [1], [0, 0, 1, 1], [], []>} : vector<128x768xbf16>, vector<768x256xbf16>, vector<128x256xf32> -> vector<128x256xf32>
    %85 = arith.addf %79, %84 : vector<128x256xf32>
    %c0_92 = arith.constant 0 : index
    %c2_93 = arith.constant 2 : index
    %c0_94 = arith.constant 0 : index
    %c0_95 = arith.constant 0 : index
    %86 = vector.load %arg9[%c0_92, %c2_93, %c0_94, %c0_95] : memref<2x10x8x768xbf16, #tpu.memory_space<vmem>>, vector<2x8x8x768xbf16>
    %87 = vector.shape_cast %86 : vector<2x8x8x768xbf16> to vector<128x768xbf16>
    %c2_96 = arith.constant 2 : index
    %c0_97 = arith.constant 0 : index
    %c0_98 = arith.constant 0 : index
    %88 = vector.load %arg5[%c2_96, %c0_97, %c0_98] : memref<3x768x256xbf16, #tpu.memory_space<vmem>>, vector<1x768x256xbf16>
    %89 = vector.shape_cast %88 : vector<1x768x256xbf16> to vector<768x256xbf16>
    %cst_99 = arith.constant dense<0.000000e+00> : vector<128x256xf32>
    %90 = tpu.matmul %87, %89, %cst_99 {dimension_numbers = #tpu.dot_dimension_numbers<[1], [0], [0], [1], [0, 0, 1, 1], [], []>} : vector<128x768xbf16>, vector<768x256xbf16>, vector<128x256xf32> -> vector<128x256xf32>
    %91 = arith.addf %85, %90 : vector<128x256xf32>
    %c0_100 = arith.constant 0 : index
    %c0_101 = arith.constant 0 : index
    %92 = vector.load %arg6[%c0_100, %c0_101] : memref<1x256xf32, #tpu.memory_space<vmem>>, vector<1x256xf32>
    %93 = vector.broadcast %92 : vector<1x256xf32> to vector<128x256xf32>
    %94 = arith.addf %91, %93 : vector<128x256xf32>
    %cst_102 = arith.constant 0.000000e+00 : f32
    %95 = vector.broadcast %cst_102 : f32 to vector<128x256xf32>
    %96 = arith.maximumf %94, %95 : vector<128x256xf32>
    %97 = vector.shape_cast %96 : vector<128x256xf32> to vector<2x4x2x8x256xf32>
    %98 = vector.extract_strided_slice %97 {offsets = [0, 0, 0, 0, 0], sizes = [2, 4, 1, 8, 256], strides = [1, 1, 1, 1, 1]} : vector<2x4x2x8x256xf32> to vector<2x4x1x8x256xf32>
    %99 = vector.shape_cast %98 : vector<2x4x1x8x256xf32> to vector<2x4x8x256xf32>
    %100 = vector.extract_strided_slice %97 {offsets = [0, 0, 1, 0, 0], sizes = [2, 4, 1, 8, 256], strides = [1, 1, 1, 1, 1]} : vector<2x4x2x8x256xf32> to vector<2x4x1x8x256xf32>
    %101 = vector.shape_cast %100 : vector<2x4x1x8x256xf32> to vector<2x4x8x256xf32>
    %102 = arith.maximumf %99, %101 : vector<2x4x8x256xf32>
    %103 = vector.shape_cast %102 : vector<2x4x8x256xf32> to vector<2x4x4x2x256xf32>
    %104 = vector.extract_strided_slice %103 {offsets = [0, 0, 0, 0, 0], sizes = [2, 4, 4, 1, 256], strides = [1, 1, 1, 1, 1]} : vector<2x4x4x2x256xf32> to vector<2x4x4x1x256xf32>
    %105 = vector.shape_cast %104 : vector<2x4x4x1x256xf32> to vector<2x4x4x256xf32>
    %106 = vector.extract_strided_slice %103 {offsets = [0, 0, 0, 1, 0], sizes = [2, 4, 4, 1, 256], strides = [1, 1, 1, 1, 1]} : vector<2x4x4x2x256xf32> to vector<2x4x4x1x256xf32>
    %107 = vector.shape_cast %106 : vector<2x4x4x1x256xf32> to vector<2x4x4x256xf32>
    %108 = arith.maximumf %105, %107 : vector<2x4x4x256xf32>
    %c0_103 = arith.constant 0 : index
    %c0_104 = arith.constant 0 : index
    %c0_105 = arith.constant 0 : index
    %c0_106 = arith.constant 0 : index
    %109 = vector.load %arg7[%c0_103, %c0_104, %c0_105, %c0_106] : memref<2x4x4x256xf32, #tpu.memory_space<vmem>>, vector<2x4x4x256xf32>
    tpu.vector_store %arg7[%c0_103, %c0_104, %c0_105, %c0_106], %108 {strides = array<i32>} : memref<2x4x4x256xf32, #tpu.memory_space<vmem>>, vector<2x4x4x256xf32>,
    return
  }
}

</mosaic_0001>

<bundles_post_ra>
// kernel: tpu_custom_call.1
= control target key start
LH: loop header
LB: loop body
LE: loop exit
PB: predicated region body
PF: predicated region fallthrough
CT: control target
= control target key end

     0   :  { %12 = vsyncpa [#allocation5], 0  ;;  %s12452_s0 = inlined_call_operand.hbm [shape: f32[2,8,8,128], index: 0, kind: input, shape index: {}]   ;;  %s12453_s1 = inlined_call_operand.hbm [shape: bf16[3,384,256], index: 1, kind: input, shape index: {}]   ;;  %s12454_s2 = inlined_call_operand.hbm [shape: f32[1,256], index: 2, kind: input, shape index: {}]   ;;  %s12455_s3 = inlined_call_operand.hbm [shape: f32[1,256], index: 3, kind: input, shape index: {}]   ;;  %s12456_s4 = inlined_call_operand.hbm [shape: f32[1,256], index: 4, kind: input, shape index: {}]   ;;  %s12457_s5 = inlined_call_operand.hbm [shape: bf16[3,768,256], index: 5, kind: input, shape index: {}]   ;;  %s12458_s6 = inlined_call_operand.hbm [shape: f32[1,256], index: 6, kind: input, shape index: {}]   ;;  %s12459_s7 = inlined_call_operand.hbm [shape: f32[2,4,4,256], index: 7, kind: output, shape index: {}]  }
   0x1   :  { %13 = vsyncpa [#allocation8], 0 }
   0x2   :  { %14 = vsyncpa [#allocation11], 0 }
   0x3   :  { %15 = vsyncpa [#allocation14], 0 }
   0x4   :  { %16 = vsyncpa [#allocation6], 0  ;;  %s10383_s24 = smov [#allocation7]   ;;  %s10384_s26 = smov [#allocation10]  }
   0x5   :  { %s34_s25 = sshll.u32 %s10383_s24, 4  ;;  %s57_s27 = sshll.u32 %s10384_s26, 4  ;;  %s35_s25 = int_to_ptr.vmem [resolvable:$true] %s34_s25  ;;  %s58_s27 = int_to_ptr.vmem [resolvable:$true] %s57_s27 }
   0x6   :  { %s10197_s30 = scalar_lea.hbm %s12453_s1, 18432 }
   0x7   :  { %p10198_p0 = scmp.ne.s32.totalorder %s12453_s1, %s10197_s30  ;;  %p10201_p1 = scmp.lt.u32.totalorder %s10197_s30, %s12453_s1 }
   0x9   :  { %p10203_p2 = pnand %p10201_p1, %p10198_p0 }
   0xb   :  { %10206 = shalt.err (!%p10203_p2)
}
   0xc   :  { %s10207_s12 = scalar_lea.vmem %s35_s25, 18432  ;;  %p10212_p4 = scmp.lt.s32.totalorder %s35_s25, %s35_s25 }
   0xd   :  { %p10208_p3 = scmp.ne.s32.totalorder %s35_s25, %s10207_s12  ;;  %p10213_p5 = scmp.lt.s32.totalorder %s10207_s12, %s10207_s12 }
   0xf   :  { %p10214_p6 = por %p10213_p5, %p10212_p4 }
  0x11   :  { %p10215_p7 = pnand %p10214_p6, %p10208_p3 }
  0x13   :  { %10218 = shalt.err (!%p10215_p7)
}
  0x14   :  { %s10385_s13 = smov 128   ;;  %s10386_s14 = smov 8  }
  0x15   :  { %40 = dma.hbm_to_vmem [thread:$0]  %s12453_s1, 18432, %s35_s25, [#allocation8], %s10385_s13, %s10385_s13, %s10386_s14  }
  0x16   :  { %s10219_s19 = scalar_lea.hbm %s12455_s3, 32 }
  0x17   :  { %p10220_p8 = scmp.ne.s32.totalorder %s12455_s3, %s10219_s19  ;;  %p10223_p9 = scmp.lt.u32.totalorder %s10219_s19, %s12455_s3 }
  0x19   :  { %p10225_p10 = pnand %p10223_p9, %p10220_p8 }
  0x1b   :  { %10228 = shalt.err (!%p10225_p10)
}
  0x1c   :  { %s10229_s24 = scalar_lea.vmem %s58_s27, 32  ;;  %p10234_p12 = scmp.lt.s32.totalorder %s58_s27, %s58_s27 }
  0x1d   :  { %p10230_p11 = scmp.ne.s32.totalorder %s58_s27, %s10229_s24  ;;  %p10235_p13 = scmp.lt.s32.totalorder %s10229_s24, %s10229_s24 }
  0x1f   :  { %p10236_p0 = por %p10235_p13, %p10234_p12 }
  0x21   :  { %p10237_p1 = pnand %p10236_p0, %p10230_p11 }
  0x23   :  { %10240 = shalt.err (!%p10237_p1)
}
  0x24   :  { %60 = dma.hbm_to_vmem [thread:$0]  %s12455_s3, 32, %s58_s27, [#allocation11]  }
  0x25   :  { %s10387_s26 = smov [#allocation13]   ;;  %s10388_s29 = smov [#allocation4]  }
  0x26   :  { %s76_s28 = sshll.u32 %s10387_s26, 4  ;;  %s22_s30 = sshll.u32 %s10388_s29, 4  ;;  %s77_s28 = int_to_ptr.vmem [resolvable:$true] %s76_s28  ;;  %s10464_s30 = int_to_ptr.vmem [resolvable:$true] %s22_s30 }
  0x27   :  { %s10241_s10 = scalar_lea.hbm %s12457_s5, 36864 }
  0x28   :  { %p10242_p2 = scmp.ne.s32.totalorder %s12457_s5, %s10241_s10  ;;  %p10245_p3 = scmp.lt.u32.totalorder %s10241_s10, %s12457_s5 }
  0x2a   :  { %p10247_p4 = pnand %p10245_p3, %p10242_p2 }
  0x2c   :  { %10250 = shalt.err (!%p10247_p4)
}
  0x2d   :  { %s10251_s3 = scalar_lea.vmem %s77_s28, 36864  ;;  %p10256_p6 = scmp.lt.s32.totalorder %s77_s28, %s77_s28 }
  0x2e   :  { %p10252_p5 = scmp.ne.s32.totalorder %s77_s28, %s10251_s3  ;;  %p10257_p7 = scmp.lt.s32.totalorder %s10251_s3, %s10251_s3 }
  0x30   :  { %p10258_p8 = por %p10257_p7, %p10256_p6 }
  0x32   :  { %p10259_p9 = pnand %p10258_p8, %p10252_p5 }
  0x34   :  { %10262 = shalt.err (!%p10259_p9)
}
  0x35   :  { %82 = dma.hbm_to_vmem [thread:$0]  %s12457_s5, 36864, %s77_s28, [#allocation14], %s10385_s13, %s10385_s13, %s10386_s14  }
  0x36   :  { %s10263_s20 = scalar_lea.hbm %s12452_s0, 2048 }
  0x37   :  { %p10264_p10 = scmp.ne.s32.totalorder %s12452_s0, %s10263_s20  ;;  %p10267_p11 = scmp.lt.u32.totalorder %s10263_s20, %s12452_s0 }
  0x39   :  { %p10269_p12 = pnand %p10267_p11, %p10264_p10 }
  0x3b   :  { %10272 = shalt.err (!%p10269_p12)
}
  0x3c   :  { %s10273_s1 = scalar_lea.vmem %s10464_s30, 2048  ;;  %p10278_p0 = scmp.lt.s32.totalorder %s10464_s30, %s10464_s30 }
  0x3d   :  { %p10274_p13 = scmp.ne.s32.totalorder %s10464_s30, %s10273_s1  ;;  %p10279_p1 = scmp.lt.s32.totalorder %s10273_s1, %s10273_s1 }
  0x3f   :  { %p10280_p2 = por %p10279_p1, %p10278_p0 }
  0x41   :  { %p10281_p3 = pnand %p10280_p2, %p10274_p13 }
  0x43   :  { %10284 = shalt.err (!%p10281_p3)
}
  0x44   :  { %28 = dma.hbm_to_vmem [thread:$0]  %s12452_s0, 2048, %s10464_s30, [#allocation5], %s10385_s13, %s10385_s13, %s10386_s14  }
  0x45   :  { %s10389_s26 = smov [#allocation9]   ;;  %s10390_s29 = smov [#allocation12]  }
  0x46   :  { %s47_s28 = sshll.u32 %s10389_s26, 4  ;;  %s67_s8 = sshll.u32 %s10390_s29, 4  ;;  %s48_s28 = int_to_ptr.vmem [resolvable:$true] %s47_s28  ;;  %s68_s8 = int_to_ptr.vmem [resolvable:$true] %s67_s8 }
  0x47   :  { %s10285_s11 = scalar_lea.hbm %s12454_s2, 32 }
  0x48   :  { %p10286_p4 = scmp.ne.s32.totalorder %s12454_s2, %s10285_s11  ;;  %p10289_p5 = scmp.lt.u32.totalorder %s10285_s11, %s12454_s2 }
  0x4a   :  { %p10291_p6 = pnand %p10289_p5, %p10286_p4 }
  0x4c   :  { %10294 = shalt.err (!%p10291_p6)
}
  0x4d   :  { %s10295_s0 = scalar_lea.vmem %s48_s28, 32  ;;  %p10300_p8 = scmp.lt.s32.totalorder %s48_s28, %s48_s28 }
  0x4e   :  { %p10296_p7 = scmp.ne.s32.totalorder %s48_s28, %s10295_s0  ;;  %p10301_p9 = scmp.lt.s32.totalorder %s10295_s0, %s10295_s0 }
  0x50   :  { %p10302_p10 = por %p10301_p9, %p10300_p8 }
  0x52   :  { %p10303_p11 = pnand %p10302_p10, %p10296_p7 }
  0x54   :  { %10306 = shalt.err (!%p10303_p11)
}
  0x55   :  { %50 = dma.hbm_to_vmem [thread:$0]  %s12454_s2, 32, %s48_s28, [#allocation8]  }
  0x56   :  { %s10307_s19 = scalar_lea.hbm %s12456_s4, 32 }
  0x57   :  { %p10308_p12 = scmp.ne.s32.totalorder %s12456_s4, %s10307_s19  ;;  %p10311_p13 = scmp.lt.u32.totalorder %s10307_s19, %s12456_s4 }
  0x59   :  { %p10313_p0 = pnand %p10311_p13, %p10308_p12 }
  0x5b   :  { %10316 = shalt.err (!%p10313_p0)
}
  0x5c   :  { %s10317_s24 = scalar_lea.vmem %s68_s8, 32  ;;  %p10322_p2 = scmp.lt.s32.totalorder %s68_s8, %s68_s8 }
  0x5d   :  { %p10318_p1 = scmp.ne.s32.totalorder %s68_s8, %s10317_s24  ;;  %p10323_p3 = scmp.lt.s32.totalorder %s10317_s24, %s10317_s24 }
  0x5f   :  { %p10324_p4 = por %p10323_p3, %p10322_p2 }
  0x61   :  { %p10325_p5 = pnand %p10324_p4, %p10318_p1 }
  0x63   :  { %10328 = shalt.err (!%p10325_p5)
}
  0x64   :  { %70 = dma.hbm_to_vmem [thread:$0]  %s12456_s4, 32, %s68_s8, [#allocation11]  }
  0x65   :  { %s10391_s5 = smov [#allocation15]   ;;  %s10329_s29 = scalar_lea.hbm %s12458_s6, 32 }
  0x66   :  { %s89_s25 = sshll.u32 %s10391_s5, 4  ;;  %p10330_p6 = scmp.ne.s32.totalorder %s12458_s6, %s10329_s29  ;;  %s90_s25 = int_to_ptr.vmem [resolvable:$true] %s89_s25 }
  0x67   :  { %p10333_p7 = scmp.lt.u32.totalorder %s10329_s29, %s12458_s6 }
  0x69   :  { %p10335_p8 = pnand %p10333_p7, %p10330_p6 }
  0x6b   :  { %10338 = shalt.err (!%p10335_p8)
}
  0x6c   :  { %s10339_s15 = scalar_lea.vmem %s90_s25, 32  ;;  %p10344_p10 = scmp.lt.s32.totalorder %s90_s25, %s90_s25 }
  0x6d   :  { %p10340_p9 = scmp.ne.s32.totalorder %s90_s25, %s10339_s15  ;;  %p10345_p11 = scmp.lt.s32.totalorder %s10339_s15, %s10339_s15 }
  0x6f   :  { %p10346_p12 = por %p10345_p11, %p10344_p10 }
  0x71   :  { %p10347_p13 = pnand %p10346_p12, %p10340_p9 }
  0x73   :  { %10350 = shalt.err (!%p10347_p13)
}
  0x74   :  { %92 = dma.hbm_to_vmem [thread:$0]  %s12458_s6, 32, %s90_s25, [#allocation14]  }
  0x75   :  { %10373 = dma.done.wait [#allocation5], 2048  }
  0x76   :  { %10374 = vsyncadd [#allocation5], 4294965248 }
  0x77   :  { %10375 = dma.done.wait [#allocation8], 18464  }
  0x78   :  { %10376 = vsyncadd [#allocation8], 4294948832 }
  0x79   :  { %10377 = dma.done.wait [#allocation11], 64  }
  0x7a   :  { %10378 = vsyncadd [#allocation11], 4294967232 }
  0x7b   :  { %10379 = dma.done.wait [#allocation14], 36896  }
  0x7c   :  { %10380 = vsyncadd [#allocation14], 4294930400  ;;  %v10392_v0 = vmov 0   ;;  %v9454_v1 = vld [vmem:[#allocation7 + $0x4] ss:$8 sps:$4 sm:$0xff]   ;;  %vm188_vm0 = vcmask 1040384  }
  0x7d   :  { %131 = vst [vmem:[#allocation2] sm:$0xff] %v10392_v0  ;;  %132 = vst [vmem:[#allocation2 + $0x8] sm:$0xf] %v10392_v0  ;;  %v9456_v2 = vld [vmem:[#allocation7] ss:$8 sps:$4 sm:$0xff]   ;;  %880 = vmatprep.subr.bf16.mxu0 %v9454_v1  ;;  %vm302_vm1 = vcmask 1046528  }
  0x7e   :  { %134 = vst [vmem:[#allocation2 + $0x80] sm:$0xf] %v10392_v0  ;;  %137 = vst [vmem:[#allocation2 + $0x74] sm:$0xf] %v10392_v0  ;;  %v9457_v3 = vld [vmem:[#allocation7 + $0x14] ss:$8 sps:$4 sm:$0xff]   ;;  %881 = vmatpush1.bf16.msra.mxu0 %v9456_v2 }
  0x7f   :  { %139 = vst [vmem:[#allocation2 + $0xec] sm:$0xf] %v10392_v0  ;;  %v9459_v4 = vld [vmem:[#allocation7 + $0x10] ss:$8 sps:$4 sm:$0xff]   ;;  %882 = vmatprep.subr.bf16.mxu0 %v9457_v3  ;;  %v9460_v5 = vld [vmem:[#allocation7 + $0x24] ss:$8 sps:$4 sm:$0xff]   ;;  %vm11161_vm2 = vmneg %vm188_vm0 }
  0x80   :  { %v9462_v6 = vld [vmem:[#allocation7 + $0x20] ss:$8 sps:$4 sm:$0xff]   ;;  %v9463_v7 = vld [vmem:[#allocation7 + $0x34] ss:$8 sps:$4 sm:$0xff]   ;;  %v9465_v8 = vld [vmem:[#allocation7 + $0x30] ss:$8 sps:$4 sm:$0xff]  }
  0x81   :  { %v9466_v9 = vld [vmem:[#allocation7 + $0x44] ss:$8 sps:$4 sm:$0xff]   ;;  %v9468_v10 = vld [vmem:[#allocation7 + $0x40] ss:$8 sps:$4 sm:$0xff]   ;;  %v9469_v11 = vld [vmem:[#allocation7 + $0x54] ss:$8 sps:$4 sm:$0xff]  }
  0x82   :  { %883 = vmatpush1.bf16.msra.mxu0 %v9459_v4  ;;  %v9471_v12 = vld [vmem:[#allocation7 + $0x50] ss:$8 sps:$4 sm:$0xff]   ;;  %v9472_v13 = vld [vmem:[#allocation7 + $0x64] ss:$8 sps:$4 sm:$0xff]   ;;  %v9474_v19 = vld [vmem:[#allocation7 + $0x60] ss:$8 sps:$4 sm:$0xff]  }
  0x83   :  { %884 = vmatprep.subr.bf16.mxu0 %v9460_v5  ;;  %v115_v14 = vld [vmem:[#allocation4] sm:$0xff]  ;;  %v10542_v18 = vld [vmem:[#allocation4 + $0x8] sm:$0xff]  ;;  %v10544_v20 = vld [vmem:[#allocation4 + $0x10] sm:$0xff]  ;;  %vm7722_vm5 = vcmask 1041409   ;;  %vm7724_vm6 = vcmask 1045509   ;;  %vm7726_vm7 = vcmask 1042434  }
  0x84   :  { %v156_v15 = vrot.slane %v115_v14, 7  ;;  %v238_v16 = vpack.c.bf16 %v115_v14, %v115_v14  ;;  %v270_v17 = vrot.slane %v115_v14, 1  ;;  %v157_v21 = vrot.slane %v10542_v18, 7  ;;  %v9475_v24 = vld [vmem:[#allocation7 + $0x74] ss:$8 sps:$4 sm:$0xff]   ;;  %v10558_v33 = vld [vmem:[#allocation4 + $0x20] sm:$0xff]  ;;  %vm11191_vm3 = vmpackc.low %vm11161_vm2, %vm11161_vm2 }
  0x85   :  { %v239_v22 = vpack.c.bf16 %v10542_v18, %v10542_v18  ;;  %v271_v23 = vrot.slane %v10542_v18, 1  ;;  %v158_v27 = vrot.slane %v10544_v20, 7  ;;  %v240_v28 = vpack.c.bf16 %v10544_v20, %v10544_v20  ;;  %v10556_v32 = vld [vmem:[#allocation4 + $0x18] sm:$0xff]  ;;  %v10564_v39 = vld [vmem:[#allocation4 + $0x28] sm:$0xff]  ;;  %v10570_v45 = vld [vmem:[#allocation4 + $0x30] sm:$0xff]  ;;  %s10396_s6 = smov [#allocation16]  }
  0x86   :  { %885 = vmatpush1.bf16.msra.mxu0 %v9462_v6  ;;  %v189_v25 = vsel %vm188_vm0, 0.0, %v156_v15  ;;  %254 = vst [vmem:[#allocation2 + $0x10] sm:$0xf] %v238_v16  ;;  %v303_v26 = vsel %vm302_vm1, %v270_v17, 0.0  ;;  %v190_v31 = vsel %vm188_vm0, 0.0, %v157_v21  ;;  %v272_v34 = vrot.slane %v10544_v20, 1  ;;  %vm11850_vm4 = vmpackc.low %vm302_vm1, %vm302_vm1 }
  0x87   :  { %886 = vmatprep.subr.bf16.mxu0 %v9463_v7  ;;  %v205_v29 = vpack.c.bf16 %v189_v25, %v189_v25  ;;  %v319_v30 = vpack.c.bf16 %v303_v26, %v303_v26  ;;  %255 = vst [vmem:[#allocation2 + $0x1c] sm:$0xf] %v239_v22  ;;  %v191_v35 = vsel %vm188_vm0, 0.0, %v158_v27  ;;  %v206_v36 = vpack.c.bf16 %v190_v31, %v190_v31  ;;  %v9477_v40 = vld [vmem:[#allocation7 + $0x70] ss:$8 sps:$4 sm:$0xff]   ;;  %v10578_v51 = vld [vmem:[#allocation4 + $0x40] sm:$0xff] }
  0x88   :  { %256 = vst [vmem:[#allocation2 + $0x28] sm:$0xf] %v240_v28  ;;  %v159_v37 = vrot.slane %v10556_v32, 7  ;;  %v160_v38 = vrot.slane %v10558_v33, 7  ;;  %v9478_v41 = vld [vmem:[#allocation7 + $0x84] ss:$8 sps:$4 sm:$0xff]   ;;  %v207_v42 = vpack.c.bf16 %v191_v35, %v191_v35  ;;  %v241_v43 = vpack.c.bf16 %v10556_v32, %v10556_v32 }
  0x89   :  { %222 = vst [vmem:[#allocation2 + $0xc] sm:$0xf] %v205_v29  ;;  %335 = vst [vmem:[#allocation2 + $0x14] sm:$0xf] %v319_v30  ;;  %v242_v44 = vpack.c.bf16 %v10558_v33, %v10558_v33  ;;  %v161_v46 = vrot.slane %v10564_v39, 7  ;;  %v162_v49 = vrot.slane %v10570_v45, 7  ;;  %v243_v50 = vpack.c.bf16 %v10564_v39, %v10564_v39 }
  0x8a   :  { %887 = vmatpush1.bf16.msra.mxu0 %v9465_v8  ;;  %223 = vst [vmem:[#allocation2 + $0x18] sm:$0xf] %v206_v36  ;;  %v192_v47 = vsel %vm188_vm0, 0.0, %v159_v37  ;;  %v193_v48 = vsel %vm188_vm0, 0.0, %v160_v38  ;;  %224 = vst [vmem:[#allocation2 + $0x24] sm:$0xf] %v207_v42  ;;  %v244_v55 = vpack.c.bf16 %v10570_v45, %v10570_v45  ;;  %v246_v59 = vpack.c.bf16 %v10578_v51, %v10578_v51 }
  0x8b   :  { %888 = vmatprep.subr.bf16.mxu0 %v9466_v9  ;;  %v208_v52 = vpack.c.bf16 %v192_v47, %v192_v47  ;;  %v209_v53 = vpack.c.bf16 %v193_v48, %v193_v48  ;;  %257 = vst [vmem:[#allocation2 + $0x34] sm:$0xf] %v241_v43  ;;  %258 = vst [vmem:[#allocation2 + $0x40] sm:$0xf] %v242_v44  ;;  %v194_v54 = vsel %vm188_vm0, 0.0, %v161_v46  ;;  %v195_v56 = vsel %vm188_vm0, 0.0, %v162_v49 }
  0x8c   :  { %v210_v57 = vpack.c.bf16 %v194_v54, %v194_v54  ;;  %259 = vst [vmem:[#allocation2 + $0x4c] sm:$0xf] %v243_v50  ;;  %v164_v58 = vrot.slane %v10578_v51, 7  ;;  %v10587_v60 = vld [vmem:[#allocation4 + $0x48] sm:$0xff]  ;;  %v211_v62 = vpack.c.bf16 %v195_v56, %v195_v56  ;;  %260 = vst [vmem:[#allocation2 + $0x58] sm:$0xf] %v244_v55 }
  0x8d   :  { %v9480_v61 = vld [vmem:[#allocation7 + $0x80] ss:$8 sps:$4 sm:$0xff]   ;;  %225 = vst [vmem:[#allocation2 + $0x30] sm:$0xf] %v208_v52  ;;  %226 = vst [vmem:[#allocation2 + $0x3c] sm:$0xf] %v209_v53  ;;  %v247_v2 = vpack.c.bf16 %v10587_v60, %v10587_v60 }
  0x8e   :  { %889 = vmatpush1.bf16.msra.mxu0 %v9468_v10  ;;  %v10589_v63 = vld [vmem:[#allocation4 + $0x50] sm:$0xff]  ;;  %v165_v1 = vrot.slane %v10587_v60, 7  ;;  %v304_v3 = vsel %vm302_vm1, %v271_v23, 0.0  ;;  %227 = vst [vmem:[#allocation2 + $0x48] sm:$0xf] %v210_v57  ;;  %v197_v5 = vsel %vm188_vm0, 0.0, %v164_v58 }
  0x8f   :  { %890 = vmatprep.subr.bf16.mxu0 %v9469_v11  ;;  %v9481_v4 = vld [vmem:[#allocation7 + $0x94] ss:$8 sps:$4 sm:$0xff]   ;;  %262 = vst [vmem:[#allocation2 + $0x88] sm:$0xf] %v246_v59  ;;  %v166_v6 = vrot.slane %v10589_v63, 7  ;;  %v248_v7 = vpack.c.bf16 %v10589_v63, %v10589_v63  ;;  %v320_v9 = vpack.c.bf16 %v304_v3, %v304_v3  ;;  %v213_v10 = vpack.c.bf16 %v197_v5, %v197_v5  ;;  %v10616_v25 = vld [vmem:[#allocation4 + $0x68] sm:$0xff] }
  0x90   :  { %v10599_v8 = vld [vmem:[#allocation4 + $0x58] sm:$0xff]  ;;  %228 = vst [vmem:[#allocation2 + $0x54] sm:$0xf] %v211_v62  ;;  %v198_v11 = vsel %vm188_vm0, 0.0, %v165_v1  ;;  %263 = vst [vmem:[#allocation2 + $0x94] sm:$0xf] %v247_v2  ;;  %v251_v31 = vpack.c.bf16 %v10616_v25, %v10616_v25 }
  0x91   :  { %v249_v14 = vpack.c.bf16 %v10599_v8, %v10599_v8  ;;  %v10607_v15 = vld [vmem:[#allocation2 + $0xc] sm:$0xff]  ;;  %v199_v16 = vsel %vm188_vm0, 0.0, %v166_v6  ;;  %v214_v17 = vpack.c.bf16 %v198_v11, %v198_v11  ;;  %264 = vst [vmem:[#allocation2 + $0xa0] sm:$0xf] %v248_v7  ;;  %336 = vst [vmem:[#allocation2 + $0x20] sm:$0xf] %v320_v9 }
  0x92   :  { %891 = vmatpush1.bf16.msra.mxu0 %v9471_v12  ;;  %v10602_v12 = vld [vmem:[#allocation4 + $0x60] sm:$0xff]  ;;  %v9483_v21 = vld [vmem:[#allocation7 + $0x90] ss:$8 sps:$4 sm:$0xff]   ;;  %v7813_v22 = vcombine.high %v10392_v0, %v10607_v15  ;;  %230 = vst [vmem:[#allocation2 + $0x84] sm:$0xf] %v213_v10  ;;  %v215_v23 = vpack.c.bf16 %v199_v16, %v199_v16  ;;  %v169_v30 = vrot.slane %v10616_v25, 7 }
  0x93   :  { %892 = vmatprep.subr.bf16.mxu0 %v9472_v13  ;;  %v167_v13 = vrot.slane %v10599_v8, 7  ;;  %v168_v18 = vrot.slane %v10602_v12, 7  ;;  %265 = vst [vmem:[#allocation2 + $0xac] sm:$0xf] %v249_v14  ;;  %v9484_v26 = vld [vmem:[#allocation7 + $0xa4] ss:$8 sps:$4 sm:$0xff]  }
  0x94   :  { %231 = vst [vmem:[#allocation2 + $0x90] sm:$0xf] %v214_v17  ;;  %v10619_v29 = vld [vmem:[#allocation4 + $0x70] sm:$0xff]  ;;  %912 = vmatprep.mubr.bf16.mxu0 %v7813_v22  ;;  %232 = vst [vmem:[#allocation2 + $0x9c] sm:$0xf] %v215_v23  ;;  %v202_v37 = vsel %vm188_vm0, 0.0, %v169_v30 }
  0x95   :  { %v201_v27 = vsel %vm188_vm0, 0.0, %v168_v18  ;;  %v170_v36 = vrot.slane %v10619_v29, 7  ;;  %v252_v38 = vpack.c.bf16 %v10619_v29, %v10619_v29  ;;  %267 = vst [vmem:[#allocation2 + $0xc4] sm:$0xf] %v251_v31  ;;  %v218_v43 = vpack.c.bf16 %v202_v37, %v202_v37  ;;  %v9487_v44 = vld [vmem:[#allocation7 + $0xb4] ss:$8 sps:$4 sm:$0xff]  }
  0x96   :  { %893 = vmatpush1.bf16.msra.mxu0 %v9474_v19  ;;  %v250_v19 = vpack.c.bf16 %v10602_v12, %v10602_v12  ;;  %v217_v35 = vpack.c.bf16 %v201_v27, %v201_v27  ;;  %v273_v48 = vrot.slane %v10556_v32, 1  ;;  %v274_v49 = vrot.slane %v10558_v33, 1  ;;  %v9489_v52 = vld [vmem:[#allocation7 + $0xb0] ss:$8 sps:$4 sm:$0xff]   ;;  %v9490_v53 = vld [vmem:[#allocation7 + $0xc4] ss:$8 sps:$4 sm:$0xff]  }
  0x97   :  { %894 = vmatprep.subr.bf16.mxu0 %v9475_v24  ;;  %v200_v24 = vsel %vm188_vm0, 0.0, %v167_v13  ;;  %v203_v42 = vsel %vm188_vm0, 0.0, %v170_v36  ;;  %268 = vst [vmem:[#allocation2 + $0xd0] sm:$0xf] %v252_v38  ;;  %235 = vst [vmem:[#allocation2 + $0xc0] sm:$0xf] %v218_v43 }
  0x98   :  { %v216_v28 = vpack.c.bf16 %v200_v24, %v200_v24  ;;  %266 = vst [vmem:[#allocation2 + $0xb8] sm:$0xf] %v250_v19  ;;  %234 = vst [vmem:[#allocation2 + $0xb4] sm:$0xf] %v217_v35  ;;  %v219_v46 = vpack.c.bf16 %v203_v42, %v203_v42  ;;  %v275_v20 = vrot.slane %v10564_v39, 1  ;;  %v307_v50 = vsel %vm302_vm1, %v274_v49, 0.0 }
  0x99   :  { %v323_v55 = vpack.c.bf16 %v307_v50, %v307_v50  ;;  %v276_v56 = vrot.slane %v10570_v45, 1  ;;  %v278_v33 = vrot.slane %v10578_v51, 1  ;;  %v279_v57 = vrot.slane %v10587_v60, 1  ;;  %v9492_v62 = vld [vmem:[#allocation7 + $0xc0] ss:$8 sps:$4 sm:$0xff]   ;;  %v10680_v49 = vld [vmem:[#allocation4 + $0x38] sm:$0xff] }
  0x9a   :  { %895 = vmatpush1.bf16.msra.mxu0 %v9477_v40  ;;  %233 = vst [vmem:[#allocation2 + $0xa8] sm:$0xf] %v216_v28  ;;  %v305_v40 = vsel %vm302_vm1, %v272_v34, 0.0  ;;  %236 = vst [vmem:[#allocation2 + $0xcc] sm:$0xf] %v219_v46  ;;  %v306_v34 = vsel %vm302_vm1, %v273_v48, 0.0 }
  0x9b   :  { %896 = vmatprep.subr.bf16.mxu0 %v9478_v41  ;;  %v9486_v41 = vld [vmem:[#allocation7 + $0xa0] ss:$8 sps:$4 sm:$0xff]   ;;  %v321_v47 = vpack.c.bf16 %v305_v40, %v305_v40  ;;  %v322_v54 = vpack.c.bf16 %v306_v34, %v306_v34  ;;  %v308_v32 = vsel %vm302_vm1, %v275_v20, 0.0  ;;  %339 = vst [vmem:[#allocation2 + $0x44] sm:$0xf] %v323_v55  ;;  %v309_v58 = vsel %vm302_vm1, %v276_v56, 0.0 }
  0x9c   :  { %v324_v39 = vpack.c.bf16 %v308_v32, %v308_v32  ;;  %v311_v59 = vsel %vm302_vm1, %v278_v33, 0.0  ;;  %v325_v1 = vpack.c.bf16 %v309_v58, %v309_v58  ;;  %v9493_v2 = vld [vmem:[#allocation7 + $0xd4] ss:$8 sps:$4 sm:$0xff]   ;;  %v312_v51 = vsel %vm302_vm1, %v279_v57, 0.0  ;;  %v9495_v7 = vld [vmem:[#allocation7 + $0xd0] ss:$8 sps:$4 sm:$0xff]  }
  0x9d   :  { %337 = vst [vmem:[#allocation2 + $0x2c] sm:$0xf] %v321_v47  ;;  %338 = vst [vmem:[#allocation2 + $0x38] sm:$0xf] %v322_v54  ;;  %v327_v45 = vpack.c.bf16 %v311_v59, %v311_v59  ;;  %v328_v60 = vpack.c.bf16 %v312_v51, %v312_v51  ;;  %v281_v5 = vrot.slane %v10599_v8, 1  ;;  %v282_v6 = vrot.slane %v10602_v12, 1 }
  0x9e   :  { %897 = vmatpush1.bf16.msra.mxu0 %v9480_v61  ;;  %v280_v61 = vrot.slane %v10589_v63, 1  ;;  %340 = vst [vmem:[#allocation2 + $0x50] sm:$0xf] %v324_v39  ;;  %341 = vst [vmem:[#allocation2 + $0x5c] sm:$0xf] %v325_v1  ;;  %v283_v63 = vrot.slane %v10616_v25, 1  ;;  %v245_v32 = vpack.c.bf16 %v10680_v49, %v10680_v49 }
  0x9f   :  { %898 = vmatprep.subr.bf16.mxu0 %v9481_v4  ;;  %343 = vst [vmem:[#allocation2 + $0x8c] sm:$0xf] %v327_v45  ;;  %344 = vst [vmem:[#allocation2 + $0x98] sm:$0xf] %v328_v60  ;;  %v314_v9 = vsel %vm302_vm1, %v281_v5, 0.0  ;;  %v315_v13 = vsel %vm302_vm1, %v282_v6, 0.0 }
  0xa0   :  { %v313_v3 = vsel %vm302_vm1, %v280_v61, 0.0  ;;  %v9496_v10 = vld [vmem:[#allocation7 + $0xe4] ss:$8 sps:$4 sm:$0xff]   ;;  %v330_v11 = vpack.c.bf16 %v314_v9, %v314_v9  ;;  %v331_v14 = vpack.c.bf16 %v315_v13, %v315_v13  ;;  %v284_v16 = vrot.slane %v10619_v29, 1  ;;  %v9498_v12 = vld [vmem:[#allocation7 + $0xe0] ss:$8 sps:$4 sm:$0xff]  }
  0xa1   :  { %v329_v4 = vpack.c.bf16 %v313_v3, %v313_v3  ;;  %v316_v8 = vsel %vm302_vm1, %v283_v63, 0.0  ;;  %v9499_v18 = vld [vmem:[#allocation7 + $0xf4] ss:$8 sps:$4 sm:$0xff]   ;;  %v9504_v23 = vld [vmem:[#allocation7 + $0x104] ss:$8 sps:$4 sm:$0xff]   ;;  %vm7728_vm8 = vcmask 1046534  }
  0xa2   :  { %899 = vmatpush1.bf16.msra.mxu0 %v9483_v21  ;;  %346 = vst [vmem:[#allocation2 + $0xb0] sm:$0xf] %v330_v11  ;;  %v332_v17 = vpack.c.bf16 %v316_v8, %v316_v8  ;;  %347 = vst [vmem:[#allocation2 + $0xbc] sm:$0xf] %v331_v14  ;;  %v317_v19 = vsel %vm302_vm1, %v284_v16, 0.0  ;;  %v10654_v24 = vld [vmem:[#allocation2 + $0x18] sm:$0xff] }
  0xa3   :  { %900 = vmatprep.subr.bf16.mxu0 %v9484_v26  ;;  %345 = vst [vmem:[#allocation2 + $0xa4] sm:$0xf] %v329_v4  ;;  %v9501_v21 = vld [vmem:[#allocation7 + $0xf0] ss:$8 sps:$4 sm:$0xff]   ;;  %v333_v22 = vpack.c.bf16 %v317_v19, %v317_v19  ;;  %v7812_v26 = vcombine.low %v10392_v0, %v10607_v15  ;;  %v9502_v27 = vld [vmem:[#allocation7 + $0x100] ss:$8 sps:$4 sm:$0xff]   ;;  %v7884_v29 = vcombine.low %v10607_v15, %v10654_v24 }
  0xa4   :  { %348 = vst [vmem:[#allocation2 + $0xc8] sm:$0xf] %v332_v17  ;;  %v10656_v25 = vld [vmem:[#allocation2 + $0x24] sm:$0xff]  ;;  %v7885_v30 = vcombine.high %v10607_v15, %v10654_v24  ;;  %v10666_v36 = vld [vmem:[#allocation2 + $0x30] sm:$0xff]  ;;  %261 = vst [vmem:[#allocation2 + $0x64] sm:$0xf] %v245_v32 }
  0xa5   :  { %349 = vst [vmem:[#allocation2 + $0xd4] sm:$0xf] %v333_v22  ;;  %v7816_v28 = vcombine.high %v10654_v24, %v10656_v25  ;;  %v9509_v31 = vld [vmem:[#allocation7 + $0x114] ss:$8 sps:$4 sm:$0xff]   ;;  %v9507_v35 = vld [vmem:[#allocation7 + $0x110] ss:$8 sps:$4 sm:$0xff]   ;;  %v7888_v38 = vcombine.high %v10656_v25, %v10666_v36  ;;  %v7887_v40 = vcombine.low %v10656_v25, %v10666_v36  ;;  %v7815_v42 = vcombine.low %v10654_v24, %v10656_v25 }
  0xa6   :  { %901 = vmatpush1.bf16.msra.mxu0 %v9486_v41  ;;  %v9514_v37 = vld [vmem:[#allocation7 + $0x124] ss:$8 sps:$4 sm:$0xff]   ;;  %v9512_v43 = vld [vmem:[#allocation7 + $0x120] ss:$8 sps:$4 sm:$0xff]   ;;  %v9519_v46 = vld [vmem:[#allocation7 + $0x134] ss:$8 sps:$4 sm:$0xff]  }
  0xa7   :  { %902 = vmatprep.subr.bf16.mxu0 %v9487_v44  ;;  %v10672_v41 = vld [vmem:[#allocation2 + $0x3c] sm:$0xff]  ;;  %v10678_v47 = vld [vmem:[#allocation2 + $0x48] sm:$0xff]  ;;  %v446_v20 = vld [vmem:[#allocation2 + $0x54] sm:$0xff]  ;;  %vm7730_vm9 = vcmask 1043459   ;;  %vm7732_vm10 = vcmask 1047559   ;;  %s7797_s16 = sshll.u32 %s10396_s6, 4  ;;  %s7798_s16 = int_to_ptr.vmem [resolvable:$true] %s7797_s16 }
  0xa8   :  { %v7819_v44 = vcombine.high %v10666_v36, %v10672_v41  ;;  %v9517_v48 = vld [vmem:[#allocation7 + $0x130] ss:$8 sps:$4 sm:$0xff]   ;;  %v9522_v34 = vld [vmem:[#allocation7 + $0x144] ss:$8 sps:$4 sm:$0xff]   ;;  %v7891_v50 = vcombine.high %v10672_v41, %v10678_v47  ;;  %v9520_v55 = vld [vmem:[#allocation7 + $0x140] ss:$8 sps:$4 sm:$0xff]   ;;  %v7818_v33 = vcombine.low %v10666_v36, %v10672_v41  ;;  %v7822_v57 = vcombine.high %v10678_v47, %v446_v20  ;;  %p10356_p1 = scmp.lt.s32.totalorder %s7798_s16, %s7798_s16 }
  0xa9   :  { %v9527_v39 = vld [vmem:[#allocation7 + $0x154] ss:$8 sps:$4 sm:$0xff]   ;;  %v9525_v58 = vld [vmem:[#allocation7 + $0x150] ss:$8 sps:$4 sm:$0xff]   ;;  %v9532_v61 = vld [vmem:[#allocation7 + $0x164] ss:$8 sps:$4 sm:$0xff]   ;;  %v7821_v1 = vcombine.low %v10678_v47, %v446_v20 }
  0xaa   :  { %903 = vmatpush1.bf16.msra.mxu0 %v9489_v52  ;;  %v163_v52 = vrot.slane %v10680_v49, 7  ;;  %v10693_v59 = vld [vmem:[#allocation2 + $0x84] sm:$0xff]  ;;  %v10698_v51 = vld [vmem:[#allocation2 + $0x90] sm:$0xff]  ;;  %v10700_v60 = vld [vmem:[#allocation2 + $0x9c] sm:$0xff]  ;;  %s10351_s3 = scalar_lea.vmem %s7798_s16, 1024 }
  0xab   :  { %904 = vmatprep.subr.bf16.mxu0 %v9490_v53  ;;  %v7890_v53 = vcombine.low %v10672_v41, %v10678_v47  ;;  %v9537_v45 = vld [vmem:[#allocation7 + $0x174] ss:$8 sps:$4 sm:$0xff]   ;;  %v9535_v3 = vld [vmem:[#allocation7 + $0x170] ss:$8 sps:$4 sm:$0xff]   ;;  %v9541_v4 = vld [vmem:[#allocation7 + $0x184] ss:$8 sps:$4 sm:$0xff]   ;;  %v7897_v5 = vcombine.high %v10693_v59, %v10698_v51  ;;  %v7896_v6 = vcombine.low %v10693_v59, %v10698_v51  ;;  %v7824_v63 = vcombine.low %v10392_v0, %v10693_v59  ;;  %p10352_p0 = scmp.ne.s32.totalorder %s7798_s16, %s10351_s3  ;;  %p10357_p2 = scmp.lt.s32.totalorder %s10351_s3, %s10351_s3 }
  0xac   :  { %v196_v54 = vsel %vm188_vm0, 0.0, %v163_v52  ;;  %v10710_v9 = vld [vmem:[#allocation2 + $0xa8] sm:$0xff]  ;;  %v10722_v16 = vld [vmem:[#allocation2 + $0xc0] sm:$0xff]  ;;  %v9555_v52 = vld [vmem:[#allocation7 + $0x1c4] ss:$8 sps:$4 sm:$0xff]  }
  0xad   :  { %v212_v56 = vpack.c.bf16 %v196_v54, %v196_v54  ;;  %v7900_v11 = vcombine.high %v10700_v60, %v10710_v9  ;;  %v7899_v13 = vcombine.low %v10700_v60, %v10710_v9  ;;  %v10724_v8 = vld [vmem:[#allocation4 + $0x78] sm:$0xff]  ;;  %v9552_v54 = vld [vmem:[#allocation2 + $0x38] ss:$12 sps:$4 sm:$0xff]   ;;  %v9608_v24 = vld [vmem:[#allocation7 + $0x2c4] ss:$8 sps:$4 sm:$0xff]   ;;  %p10358_p3 = por %p10357_p2, %p10356_p1 }
  0xae   :  { %905 = vmatpush1.bf16.msra.mxu0 %v9492_v62  ;;  %v9530_v62 = vld [vmem:[#allocation7 + $0x160] ss:$8 sps:$4 sm:$0xff]   ;;  %v9551_v20 = vld [vmem:[#allocation7 + $0x1b4] ss:$8 sps:$4 sm:$0xff]   ;;  %v9603_v15 = vld [vmem:[#allocation7 + $0x2b0] ss:$8 sps:$4 sm:$0xff]  }
  0xaf   :  { %906 = vmatprep.subr.bf16.mxu0 %v9493_v2  ;;  %229 = vst [vmem:[#allocation2 + $0x60] sm:$0xf] %v212_v56  ;;  %v7825_v2 = vcombine.high %v10392_v0, %v10693_v59  ;;  %v7827_v0 = vcombine.low %v10698_v51, %v10700_v60  ;;  %v9553_v32 = vld [vmem:[#allocation7 + $0x1c0] ss:$8 sps:$4 sm:$0xff]   ;;  %v9609_v25 = vld [vmem:[#allocation7 + $0x2d0] ss:$8 sps:$4 sm:$0xff]   ;;  %p10359_p4 = pnand %p10358_p3, %p10352_p0 }
  0xb0   :  { %v9614_v36 = vld [vmem:[#allocation7 + $0x2e4] ss:$8 sps:$4 sm:$0xff]  }
  0xb1   :  { %v9621_v41 = vld [vmem:[#allocation7 + $0x304] ss:$8 sps:$4 sm:$0xff]  }
  0xb2   :  { %907 = vmatpush1.bf16.msra.mxu0 %v9495_v7  ;;  %v7828_v7 = vcombine.high %v10698_v51, %v10700_v60  ;;  %v9618_v51 = vld [vmem:[#allocation2 + $0x14] ss:$12 sps:$4 sm:$0xff]   ;;  %v9619_v60 = vld [vmem:[#allocation7 + $0x300] ss:$8 sps:$4 sm:$0xff]  }
  0xb3   :  { %908 = vmatprep.subr.bf16.mxu0 %v9496_v10  ;;  %v10712_v10 = vld [vmem:[#allocation2 + $0xb4] sm:$0xff] }
  0xb4   :  { %v7831_v14 = vcombine.high %v10710_v9, %v10712_v10  ;;  %v7903_v17 = vcombine.high %v10712_v10, %v10722_v16  ;;  %v7902_v19 = vcombine.low %v10712_v10, %v10722_v16 }
  0xb6   :  { %909 = vmatpush1.bf16.msra.mxu0 %v9498_v12  ;;  %v10726_v12 = vld [vmem:[#allocation2 + $0xcc] sm:$0xff] }
  0xb7   :  { %910 = vmatprep.subr.bf16.mxu0 %v9499_v18  ;;  %v171_v18 = vrot.slane %v10724_v8, 7 }
  0xba   :  { %911 = vmatpush1.bf16.msra.mxu0 %v9501_v21  ;;  %v204_v21 = vsel %vm188_vm0, 0.0, %v171_v18  ;;  %v9579_v18 = vld [vmem:[#allocation7 + $0x234] ss:$8 sps:$4 sm:$0xff]  }
  0xbb   :  { %993 = vmatprep.subr.bf16.mxu0 %v9504_v23  ;;  %v220_v22 = vpack.c.bf16 %v204_v21, %v204_v21  ;;  %v253_v23 = vpack.c.bf16 %v10724_v8, %v10724_v8  ;;  %v9577_v21 = vld [vmem:[#allocation7 + $0x230] ss:$8 sps:$4 sm:$0xff]  }
  0xbd   :  { %913 = vmatmul.mubr.bf16.vlgmr.msra.gmra.mrb[0].mxu0 %v7812_v26  ;;  %v7830_v26 = vcombine.low %v10710_v9, %v10712_v10  ;;  %237 = vst [vmem:[#allocation2 + $0xd8] sm:$0xf] %v220_v22  ;;  %269 = vst [vmem:[#allocation2 + $0xdc] sm:$0xf] %v253_v23  ;;  %v9583_v22 = vld [vmem:[#allocation7 + $0x244] ss:$8 sps:$4 sm:$0xff]  }
  0xbe   :  { %994 = vmatpush1.bf16.msra.mxu0 %v9502_v27  ;;  %922 = vmatprep.mubr.bf16.mxu0 %v7816_v28  ;;  %v7834_v27 = vcombine.high %v10722_v16, %v10726_v12  ;;  %v7833_v28 = vcombine.low %v10722_v16, %v10726_v12  ;;  %v9580_v23 = vld [vmem:[#allocation2 + $0xb0] ss:$12 sps:$4 sm:$0xff]   ;;  %v9629_v16 = vld [vmem:[#allocation7 + $0x330] ss:$8 sps:$4 sm:$0xff]  }
  0xbf   :  { %995 = vmatprep.subr.bf16.mxu0 %v9509_v31  ;;  %v10742_v31 = vld [vmem:[#allocation2] sm:$0xff]  ;;  %v9628_v9 = vld [vmem:[#allocation7 + $0x324] ss:$8 sps:$4 sm:$0xff]   ;;  %v9626_v10 = vld [vmem:[#allocation7 + $0x320] ss:$8 sps:$4 sm:$0xff]  }
  0xc2   :  { %996 = vmatpush1.bf16.msra.mxu0 %v9507_v35  ;;  %v9538_v35 = vld [vmem:[#allocation2 + $0x8] ss:$12 sps:$4 sm:$0xff]  }
  0xc3   :  { %997 = vmatprep.subr.bf16.mxu0 %v9514_v37  ;;  %v9539_v37 = vld [vmem:[#allocation7 + $0x180] ss:$8 sps:$4 sm:$0xff]  }
  0xc4   :  { %v10793_v47 = vld [vmem:[#allocation2 + $0xd8] sm:$0xff] }
  0xc5   :  { %923 = vmatmul.mubr.bf16.gmra.mrb[4].mxu0 %v7815_v42  ;;  %v9544_v42 = vld [vmem:[#allocation7 + $0x194] ss:$8 sps:$4 sm:$0xff]   ;;  %v7905_v59 = vcombine.low %v10726_v12, %v10793_v47 }
  0xc6   :  { %932 = vmatprep.mubr.bf16.mxu0 %v7819_v44  ;;  %998 = vmatpush1.bf16.msra.mxu0 %v9512_v43  ;;  %v9542_v43 = vld [vmem:[#allocation7 + $0x190] ss:$8 sps:$4 sm:$0xff]   ;;  %v9548_v44 = vld [vmem:[#allocation7 + $0x1a4] ss:$8 sps:$4 sm:$0xff]  }
  0xc7   :  { %999 = vmatprep.subr.bf16.mxu0 %v9519_v46  ;;  %v9545_v46 = vld [vmem:[#allocation2 + $0x20] ss:$12 sps:$4 sm:$0xff]  }
  0xca   :  { %1000 = vmatpush1.bf16.msra.mxu0 %v9517_v48  ;;  %v9546_v48 = vld [vmem:[#allocation7 + $0x1a0] ss:$8 sps:$4 sm:$0xff]  }
  0xcb   :  { %1001 = vmatprep.subr.bf16.mxu0 %v9522_v34  ;;  %v9549_v34 = vld [vmem:[#allocation7 + $0x1b0] ss:$8 sps:$4 sm:$0xff]  }
  0xcd   :  { %933 = vmatmul.mubr.bf16.gmra.mrb[8].mxu0 %v7818_v33 }
  0xce   :  { %942 = vmatprep.mubr.bf16.mxu0 %v7822_v57  ;;  %1002 = vmatpush1.bf16.msra.mxu0 %v9520_v55  ;;  %v277_v55 = vrot.slane %v10680_v49, 1  ;;  %v9556_v57 = vld [vmem:[#allocation7 + $0x1d0] ss:$8 sps:$4 sm:$0xff]   ;;  %v9565_v49 = vld [vmem:[#allocation7 + $0x1f4] ss:$8 sps:$4 sm:$0xff]  }
  0xcf   :  { %1003 = vmatprep.subr.bf16.mxu0 %v9527_v39  ;;  %v9558_v39 = vld [vmem:[#allocation7 + $0x1d4] ss:$8 sps:$4 sm:$0xff]  }
  0xd0   :  { %v310_v56 = vsel %vm302_vm1, %v277_v55, 0.0  ;;  %v9602_v55 = vld [vmem:[#allocation7 + $0x2a4] ss:$8 sps:$4 sm:$0xff]  }
  0xd1   :  { %v326_v33 = vpack.c.bf16 %v310_v56, %v310_v56  ;;  %v9600_v56 = vld [vmem:[#allocation7 + $0x2a0] ss:$8 sps:$4 sm:$0xff]  }
  0xd2   :  { %1004 = vmatpush1.bf16.msra.mxu0 %v9525_v58  ;;  %v9562_v58 = vld [vmem:[#allocation7 + $0x1e4] ss:$8 sps:$4 sm:$0xff]  }
  0xd3   :  { %1005 = vmatprep.subr.bf16.mxu0 %v9532_v61  ;;  %342 = vst [vmem:[#allocation2 + $0x68] sm:$0xf] %v326_v33  ;;  %v9559_v61 = vld [vmem:[#allocation2 + $0x50] ss:$12 sps:$4 sm:$0xff]   ;;  %v10161_v33 = vld [vmem:[#allocation2 + $0x54] sm:$0xff] }
  0xd5   :  { %943 = vmatmul.mubr.bf16.gmra.mrb[12].mxu0 %v7821_v1  ;;  %v9563_v1 = vld [vmem:[#allocation7 + $0x1f0] ss:$8 sps:$4 sm:$0xff]  }
  0xd6   :  { %952 = vmatprep.mubr.bf16.mxu0 %v7825_v2  ;;  %1006 = vmatpush1.bf16.msra.mxu0 %v9530_v62  ;;  %v9560_v62 = vld [vmem:[#allocation7 + $0x1e0] ss:$8 sps:$4 sm:$0xff]   ;;  %v9566_v2 = vld [vmem:[#allocation2 + $0x80] ss:$12 sps:$4 sm:$0xff]  }
  0xd7   :  { %1007 = vmatprep.subr.bf16.mxu0 %v9537_v45  ;;  %v9569_v45 = vld [vmem:[#allocation7 + $0x204] ss:$8 sps:$4 sm:$0xff]  }
  0xda   :  { %1008 = vmatpush1.bf16.msra.mxu0 %v9535_v3  ;;  %v9567_v3 = vld [vmem:[#allocation7 + $0x200] ss:$8 sps:$4 sm:$0xff]  }
  0xdb   :  { %1474 = vmatprep.subr.bf16.mxu0 %v9541_v4  ;;  %v9572_v4 = vld [vmem:[#allocation7 + $0x214] ss:$8 sps:$4 sm:$0xff]  }
  0xdd   :  { %953 = vmatmul.mubr.bf16.gmra.mrb[16].mxu0 %v7824_v63  ;;  %v9570_v63 = vld [vmem:[#allocation7 + $0x210] ss:$8 sps:$4 sm:$0xff]  }
  0xde   :  { %962 = vmatprep.mubr.bf16.mxu0 %v7828_v7  ;;  %v9576_v7 = vld [vmem:[#allocation7 + $0x224] ss:$8 sps:$4 sm:$0xff]  }
  0xe5   :  { %963 = vmatmul.mubr.bf16.gmra.mrb[20].mxu0 %v7827_v0  ;;  %v9573_v0 = vld [vmem:[#allocation2 + $0x98] ss:$12 sps:$4 sm:$0xff]  }
  0xe6   :  { %972 = vmatprep.mubr.bf16.mxu0 %v7831_v14  ;;  %v9574_v14 = vld [vmem:[#allocation7 + $0x220] ss:$8 sps:$4 sm:$0xff]  }
  0xed   :  { %973 = vmatmul.mubr.bf16.gmra.mrb[24].mxu0 %v7830_v26  ;;  %v285_v26 = vrot.slane %v10724_v8, 1  ;;  %v9593_v8 = vld [vmem:[#allocation7 + $0x274] ss:$8 sps:$4 sm:$0xff]  }
  0xee   :  { %982 = vmatprep.mubr.bf16.mxu0 %v7834_v27 }
  0xef   :  { %v318_v27 = vsel %vm302_vm1, %v285_v26, 0.0  ;;  %v9657_v26 = vld [vmem:[#allocation7 + $0x3b0] ss:$8 sps:$4 sm:$0xff]  }
  0xf5   :  { %983 = vmatmul.mubr.bf16.gmra.mrb[28].mxu0 %v7833_v28  ;;  %v9581_v28 = vld [vmem:[#allocation7 + $0x240] ss:$8 sps:$4 sm:$0xff]  }
  0xf6   :  { %1025 = vmatprep.mubr.bf16.mxu0 %v10742_v31 }
  0xfd   :  { %1026 = vmatmul.mubr.bf16.vlgmr.msra.gmra.mrb[0].mxu0 %v9538_v35  ;;  %v334_v35 = vpack.c.bf16 %v318_v27, %v318_v27  ;;  %v9663_v27 = vld [vmem:[#allocation7 + $0x3c4] ss:$8 sps:$4 sm:$0xff]  }
  0xfe   :  { %1475 = vmatpush1.bf16.msra.mxu0 %v9539_v37  ;;  %1035 = vmatprep.mubr.bf16.mxu0 %v10742_v31  ;;  %v9586_v37 = vld [vmem:[#allocation7 + $0x254] ss:$8 sps:$4 sm:$0xff]  }
  0xff   :  { %1476 = vmatprep.subr.bf16.mxu0 %v9544_v42  ;;  %350 = vst [vmem:[#allocation2 + $0xe0] sm:$0xf] %v334_v35  ;;  %v9584_v42 = vld [vmem:[#allocation7 + $0x250] ss:$8 sps:$4 sm:$0xff]   ;;  %v9661_v35 = vld [vmem:[#allocation7 + $0x3c0] ss:$8 sps:$4 sm:$0xff]  }
 0x102   :  { %1477 = vmatpush1.bf16.msra.mxu0 %v9542_v43  ;;  %v9590_v43 = vld [vmem:[#allocation7 + $0x264] ss:$8 sps:$4 sm:$0xff]  }
 0x103   :  { %1478 = vmatprep.subr.bf16.mxu0 %v9548_v44  ;;  %v9587_v44 = vld [vmem:[#allocation2 + $0xc8] ss:$12 sps:$4 sm:$0xff]  }
 0x105   :  { %1036 = vmatmul.mubr.bf16.gmra.mrb[4].mxu0 %v9545_v46  ;;  %v9588_v46 = vld [vmem:[#allocation7 + $0x260] ss:$8 sps:$4 sm:$0xff]  }
 0x106   :  { %1479 = vmatpush1.bf16.msra.mxu0 %v9546_v48  ;;  %1045 = vmatprep.mubr.bf16.mxu0 %v10742_v31  ;;  %v9591_v48 = vld [vmem:[#allocation7 + $0x270] ss:$8 sps:$4 sm:$0xff]  }
 0x107   :  { %1480 = vmatprep.subr.bf16.mxu0 %v9551_v20  ;;  %v9596_v20 = vld [vmem:[#allocation7 + $0x284] ss:$8 sps:$4 sm:$0xff]  }
 0x10a   :  { %1481 = vmatpush1.bf16.msra.mxu0 %v9549_v34  ;;  %v9594_v34 = vld [vmem:[#allocation7 + $0x280] ss:$8 sps:$4 sm:$0xff]  }
 0x10b   :  { %1482 = vmatprep.subr.bf16.mxu0 %v9555_v52  ;;  %v9599_v52 = vld [vmem:[#allocation7 + $0x294] ss:$8 sps:$4 sm:$0xff]  }
 0x10d   :  { %1046 = vmatmul.mubr.bf16.gmra.mrb[8].mxu0 %v9552_v54  ;;  %v9597_v54 = vld [vmem:[#allocation7 + $0x290] ss:$8 sps:$4 sm:$0xff]  }
 0x10e   :  { %1483 = vmatpush1.bf16.msra.mxu0 %v9553_v32  ;;  %1055 = vmatprep.mubr.bf16.mxu0 %v10742_v31  ;;  %v10768_v32 = vld [vmem:[#allocation2 + $0x60] sm:$0xff] }
 0x10f   :  { %1484 = vmatprep.subr.bf16.mxu0 %v9558_v39  ;;  %v7894_v39 = vcombine.high %v10161_v33, %v10768_v32 }
 0x112   :  { %1485 = vmatpush1.bf16.msra.mxu0 %v9556_v57  ;;  %v9617_v57 = vld [vmem:[#allocation7 + $0x2f4] ss:$8 sps:$4 sm:$0xff]  }
 0x113   :  { %1486 = vmatprep.subr.bf16.mxu0 %v9562_v58  ;;  %v9615_v58 = vld [vmem:[#allocation7 + $0x2f0] ss:$8 sps:$4 sm:$0xff]  }
 0x115   :  { %1056 = vmatmul.mubr.bf16.gmra.mrb[12].mxu0 %v9559_v61  ;;  %v9638_v61 = vld [vmem:[#allocation7 + $0x354] ss:$8 sps:$4 sm:$0xff]  }
 0x116   :  { %1487 = vmatpush1.bf16.msra.mxu0 %v9560_v62  ;;  %1065 = vmatprep.mubr.bf16.mxu0 %v10742_v31  ;;  %v9636_v62 = vld [vmem:[#allocation7 + $0x350] ss:$8 sps:$4 sm:$0xff]  }
 0x117   :  { %1488 = vmatprep.subr.bf16.mxu0 %v9565_v49  ;;  %v9642_v49 = vld [vmem:[#allocation7 + $0x364] ss:$8 sps:$4 sm:$0xff]  }
 0x11a   :  { %1489 = vmatpush1.bf16.msra.mxu0 %v9563_v1  ;;  %v9639_v1 = vld [vmem:[#allocation2 + $0x5c] ss:$12 sps:$4 sm:$0xff]  }
 0x11b   :  { %1490 = vmatprep.subr.bf16.mxu0 %v9569_v45  ;;  %v9640_v45 = vld [vmem:[#allocation7 + $0x360] ss:$8 sps:$4 sm:$0xff]  }
 0x11d   :  { %1066 = vmatmul.mubr.bf16.gmra.mrb[16].mxu0 %v9566_v2  ;;  %v9645_v2 = vld [vmem:[#allocation7 + $0x374] ss:$8 sps:$4 sm:$0xff]  }
 0x11e   :  { %1491 = vmatpush1.bf16.msra.mxu0 %v9567_v3  ;;  %1075 = vmatprep.mubr.bf16.mxu0 %v10742_v31  ;;  %v9643_v3 = vld [vmem:[#allocation7 + $0x370] ss:$8 sps:$4 sm:$0xff]  }
 0x11f   :  { %1492 = vmatprep.subr.bf16.mxu0 %v9572_v4  ;;  %v9649_v4 = vld [vmem:[#allocation7 + $0x384] ss:$8 sps:$4 sm:$0xff]  }
 0x122   :  { %1493 = vmatpush1.bf16.msra.mxu0 %v9570_v63  ;;  %v9646_v63 = vld [vmem:[#allocation2 + $0x8c] ss:$12 sps:$4 sm:$0xff]  }
 0x123   :  { %1494 = vmatprep.subr.bf16.mxu0 %v9576_v7  ;;  %v9647_v7 = vld [vmem:[#allocation7 + $0x380] ss:$8 sps:$4 sm:$0xff]  }
 0x125   :  { %1076 = vmatmul.mubr.bf16.gmra.mrb[20].mxu0 %v9573_v0  ;;  %v9652_v0 = vld [vmem:[#allocation7 + $0x394] ss:$8 sps:$4 sm:$0xff]  }
 0x126   :  { %1495 = vmatpush1.bf16.msra.mxu0 %v9574_v14  ;;  %1085 = vmatprep.mubr.bf16.mxu0 %v10742_v31  ;;  %v9650_v14 = vld [vmem:[#allocation7 + $0x390] ss:$8 sps:$4 sm:$0xff]  }
 0x127   :  { %1496 = vmatprep.subr.bf16.mxu0 %v9579_v18  ;;  %v9656_v18 = vld [vmem:[#allocation7 + $0x3a4] ss:$8 sps:$4 sm:$0xff]  }
 0x12a   :  { %1497 = vmatpush1.bf16.msra.mxu0 %v9577_v21  ;;  %v9653_v21 = vld [vmem:[#allocation2 + $0xa4] ss:$12 sps:$4 sm:$0xff]  }
 0x12b   :  { %1498 = vmatprep.subr.bf16.mxu0 %v9583_v22  ;;  %v9654_v22 = vld [vmem:[#allocation7 + $0x3a0] ss:$8 sps:$4 sm:$0xff]  }
 0x12d   :  { %1086 = vmatmul.mubr.bf16.gmra.mrb[24].mxu0 %v9580_v23  ;;  %v9659_v23 = vld [vmem:[#allocation7 + $0x3b4] ss:$8 sps:$4 sm:$0xff]  }
 0x12e   :  { %1499 = vmatpush1.bf16.msra.mxu0 %v9581_v28  ;;  %1095 = vmatprep.mubr.bf16.mxu0 %v10742_v31  ;;  %v9660_v28 = vld [vmem:[#allocation2 + $0xbc] ss:$12 sps:$4 sm:$0xff]  }
 0x12f   :  { %1500 = vmatprep.subr.bf16.mxu0 %v9586_v37  ;;  %v9666_v37 = vld [vmem:[#allocation7 + $0x3d4] ss:$8 sps:$4 sm:$0xff]  }
 0x132   :  { %1501 = vmatpush1.bf16.msra.mxu0 %v9584_v42  ;;  %v9664_v42 = vld [vmem:[#allocation7 + $0x3d0] ss:$8 sps:$4 sm:$0xff]  }
 0x133   :  { %1502 = vmatprep.subr.bf16.mxu0 %v9590_v43  ;;  %v9670_v43 = vld [vmem:[#allocation7 + $0x3e4] ss:$8 sps:$4 sm:$0xff]  }
 0x135   :  { %1096 = vmatmul.mubr.bf16.gmra.mrb[28].mxu0 %v9587_v44  ;;  %v9667_v44 = vld [vmem:[#allocation2 + $0xd4] ss:$12 sps:$4 sm:$0xff]  }
 0x136   :  { %1503 = vmatpush1.bf16.msra.mxu0 %v9588_v46  ;;  %1506 = vmatprep.mubr.bf16.mxu0 %v7885_v30  ;;  %v9605_v30 = vld [vmem:[#allocation7 + $0x2b4] ss:$8 sps:$4 sm:$0xff]   ;;  %v9668_v46 = vld [vmem:[#allocation7 + $0x3e0] ss:$8 sps:$4 sm:$0xff]  }
 0x137   :  { %1504 = vmatprep.subr.bf16.mxu0 %v9593_v8  ;;  %v9676_v8 = vld [vmem:[#allocation2 + $0x1c] ss:$12 sps:$4 sm:$0xff]  }
 0x13a   :  { %1505 = vmatpush1.bf16.msra.mxu0 %v9591_v48  ;;  %v9673_v48 = vld [vmem:[#allocation7 + $0x3f4] ss:$8 sps:$4 sm:$0xff]  }
 0x13b   :  { %1587 = vmatprep.subr.bf16.mxu0 %v9596_v20  ;;  %v9671_v20 = vld [vmem:[#allocation7 + $0x3f0] ss:$8 sps:$4 sm:$0xff]  }
 0x13d   :  { %1507 = vmatmul.mubr.bf16.vlgmr.msra.gmra.mrb[0].mxu0 %v7884_v29  ;;  %v9606_v29 = vld [vmem:[#allocation7 + $0x2c0] ss:$8 sps:$4 sm:$0xff]  }
 0x13e   :  { %1588 = vmatpush1.bf16.msra.mxu0 %v9594_v34  ;;  %1516 = vmatprep.mubr.bf16.mxu0 %v7888_v38  ;;  %v9611_v38 = vld [vmem:[#allocation7 + $0x2d4] ss:$8 sps:$4 sm:$0xff]   ;;  %v9679_v34 = vld [vmem:[#allocation7 + $0x404] ss:$8 sps:$4 sm:$0xff]  }
 0x13f   :  { %1589 = vmatprep.subr.bf16.mxu0 %v9599_v52  ;;  %v9674_v52 = vld [vmem:[#allocation2 + $0x18] ss:$12 sps:$4 sm:$0xff]  }
 0x142   :  { %1590 = vmatpush1.bf16.msra.mxu0 %v9597_v54  ;;  %v9677_v54 = vld [vmem:[#allocation7 + $0x400] ss:$8 sps:$4 sm:$0xff]  }
 0x143   :  { %1591 = vmatprep.subr.bf16.mxu0 %v9602_v55  ;;  %v9680_v55 = vld [vmem:[#allocation2 + $0x34] ss:$12 sps:$4 sm:$0xff]  }
 0x145   :  { %1517 = vmatmul.mubr.bf16.gmra.mrb[4].mxu0 %v7887_v40  ;;  %v9612_v40 = vld [vmem:[#allocation7 + $0x2e0] ss:$8 sps:$4 sm:$0xff]  }
 0x146   :  { %1526 = vmatprep.mubr.bf16.mxu0 %v7891_v50  ;;  %1592 = vmatpush1.bf16.msra.mxu0 %v9600_v56  ;;  %v7893_v50 = vcombine.low %v10161_v33, %v10768_v32  ;;  %v9683_v56 = vld [vmem:[#allocation7 + $0x410] ss:$8 sps:$4 sm:$0xff]  }
 0x147   :  { %1593 = vmatprep.subr.bf16.mxu0 %v9605_v30  ;;  %v9691_v30 = vld [vmem:[#allocation7 + $0x424] ss:$8 sps:$4 sm:$0xff]   ;;  %v9692_v33 = vld [vmem:[#allocation7 + $0x430] ss:$8 sps:$4 sm:$0xff]  }
 0x14a   :  { %1594 = vmatpush1.bf16.msra.mxu0 %v9603_v15  ;;  %v9682_v15 = vld [vmem:[#allocation2 + $0x30] ss:$12 sps:$4 sm:$0xff]  }
 0x14b   :  { %1595 = vmatprep.subr.bf16.mxu0 %v9608_v24  ;;  %v9686_v24 = vld [vmem:[#allocation2 + $0x4c] ss:$12 sps:$4 sm:$0xff]  }
 0x14d   :  { %1527 = vmatmul.mubr.bf16.gmra.mrb[8].mxu0 %v7890_v53  ;;  %v7906_v53 = vcombine.high %v10726_v12, %v10793_v47  ;;  %v9635_v12 = vld [vmem:[#allocation7 + $0x344] ss:$8 sps:$4 sm:$0xff]  }
 0x14e   :  { %1536 = vmatprep.mubr.bf16.mxu0 %v7894_v39  ;;  %1596 = vmatpush1.bf16.msra.mxu0 %v9606_v29  ;;  %v9689_v29 = vld [vmem:[#allocation7 + $0x420] ss:$8 sps:$4 sm:$0xff]   ;;  %v9700_v39 = vld [vmem:[#allocation7 + $0x444] ss:$8 sps:$4 sm:$0xff]  }
 0x14f   :  { %1597 = vmatprep.subr.bf16.mxu0 %v9611_v38  ;;  %v9694_v38 = vld [vmem:[#allocation7 + $0x434] ss:$8 sps:$4 sm:$0xff]  }
 0x152   :  { %1598 = vmatpush1.bf16.msra.mxu0 %v9609_v25  ;;  %v9688_v25 = vld [vmem:[#allocation2 + $0x48] ss:$12 sps:$4 sm:$0xff]  }
 0x153   :  { %1599 = vmatprep.subr.bf16.mxu0 %v9614_v36  ;;  %v10810_v36 = vld [vmem:[#allocation2] sm:$0xff] }
 0x155   :  { %1537 = vmatmul.mubr.bf16.gmra.mrb[12].mxu0 %v7893_v50  ;;  %v9698_v50 = vld [vmem:[#allocation7 + $0x440] ss:$8 sps:$4 sm:$0xff]  }
 0x156   :  { %1546 = vmatprep.mubr.bf16.mxu0 %v7897_v5  ;;  %1600 = vmatpush1.bf16.msra.mxu0 %v9612_v40  ;;  %v9624_v5 = vld [vmem:[#allocation7 + $0x314] ss:$8 sps:$4 sm:$0xff]   ;;  %v7966_v40 = vcombine.high %v10768_v32, %v10810_v36 }
 0x157   :  { %1601 = vmatprep.subr.bf16.mxu0 %v9617_v57  ;;  %v9706_v57 = vld [vmem:[#allocation7 + $0x454] ss:$8 sps:$4 sm:$0xff]  }
 0x15a   :  { %1602 = vmatpush1.bf16.msra.mxu0 %v9615_v58  ;;  %v9704_v58 = vld [vmem:[#allocation7 + $0x450] ss:$8 sps:$4 sm:$0xff]  }
 0x15b   :  { %2150 = vmatprep.subr.bf16.mxu0 %v9621_v41  ;;  %v9712_v41 = vld [vmem:[#allocation7 + $0x464] ss:$8 sps:$4 sm:$0xff]  }
 0x15d   :  { %1547 = vmatmul.mubr.bf16.gmra.mrb[16].mxu0 %v7896_v6  ;;  %v9622_v6 = vld [vmem:[#allocation7 + $0x310] ss:$8 sps:$4 sm:$0xff]  }
 0x15e   :  { %1556 = vmatprep.mubr.bf16.mxu0 %v7900_v11  ;;  %v9625_v11 = vld [vmem:[#allocation2 + $0x2c] ss:$12 sps:$4 sm:$0xff]  }
 0x165   :  { %1557 = vmatmul.mubr.bf16.gmra.mrb[20].mxu0 %v7899_v13  ;;  %v9631_v13 = vld [vmem:[#allocation7 + $0x334] ss:$8 sps:$4 sm:$0xff]  }
 0x166   :  { %1566 = vmatprep.mubr.bf16.mxu0 %v7903_v17  ;;  %v9632_v17 = vld [vmem:[#allocation2 + $0x44] ss:$12 sps:$4 sm:$0xff]  }
 0x16d   :  { %1567 = vmatmul.mubr.bf16.gmra.mrb[24].mxu0 %v7902_v19  ;;  %v9633_v19 = vld [vmem:[#allocation7 + $0x340] ss:$8 sps:$4 sm:$0xff]  }
 0x16e   :  { %1576 = vmatprep.mubr.bf16.mxu0 %v7906_v53  ;;  %v7965_v53 = vcombine.low %v10768_v32, %v10810_v36  ;;  %v9709_v32 = vld [vmem:[#allocation2 + $0xc0] ss:$12 sps:$4 sm:$0xff]  }
 0x175   :  { %1577 = vmatmul.mubr.bf16.gmra.mrb[28].mxu0 %v7905_v59  ;;  %v9695_v59 = vld [vmem:[#allocation2 + $0x94] ss:$12 sps:$4 sm:$0xff]  }
 0x176   :  { %1619 = vmatprep.mubr.bf16.mxu0 %v10742_v31 }
 0x17d   :  { %1620 = vmatmul.mubr.bf16.vlgmr.msra.gmra.mrb[0].mxu0 %v9618_v51  ;;  %v9710_v51 = vld [vmem:[#allocation7 + $0x460] ss:$8 sps:$4 sm:$0xff]  }
 0x17e   :  { %2151 = vmatpush1.bf16.msra.mxu0 %v9619_v60  ;;  %1629 = vmatprep.mubr.bf16.mxu0 %v10742_v31  ;;  %v9715_v60 = vld [vmem:[#allocation7 + $0x474] ss:$8 sps:$4 sm:$0xff]  }
 0x17f   :  { %2152 = vmatprep.subr.bf16.mxu0 %v9624_v5  ;;  %v9713_v5 = vld [vmem:[#allocation7 + $0x470] ss:$8 sps:$4 sm:$0xff]  }
 0x182   :  { %2153 = vmatpush1.bf16.msra.mxu0 %v9622_v6  ;;  %v9697_v6 = vld [vmem:[#allocation2 + $0x90] ss:$12 sps:$4 sm:$0xff]  }
 0x183   :  { %2154 = vmatprep.subr.bf16.mxu0 %v9628_v9  ;;  %v9701_v9 = vld [vmem:[#allocation2 + $0xac] ss:$12 sps:$4 sm:$0xff]  }
 0x185   :  { %1630 = vmatmul.mubr.bf16.gmra.mrb[4].mxu0 %v9625_v11  ;;  %v9703_v11 = vld [vmem:[#allocation2 + $0xa8] ss:$12 sps:$4 sm:$0xff]  }
 0x186   :  { %2155 = vmatpush1.bf16.msra.mxu0 %v9626_v10  ;;  %1639 = vmatprep.mubr.bf16.mxu0 %v10742_v31  ;;  %v9707_v10 = vld [vmem:[#allocation2 + $0xc4] ss:$12 sps:$4 sm:$0xff]  }
 0x187   :  { %2156 = vmatprep.subr.bf16.mxu0 %v9631_v13  ;;  %v7978_v13 = vcombine.high %v10793_v47, %v10810_v36 }
 0x18a   :  { %2157 = vmatpush1.bf16.msra.mxu0 %v9629_v16  ;;  %v7977_v16 = vcombine.low %v10793_v47, %v10810_v36  ;;  %v9720_v47 = vld [vmem:[#allocation2 + $0x98] ss:$12 sps:$4 sm:$0xff]  }
 0x18b   :  { %2158 = vmatprep.subr.bf16.mxu0 %v9635_v12  ;;  %v9716_v12 = vld [vmem:[#allocation2 + $0x20] ss:$12 sps:$4 sm:$0xff]  }
 0x18d   :  { %1640 = vmatmul.mubr.bf16.gmra.mrb[8].mxu0 %v9632_v17  ;;  %v9717_v17 = vld [vmem:[#allocation2 + $0x38] ss:$12 sps:$4 sm:$0xff]  }
 0x18e   :  { %2159 = vmatpush1.bf16.msra.mxu0 %v9633_v19  ;;  %1649 = vmatprep.mubr.bf16.mxu0 %v10742_v31  ;;  %v9718_v19 = vld [vmem:[#allocation2 + $0x50] ss:$12 sps:$4 sm:$0xff]  }
 0x18f   :  { %2160 = vmatprep.subr.bf16.mxu0 %v9638_v61  ;;  %v9719_v61 = vld [vmem:[#allocation2 + $0x68] ss:$12 sps:$4 sm:$0xff]  }
 0x192   :  { %2161 = vmatpush1.bf16.msra.mxu0 %v9636_v62  ;;  %v9721_v62 = vld [vmem:[#allocation2 + $0xb0] ss:$12 sps:$4 sm:$0xff]  }
 0x193   :  { %2162 = vmatprep.subr.bf16.mxu0 %v9642_v49  ;;  %v9722_v49 = vld [vmem:[#allocation2 + $0xc8] ss:$12 sps:$4 sm:$0xff]  }
 0x195   :  { %1650 = vmatmul.mubr.bf16.gmra.mrb[12].mxu0 %v9639_v1  ;;  %v9723_v1 = vld [vmem:[#allocation2 + $0xe0] ss:$12 sps:$4 sm:$0xff]  }
 0x196   :  { %2163 = vmatpush1.bf16.msra.mxu0 %v9640_v45  ;;  %1659 = vmatprep.mubr.bf16.mxu0 %v10742_v31  ;;  %v9724_v45 = vld [vmem:[#allocation13 + $0x104] ss:$8 sps:$4 sm:$0xff]  }
 0x197   :  { %2164 = vmatprep.subr.bf16.mxu0 %v9645_v2  ;;  %v9726_v2 = vld [vmem:[#allocation13 + $0x100] ss:$8 sps:$4 sm:$0xff]   ;;  %4532 = vmatprep.subr.bf16.mxu1 %v9724_v45  ;;  %v9817_v45 = vld [vmem:[#allocation13 + $0xf0] ss:$8 sps:$4 sm:$0xff]  }
 0x198   :  { %4533 = vmatpush1.bf16.msra.mxu1 %v9726_v2  ;;  %v9822_v2 = vld [vmem:[#allocation13 + $0x204] ss:$8 sps:$4 sm:$0xff]  }
 0x19a   :  { %2165 = vmatpush1.bf16.msra.mxu0 %v9643_v3  ;;  %v9729_v3 = vld [vmem:[#allocation13 + $0x4] ss:$8 sps:$4 sm:$0xff]  }
 0x19b   :  { %2166 = vmatprep.subr.bf16.mxu0 %v9649_v4  ;;  %v9727_v4 = vld [vmem:[#allocation13] ss:$8 sps:$4 sm:$0xff]  }
 0x19d   :  { %1660 = vmatmul.mubr.bf16.gmra.mrb[16].mxu0 %v9646_v63  ;;  %v9730_v63 = vld [vmem:[#allocation13 + $0x114] ss:$8 sps:$4 sm:$0xff]  }
 0x19e   :  { %2167 = vmatpush1.bf16.msra.mxu0 %v9647_v7  ;;  %1669 = vmatprep.mubr.bf16.mxu0 %v10742_v31  ;;  %v9732_v7 = vld [vmem:[#allocation13 + $0x110] ss:$8 sps:$4 sm:$0xff]  }
 0x19f   :  { %2168 = vmatprep.subr.bf16.mxu0 %v9652_v0  ;;  %4534 = vmatprep.subr.bf16.mxu1 %v9730_v63  ;;  %v9735_v0 = vld [vmem:[#allocation13 + $0x14] ss:$8 sps:$4 sm:$0xff]   ;;  %v9825_v63 = vld [vmem:[#allocation13 + $0x804] ss:$8 sps:$4 sm:$0xff]  }
 0x1a0   :  { %4535 = vmatpush1.bf16.msra.mxu1 %v9732_v7 }
 0x1a2   :  { %2169 = vmatpush1.bf16.msra.mxu0 %v9650_v14  ;;  %v9733_v14 = vld [vmem:[#allocation13 + $0x10] ss:$8 sps:$4 sm:$0xff]  }
 0x1a3   :  { %2170 = vmatprep.subr.bf16.mxu0 %v9656_v18  ;;  %v9736_v18 = vld [vmem:[#allocation13 + $0x124] ss:$8 sps:$4 sm:$0xff]  }
 0x1a4   :  { %4536 = vmatprep.subr.bf16.mxu1 %v9736_v18 }
 0x1a5   :  { %1670 = vmatmul.mubr.bf16.gmra.mrb[20].mxu0 %v9653_v21  ;;  %v9738_v21 = vld [vmem:[#allocation13 + $0x120] ss:$8 sps:$4 sm:$0xff]  }
 0x1a6   :  { %2171 = vmatpush1.bf16.msra.mxu0 %v9654_v22  ;;  %1679 = vmatprep.mubr.bf16.mxu0 %v10742_v31  ;;  %v9741_v22 = vld [vmem:[#allocation13 + $0x24] ss:$8 sps:$4 sm:$0xff]  }
 0x1a7   :  { %2172 = vmatprep.subr.bf16.mxu0 %v9659_v23  ;;  %4537 = vmatpush1.bf16.msra.mxu1 %v9738_v21  ;;  %v9739_v23 = vld [vmem:[#allocation13 + $0x20] ss:$8 sps:$4 sm:$0xff]  }
 0x1aa   :  { %2173 = vmatpush1.bf16.msra.mxu0 %v9657_v26  ;;  %v9742_v26 = vld [vmem:[#allocation13 + $0x134] ss:$8 sps:$4 sm:$0xff]  }
 0x1ab   :  { %2174 = vmatprep.subr.bf16.mxu0 %v9663_v27  ;;  %v9744_v27 = vld [vmem:[#allocation13 + $0x130] ss:$8 sps:$4 sm:$0xff]   ;;  %4538 = vmatprep.subr.bf16.mxu1 %v9742_v26 }
 0x1ac   :  { %4539 = vmatpush1.bf16.msra.mxu1 %v9744_v27 }
 0x1ad   :  { %1680 = vmatmul.mubr.bf16.gmra.mrb[24].mxu0 %v9660_v28  ;;  %v9747_v28 = vld [vmem:[#allocation13 + $0x34] ss:$8 sps:$4 sm:$0xff]  }
 0x1ae   :  { %2175 = vmatpush1.bf16.msra.mxu0 %v9661_v35  ;;  %1689 = vmatprep.mubr.bf16.mxu0 %v10742_v31  ;;  %v9685_v31 = vld [vmem:[#allocation7 + $0x414] ss:$8 sps:$4 sm:$0xff]  }
 0x1af   :  { %2176 = vmatprep.subr.bf16.mxu0 %v9666_v37  ;;  %v9745_v35 = vld [vmem:[#allocation13 + $0x30] ss:$8 sps:$4 sm:$0xff]   ;;  %v9748_v37 = vld [vmem:[#allocation13 + $0x144] ss:$8 sps:$4 sm:$0xff]  }
 0x1b0   :  { %4540 = vmatprep.subr.bf16.mxu1 %v9748_v37 }
 0x1b2   :  { %2177 = vmatpush1.bf16.msra.mxu0 %v9664_v42  ;;  %v9750_v42 = vld [vmem:[#allocation13 + $0x140] ss:$8 sps:$4 sm:$0xff]  }
 0x1b3   :  { %2178 = vmatprep.subr.bf16.mxu0 %v9670_v43  ;;  %4541 = vmatpush1.bf16.msra.mxu1 %v9750_v42  ;;  %v9753_v43 = vld [vmem:[#allocation13 + $0x44] ss:$8 sps:$4 sm:$0xff]  }
 0x1b5   :  { %1690 = vmatmul.mubr.bf16.gmra.mrb[28].mxu0 %v9667_v44  ;;  %v9751_v44 = vld [vmem:[#allocation13 + $0x40] ss:$8 sps:$4 sm:$0xff]  }
 0x1b6   :  { %2179 = vmatpush1.bf16.msra.mxu0 %v9668_v46  ;;  %2182 = vmatprep.mubr.bf16.mxu0 %v9676_v8  ;;  %v9754_v46 = vld [vmem:[#allocation13 + $0x154] ss:$8 sps:$4 sm:$0xff]   ;;  %v9756_v8 = vld [vmem:[#allocation13 + $0x150] ss:$8 sps:$4 sm:$0xff]  }
 0x1b7   :  { %2180 = vmatprep.subr.bf16.mxu0 %v9673_v48  ;;  %4542 = vmatprep.subr.bf16.mxu1 %v9754_v46  ;;  %v9759_v48 = vld [vmem:[#allocation13 + $0x54] ss:$8 sps:$4 sm:$0xff]  }
 0x1b8   :  { %4543 = vmatpush1.bf16.msra.mxu1 %v9756_v8 }
 0x1ba   :  { %2181 = vmatpush1.bf16.msra.mxu0 %v9671_v20  ;;  %v9757_v20 = vld [vmem:[#allocation13 + $0x50] ss:$8 sps:$4 sm:$0xff]  }
 0x1bb   :  { %2263 = vmatprep.subr.bf16.mxu0 %v9679_v34  ;;  %v9760_v34 = vld [vmem:[#allocation13 + $0x164] ss:$8 sps:$4 sm:$0xff]  }
 0x1bc   :  { %4544 = vmatprep.subr.bf16.mxu1 %v9760_v34 }
 0x1bd   :  { %2183 = vmatmul.mubr.bf16.vlgmr.msra.gmra.mrb[0].mxu0 %v9674_v52  ;;  %v9762_v52 = vld [vmem:[#allocation13 + $0x160] ss:$8 sps:$4 sm:$0xff]  }
 0x1be   :  { %2264 = vmatpush1.bf16.msra.mxu0 %v9677_v54  ;;  %2192 = vmatprep.mubr.bf16.mxu0 %v9680_v55  ;;  %v9765_v54 = vld [vmem:[#allocation13 + $0x64] ss:$8 sps:$4 sm:$0xff]   ;;  %v9763_v55 = vld [vmem:[#allocation13 + $0x60] ss:$8 sps:$4 sm:$0xff]  }
 0x1bf   :  { %2265 = vmatprep.subr.bf16.mxu0 %v9685_v31  ;;  %4545 = vmatpush1.bf16.msra.mxu1 %v9762_v52  ;;  %v9766_v31 = vld [vmem:[#allocation13 + $0x174] ss:$8 sps:$4 sm:$0xff]  }
 0x1c0   :  { %4546 = vmatprep.subr.bf16.mxu1 %v9766_v31 }
 0x1c2   :  { %2266 = vmatpush1.bf16.msra.mxu0 %v9683_v56  ;;  %v9768_v56 = vld [vmem:[#allocation13 + $0x170] ss:$8 sps:$4 sm:$0xff]  }
 0x1c3   :  { %2267 = vmatprep.subr.bf16.mxu0 %v9691_v30  ;;  %4547 = vmatpush1.bf16.msra.mxu1 %v9768_v56  ;;  %v9771_v30 = vld [vmem:[#allocation13 + $0x74] ss:$8 sps:$4 sm:$0xff]  }
 0x1c5   :  { %2193 = vmatmul.mubr.bf16.gmra.mrb[4].mxu0 %v9682_v15  ;;  %v9769_v15 = vld [vmem:[#allocation13 + $0x70] ss:$8 sps:$4 sm:$0xff]  }
 0x1c6   :  { %2202 = vmatprep.mubr.bf16.mxu0 %v9686_v24  ;;  %2268 = vmatpush1.bf16.msra.mxu0 %v9689_v29  ;;  %v9772_v24 = vld [vmem:[#allocation13 + $0x184] ss:$8 sps:$4 sm:$0xff]   ;;  %v9774_v29 = vld [vmem:[#allocation13 + $0x180] ss:$8 sps:$4 sm:$0xff]  }
 0x1c7   :  { %2269 = vmatprep.subr.bf16.mxu0 %v9694_v38  ;;  %4548 = vmatprep.subr.bf16.mxu1 %v9772_v24  ;;  %v9777_v38 = vld [vmem:[#allocation13 + $0x84] ss:$8 sps:$4 sm:$0xff]  }
 0x1c8   :  { %4549 = vmatpush1.bf16.msra.mxu1 %v9774_v29 }
 0x1ca   :  { %2270 = vmatpush1.bf16.msra.mxu0 %v9692_v33  ;;  %v9775_v33 = vld [vmem:[#allocation13 + $0x80] ss:$8 sps:$4 sm:$0xff]  }
 0x1cb   :  { %2271 = vmatprep.subr.bf16.mxu0 %v9700_v39  ;;  %v9778_v39 = vld [vmem:[#allocation13 + $0x194] ss:$8 sps:$4 sm:$0xff]  }
 0x1cc   :  { %4550 = vmatprep.subr.bf16.mxu1 %v9778_v39 }
 0x1cd   :  { %2203 = vmatmul.mubr.bf16.gmra.mrb[8].mxu0 %v9688_v25  ;;  %v9780_v25 = vld [vmem:[#allocation13 + $0x190] ss:$8 sps:$4 sm:$0xff]  }
 0x1ce   :  { %2212 = vmatprep.mubr.bf16.mxu0 %v7966_v40  ;;  %2272 = vmatpush1.bf16.msra.mxu0 %v9698_v50  ;;  %v9783_v40 = vld [vmem:[#allocation13 + $0x94] ss:$8 sps:$4 sm:$0xff]   ;;  %v9781_v50 = vld [vmem:[#allocation13 + $0x90] ss:$8 sps:$4 sm:$0xff]  }
 0x1cf   :  { %2273 = vmatprep.subr.bf16.mxu0 %v9706_v57  ;;  %4551 = vmatpush1.bf16.msra.mxu1 %v9780_v25  ;;  %v9784_v57 = vld [vmem:[#allocation13 + $0x1a4] ss:$8 sps:$4 sm:$0xff]  }
 0x1d0   :  { %4552 = vmatprep.subr.bf16.mxu1 %v9784_v57 }
 0x1d2   :  { %2274 = vmatpush1.bf16.msra.mxu0 %v9704_v58  ;;  %v9786_v58 = vld [vmem:[#allocation13 + $0x1a0] ss:$8 sps:$4 sm:$0xff]  }
 0x1d3   :  { %2275 = vmatprep.subr.bf16.mxu0 %v9712_v41  ;;  %4553 = vmatpush1.bf16.msra.mxu1 %v9786_v58  ;;  %v9789_v41 = vld [vmem:[#allocation13 + $0xa4] ss:$8 sps:$4 sm:$0xff]  }
 0x1d5   :  { %2213 = vmatmul.mubr.bf16.gmra.mrb[12].mxu0 %v7965_v53  ;;  %v9787_v53 = vld [vmem:[#allocation13 + $0xa0] ss:$8 sps:$4 sm:$0xff]  }
 0x1d6   :  { %2222 = vmatprep.mubr.bf16.mxu0 %v9695_v59  ;;  %2276 = vmatpush1.bf16.msra.mxu0 %v9710_v51  ;;  %v9790_v59 = vld [vmem:[#allocation13 + $0x1b4] ss:$8 sps:$4 sm:$0xff]   ;;  %v9792_v51 = vld [vmem:[#allocation13 + $0x1b0] ss:$8 sps:$4 sm:$0xff]  }
 0x1d7   :  { %2277 = vmatprep.subr.bf16.mxu0 %v9715_v60  ;;  %4554 = vmatprep.subr.bf16.mxu1 %v9790_v59  ;;  %v9795_v60 = vld [vmem:[#allocation13 + $0xb4] ss:$8 sps:$4 sm:$0xff]  }
 0x1d8   :  { %4555 = vmatpush1.bf16.msra.mxu1 %v9792_v51 }
 0x1da   :  { %2278 = vmatpush1.bf16.msra.mxu0 %v9713_v5  ;;  %v9793_v5 = vld [vmem:[#allocation13 + $0xb0] ss:$8 sps:$4 sm:$0xff]  }
 0x1db   :  { %4419 = vmatprep.subr.bf16.mxu0 %v9729_v3  ;;  %v2410_v3 = vlaneseq }
 0x1dd   :  { %2223 = vmatmul.mubr.bf16.gmra.mrb[16].mxu0 %v9697_v6  ;;  %v9796_v6 = vld [vmem:[#allocation13 + $0x1c4] ss:$8 sps:$4 sm:$0xff]  }
 0x1de   :  { %2232 = vmatprep.mubr.bf16.mxu0 %v9701_v9  ;;  %v9798_v9 = vld [vmem:[#allocation13 + $0x1c0] ss:$8 sps:$4 sm:$0xff]   ;;  %4556 = vmatprep.subr.bf16.mxu1 %v9796_v6 }
 0x1df   :  { %4557 = vmatpush1.bf16.msra.mxu1 %v9798_v9 }
 0x1e5   :  { %2233 = vmatmul.mubr.bf16.gmra.mrb[20].mxu0 %v9703_v11  ;;  %v9801_v11 = vld [vmem:[#allocation13 + $0xc4] ss:$8 sps:$4 sm:$0xff]  }
 0x1e6   :  { %2242 = vmatprep.mubr.bf16.mxu0 %v9707_v10  ;;  %v9799_v10 = vld [vmem:[#allocation13 + $0xc0] ss:$8 sps:$4 sm:$0xff]  }
 0x1ed   :  { %2243 = vmatmul.mubr.bf16.gmra.mrb[24].mxu0 %v9709_v32  ;;  %v9802_v32 = vld [vmem:[#allocation13 + $0x1d4] ss:$8 sps:$4 sm:$0xff]  }
 0x1ee   :  { %2252 = vmatprep.mubr.bf16.mxu0 %v7978_v13  ;;  %v9804_v13 = vld [vmem:[#allocation13 + $0x1d0] ss:$8 sps:$4 sm:$0xff]   ;;  %4558 = vmatprep.subr.bf16.mxu1 %v9802_v32 }
 0x1ef   :  { %4559 = vmatpush1.bf16.msra.mxu1 %v9804_v13 }
 0x1f5   :  { %2253 = vmatmul.mubr.bf16.gmra.mrb[28].mxu0 %v7977_v16  ;;  %v9807_v16 = vld [vmem:[#allocation13 + $0xd4] ss:$8 sps:$4 sm:$0xff]  }
 0x1f6   :  { %2295 = vmatprep.mubr.bf16.mxu0 %v10810_v36 }
 0x1fd   :  { %2296 = vmatmul.mubr.bf16.vlgmr.msra.gmra.mrb[0].mxu0 %v9716_v12  ;;  %v9805_v12 = vld [vmem:[#allocation13 + $0xd0] ss:$8 sps:$4 sm:$0xff]  }
 0x1fe   :  { %2305 = vmatprep.mubr.bf16.mxu0 %v10810_v36  ;;  %4420 = vmatpush1.bf16.msra.mxu0 %v9727_v4 }
 0x1ff   :  { %4421 = vmatprep.subr.bf16.mxu0 %v9735_v0 }
 0x202   :  { %4422 = vmatpush1.bf16.msra.mxu0 %v9733_v14  ;;  %v10828_v14 = vshrl.u32 %v2410_v3, 7 }
 0x203   :  { %4423 = vmatprep.subr.bf16.mxu0 %v9741_v22  ;;  %v2408_v22 = vld [vmem:[#allocation9] sm:$0x3] }
 0x204   :  { %12528 = vst [vmem:[#allocation22_spill] sm:$0xff] %v10828_v14  ;;  %v10831_v21 = vsub.s32 0, %v10828_v14 }
 0x205   :  { %2306 = vmatmul.mubr.bf16.gmra.mrb[4].mxu0 %v9717_v17  ;;  %v9808_v17 = vld [vmem:[#allocation13 + $0x1e4] ss:$8 sps:$4 sm:$0xff]  }
 0x206   :  { %2315 = vmatprep.mubr.bf16.mxu0 %v10810_v36  ;;  %4424 = vmatpush1.bf16.msra.mxu0 %v9739_v23  ;;  %12529 = vst [vmem:[#allocation23_spill] sm:$0xff] %v10831_v21  ;;  %v10834_v23 = vsub.s32 1, %v10828_v14 }
 0x207   :  { %4425 = vmatprep.subr.bf16.mxu0 %v9747_v28  ;;  %4560 = vmatprep.subr.bf16.mxu1 %v9808_v17 }
 0x208   :  { %12530 = vst [vmem:[#allocation24_spill] sm:$0xff] %v10834_v23  ;;  %v10840_v42 = vrot.slane %v2408_v22, %v10834_v23 }
 0x20a   :  { %4426 = vmatpush1.bf16.msra.mxu0 %v9745_v35  ;;  %v10837_v35 = vrot.slane %v2408_v22, %v10831_v21 }
 0x20b   :  { %4427 = vmatprep.subr.bf16.mxu0 %v9753_v43 }
 0x20d   :  { %2316 = vmatmul.mubr.bf16.gmra.mrb[8].mxu0 %v9718_v19  ;;  %v9810_v19 = vld [vmem:[#allocation13 + $0x1e0] ss:$8 sps:$4 sm:$0xff]  }
 0x20e   :  { %2325 = vmatprep.mubr.bf16.mxu0 %v10810_v36  ;;  %4428 = vmatpush1.bf16.msra.mxu0 %v9751_v44 }
 0x20f   :  { %4429 = vmatprep.subr.bf16.mxu0 %v9759_v48  ;;  %4561 = vmatpush1.bf16.msra.mxu1 %v9810_v19 }
 0x212   :  { %4430 = vmatpush1.bf16.msra.mxu0 %v9757_v20 }
 0x213   :  { %4431 = vmatprep.subr.bf16.mxu0 %v9765_v54 }
 0x215   :  { %2326 = vmatmul.mubr.bf16.gmra.mrb[12].mxu0 %v9719_v61  ;;  %v9811_v61 = vld [vmem:[#allocation13 + $0xe0] ss:$8 sps:$4 sm:$0xff]  }
 0x216   :  { %2335 = vmatprep.mubr.bf16.mxu0 %v10810_v36  ;;  %4432 = vmatpush1.bf16.msra.mxu0 %v9763_v55 }
 0x217   :  { %4433 = vmatprep.subr.bf16.mxu0 %v9771_v30 }
 0x21a   :  { %4434 = vmatpush1.bf16.msra.mxu0 %v9769_v15 }
 0x21b   :  { %4435 = vmatprep.subr.bf16.mxu0 %v9777_v38 }
 0x21d   :  { %2336 = vmatmul.mubr.bf16.gmra.mrb[16].mxu0 %v9720_v47  ;;  %v9813_v47 = vld [vmem:[#allocation13 + $0xe4] ss:$8 sps:$4 sm:$0xff]  }
 0x21e   :  { %2345 = vmatprep.mubr.bf16.mxu0 %v10810_v36  ;;  %4436 = vmatpush1.bf16.msra.mxu0 %v9775_v33 }
 0x21f   :  { %4437 = vmatprep.subr.bf16.mxu0 %v9783_v40 }
 0x222   :  { %4438 = vmatpush1.bf16.msra.mxu0 %v9781_v50 }
 0x223   :  { %4439 = vmatprep.subr.bf16.mxu0 %v9789_v41 }
 0x225   :  { %2346 = vmatmul.mubr.bf16.gmra.mrb[20].mxu0 %v9721_v62  ;;  %v9814_v62 = vld [vmem:[#allocation13 + $0x1f4] ss:$8 sps:$4 sm:$0xff]  }
 0x226   :  { %2355 = vmatprep.mubr.bf16.mxu0 %v10810_v36  ;;  %4440 = vmatpush1.bf16.msra.mxu0 %v9787_v53 }
 0x227   :  { %4441 = vmatprep.subr.bf16.mxu0 %v9795_v60  ;;  %4562 = vmatprep.subr.bf16.mxu1 %v9814_v62 }
 0x22a   :  { %4442 = vmatpush1.bf16.msra.mxu0 %v9793_v5 }
 0x22b   :  { %4443 = vmatprep.subr.bf16.mxu0 %v9801_v11 }
 0x22d   :  { %2356 = vmatmul.mubr.bf16.gmra.mrb[24].mxu0 %v9722_v49  ;;  %v9816_v49 = vld [vmem:[#allocation13 + $0x1f0] ss:$8 sps:$4 sm:$0xff]  }
 0x22e   :  { %2365 = vmatprep.mubr.bf16.mxu0 %v10810_v36  ;;  %4444 = vmatpush1.bf16.msra.mxu0 %v9799_v10 }
 0x22f   :  { %4445 = vmatprep.subr.bf16.mxu0 %v9807_v16  ;;  %4563 = vmatpush1.bf16.msra.mxu1 %v9816_v49 }
 0x230   :  { %4645 = vmatprep.subr.bf16.mxu1 %v9822_v2 }
 0x232   :  { %4446 = vmatpush1.bf16.msra.mxu0 %v9805_v12 }
 0x233   :  { %4447 = vmatprep.subr.bf16.mxu0 %v9813_v47 }
 0x235   :  { %2366 = vmatmul.mubr.bf16.gmra.mrb[28].mxu0 %v9723_v1  ;;  %v9819_v1 = vld [vmem:[#allocation13 + $0xf4] ss:$8 sps:$4 sm:$0xff]  }
 0x236   :  { %4448 = vmatpush1.bf16.msra.mxu0 %v9811_v61 }
 0x237   :  { %4449 = vmatprep.subr.bf16.mxu0 %v9819_v1 }
 0x23a   :  { %4450 = vmatpush1.bf16.msra.mxu0 %v9817_v45 }
 0x23b   :  { %6909 = vmatprep.subr.bf16.mxu0 %v9825_v63 }
 0x2d0   :  { %v2297_v4 = vpop.f32.mrb[0].mxu0 }
 0x2d1   :  { %v2299_v7 = vpop.f32.mrb[1].mxu0  ;;  %v10849_v46 = vadd.f32 %v10837_v35, %v2297_v4 }
 0x2d2   :  { %v2301_v0 = vpop.f32.mrb[2].mxu0  ;;  %v10855_v48 = vadd.f32 %v10840_v42, %v2299_v7 }
 0x2d3   :  { %v2303_v18 = vpop.f32.mrb[3].mxu0  ;;  %v10843_v43 = vadd.f32 %v10837_v35, %v2301_v0  ;;  %v2496_v56 = vmul.f32 %v10849_v46, %v10849_v46 }
 0x2d4   :  { %v10846_v44 = vadd.f32 %v10840_v42, %v2303_v18  ;;  %v2497_v38 = vmul.f32 %v10855_v48, %v10855_v48 }
 0x2d5   :  { %v2498_v52 = vmul.f32 %v10843_v43, %v10843_v43  ;;  %v2452_v30 = vadd.f32 %v10843_v43, %v10849_v46 }
 0x2d6   :  { %v2499_v55 = vmul.f32 %v10846_v44, %v10846_v44  ;;  %v2473_v33 = vadd.f32 %v10846_v44, %v10855_v48 }
 0x2d7   :  { %v2528_v40 = vadd.f32 %v2498_v52, %v2496_v56 }
 0x2d8   :  { %v2307_v26 = vpop.f32.mrb[4].mxu0  ;;  %v2549_v58 = vadd.f32 %v2499_v55, %v2497_v38 }
 0x2d9   :  { %v2309_v27 = vpop.f32.mrb[5].mxu0  ;;  %v10852_v8 = vadd.f32 %v10837_v35, %v2307_v26 }
 0x2da   :  { %v2311_v28 = vpop.f32.mrb[6].mxu0  ;;  %v10858_v20 = vadd.f32 %v10840_v42, %v2309_v27 }
 0x2db   :  { %v2313_v37 = vpop.f32.mrb[7].mxu0  ;;  %v2500_v15 = vmul.f32 %v10852_v8, %v10852_v8  ;;  %v10871_v24 = vadd.f32 %v10837_v35, %v2311_v28  ;;  %v2453_v50 = vadd.f32 %v2452_v30, %v10852_v8 }
 0x2dc   :  { %v2501_v39 = vmul.f32 %v10858_v20, %v10858_v20  ;;  %v10880_v25 = vadd.f32 %v10840_v42, %v2313_v37  ;;  %v2474_v41 = vadd.f32 %v2473_v33, %v10858_v20 }
 0x2dd   :  { %v2529_v59 = vadd.f32 %v2528_v40, %v2500_v15  ;;  %v2502_v51 = vmul.f32 %v10871_v24, %v10871_v24  ;;  %v2454_v9 = vadd.f32 %v2453_v50, %v10871_v24 }
 0x2de   :  { %v2550_v60 = vadd.f32 %v2549_v58, %v2501_v39  ;;  %v2503_v5 = vmul.f32 %v10880_v25, %v10880_v25  ;;  %v2475_v13 = vadd.f32 %v2474_v41, %v10880_v25 }
 0x2df   :  { %v2530_v19 = vadd.f32 %v2529_v59, %v2502_v51 }
 0x2e0   :  { %v2317_v34 = vpop.f32.mrb[8].mxu0  ;;  %v2551_v49 = vadd.f32 %v2550_v60, %v2503_v5 }
 0x2e1   :  { %v2319_v54 = vpop.f32.mrb[9].mxu0  ;;  %v10884_v57 = vadd.f32 %v10837_v35, %v2317_v34 }
 0x2e2   :  { %v2321_v31 = vpop.f32.mrb[10].mxu0  ;;  %v10888_v53 = vadd.f32 %v10840_v42, %v2319_v54 }
 0x2e3   :  { %v2323_v29 = vpop.f32.mrb[11].mxu0  ;;  %v2504_v11 = vmul.f32 %v10884_v57, %v10884_v57  ;;  %v10898_v10 = vadd.f32 %v10837_v35, %v2321_v31  ;;  %v2455_v61 = vadd.f32 %v2454_v9, %v10884_v57 }
 0x2e4   :  { %v2505_v16 = vmul.f32 %v10888_v53, %v10888_v53  ;;  %v10904_v12 = vadd.f32 %v10840_v42, %v2323_v29  ;;  %v2476_v1 = vadd.f32 %v2475_v13, %v10888_v53 }
 0x2e5   :  { %v2531_v2 = vadd.f32 %v2530_v19, %v2504_v11  ;;  %v2506_v3 = vmul.f32 %v10898_v10, %v10898_v10  ;;  %v2456_v7 = vadd.f32 %v2455_v61, %v10898_v10 }
 0x2e6   :  { %v2552_v4 = vadd.f32 %v2551_v49, %v2505_v16  ;;  %v2507_v63 = vmul.f32 %v10904_v12, %v10904_v12  ;;  %v2477_v22 = vadd.f32 %v2476_v1, %v10904_v12 }
 0x2e7   :  { %v2532_v37 = vadd.f32 %v2531_v2, %v2506_v3 }
 0x2e8   :  { %v2327_v6 = vpop.f32.mrb[12].mxu0  ;;  %v2553_v55 = vadd.f32 %v2552_v4, %v2507_v63 }
 0x2e9   :  { %v2329_v32 = vpop.f32.mrb[13].mxu0  ;;  %v10908_v47 = vadd.f32 %v10837_v35, %v2327_v6 }
 0x2ea   :  { %v2331_v17 = vpop.f32.mrb[14].mxu0  ;;  %v10912_v45 = vadd.f32 %v10840_v42, %v2329_v32 }
 0x2eb   :  { %v2333_v62 = vpop.f32.mrb[15].mxu0  ;;  %v2508_v0 = vmul.f32 %v10908_v47, %v10908_v47  ;;  %v10922_v18 = vadd.f32 %v10837_v35, %v2331_v17  ;;  %v2457_v34 = vadd.f32 %v2456_v7, %v10908_v47 }
 0x2ec   :  { %v2509_v26 = vmul.f32 %v10912_v45, %v10912_v45  ;;  %v10928_v27 = vadd.f32 %v10840_v42, %v2333_v62  ;;  %v2478_v31 = vadd.f32 %v2477_v22, %v10912_v45 }
 0x2ed   :  { %v2533_v15 = vadd.f32 %v2532_v37, %v2508_v0  ;;  %v2510_v29 = vmul.f32 %v10922_v18, %v10922_v18  ;;  %v2458_v40 = vadd.f32 %v2457_v34, %v10922_v18 }
 0x2ee   :  { %v2554_v33 = vadd.f32 %v2553_v55, %v2509_v26  ;;  %v2511_v39 = vmul.f32 %v10928_v27, %v10928_v27  ;;  %v2479_v41 = vadd.f32 %v2478_v31, %v10928_v27 }
 0x2ef   :  { %v2534_v60 = vadd.f32 %v2533_v15, %v2510_v29 }
 0x2f0   :  { %v2337_v28 = vpop.f32.mrb[16].mxu0  ;;  %v2555_v6 = vadd.f32 %v2554_v33, %v2511_v39 }
 0x2f1   :  { %v10932_v52 = vadd.f32 %v10837_v35, %v2337_v28  ;;  %v2339_v54 = vpop.f32.mrb[17].mxu0 }
 0x2f2   :  { %v10936_v56 = vadd.f32 %v10840_v42, %v2339_v54  ;;  %v2341_v30 = vpop.f32.mrb[18].mxu0 }
 0x2f3   :  { %v2343_v38 = vpop.f32.mrb[19].mxu0  ;;  %v2512_v50 = vmul.f32 %v10932_v52, %v10932_v52  ;;  %v10946_v58 = vadd.f32 %v10837_v35, %v2341_v30  ;;  %v2459_v5 = vadd.f32 %v2458_v40, %v10932_v52 }
 0x2f4   :  { %v2513_v59 = vmul.f32 %v10936_v56, %v10936_v56  ;;  %v10952_v51 = vadd.f32 %v10840_v42, %v2343_v38  ;;  %v2480_v9 = vadd.f32 %v2479_v41, %v10936_v56 }
 0x2f5   :  { %v2535_v32 = vadd.f32 %v2534_v60, %v2512_v50  ;;  %v2514_v13 = vmul.f32 %v10946_v58, %v10946_v58  ;;  %v2460_v1 = vadd.f32 %v2459_v5, %v10946_v58 }
 0x2f6   :  { %v2556_v19 = vadd.f32 %v2555_v6, %v2513_v59  ;;  %v2515_v61 = vmul.f32 %v10952_v51, %v10952_v51  ;;  %v2481_v63 = vadd.f32 %v2480_v9, %v10952_v51 }
 0x2f7   :  { %v2536_v22 = vadd.f32 %v2535_v32, %v2514_v13 }
 0x2f8   :  { %v2347_v11 = vpop.f32.mrb[20].mxu0  ;;  %v2557_v28 = vadd.f32 %v2556_v19, %v2515_v61 }
 0x2f9   :  { %v10959_v16 = vadd.f32 %v10837_v35, %v2347_v11  ;;  %v2349_v17 = vpop.f32.mrb[21].mxu0 }
 0x2fa   :  { %v10964_v62 = vadd.f32 %v10840_v42, %v2349_v17  ;;  %v2351_v49 = vpop.f32.mrb[22].mxu0 }
 0x2fb   :  { %v2516_v2 = vmul.f32 %v10959_v16, %v10959_v16  ;;  %v10970_v3 = vadd.f32 %v10837_v35, %v2351_v49  ;;  %v2353_v4 = vpop.f32.mrb[23].mxu0  ;;  %v2461_v26 = vadd.f32 %v2460_v1, %v10959_v16 }
 0x2fc   :  { %v2517_v7 = vmul.f32 %v10964_v62, %v10964_v62  ;;  %v10976_v0 = vadd.f32 %v10840_v42, %v2353_v4  ;;  %v2482_v37 = vadd.f32 %v2481_v63, %v10964_v62 }
 0x2fd   :  { %v2537_v34 = vadd.f32 %v2536_v22, %v2516_v2  ;;  %v2518_v54 = vmul.f32 %v10970_v3, %v10970_v3  ;;  %v2462_v15 = vadd.f32 %v2461_v26, %v10970_v3 }
 0x2fe   :  { %v2558_v55 = vadd.f32 %v2557_v28, %v2517_v7  ;;  %v2519_v31 = vmul.f32 %v10976_v0, %v10976_v0  ;;  %v2483_v33 = vadd.f32 %v2482_v37, %v10976_v0 }
 0x2ff   :  { %v2538_v50 = vadd.f32 %v2537_v34, %v2518_v54 }
 0x300   :  { %v2357_v30 = vpop.f32.mrb[24].mxu0  ;;  %v2559_v6 = vadd.f32 %v2558_v55, %v2519_v31 }
 0x301   :  { %v10986_v29 = vadd.f32 %v10837_v35, %v2357_v30  ;;  %v2359_v38 = vpop.f32.mrb[25].mxu0 }
 0x302   :  { %v10990_v39 = vadd.f32 %v10840_v42, %v2359_v38  ;;  %v2361_v40 = vpop.f32.mrb[26].mxu0 }
 0x303   :  { %v2463_v41 = vadd.f32 %v2462_v15, %v10986_v29  ;;  %v2520_v59 = vmul.f32 %v10986_v29, %v10986_v29  ;;  %v10996_v60 = vadd.f32 %v10837_v35, %v2361_v40  ;;  %v2363_v5 = vpop.f32.mrb[27].mxu0 }
 0x304   :  { %v2484_v9 = vadd.f32 %v2483_v33, %v10990_v39  ;;  %v2521_v11 = vmul.f32 %v10990_v39, %v10990_v39  ;;  %v11002_v32 = vadd.f32 %v10840_v42, %v2363_v5 }
 0x305   :  { %v2539_v13 = vadd.f32 %v2538_v50, %v2520_v59  ;;  %v2464_v17 = vadd.f32 %v2463_v41, %v10996_v60  ;;  %v2522_v19 = vmul.f32 %v10996_v60, %v10996_v60 }
 0x306   :  { %v2560_v61 = vadd.f32 %v2559_v6, %v2521_v11  ;;  %v2485_v49 = vadd.f32 %v2484_v9, %v11002_v32  ;;  %v2523_v1 = vmul.f32 %v11002_v32, %v11002_v32 }
 0x307   :  { %v2540_v2 = vadd.f32 %v2539_v13, %v2522_v19 }
 0x308   :  { %v2561_v4 = vadd.f32 %v2560_v61, %v2523_v1  ;;  %v2367_v63 = vpop.f32.mrb[28].mxu0 }
 0x309   :  { %v11011_v7 = vadd.f32 %v10837_v35, %v2367_v63  ;;  %v2369_v22 = vpop.f32.mrb[29].mxu0 }
 0x30a   :  { %v11014_v26 = vadd.f32 %v10840_v42, %v2369_v22  ;;  %v2371_v28 = vpop.f32.mrb[30].mxu0 }
 0x30b   :  { %v2465_v37 = vadd.f32 %v2464_v17, %v11011_v7  ;;  %v2524_v34 = vmul.f32 %v11011_v7, %v11011_v7  ;;  %v11020_v54 = vadd.f32 %v10837_v35, %v2371_v28  ;;  %v2373_v55 = vpop.f32.mrb[31].mxu0 }
 0x30c   :  { %v2486_v31 = vadd.f32 %v2485_v49, %v11014_v26  ;;  %v2525_v30 = vmul.f32 %v11014_v26, %v11014_v26  ;;  %v2451_v15 = vadd.f32 %v10840_v42, %v2373_v55 }
 0x30d   :  { %v2541_v38 = vadd.f32 %v2540_v2, %v2524_v34  ;;  %v2466_v33 = vadd.f32 %v2465_v37, %v11020_v54  ;;  %v2526_v40 = vmul.f32 %v11020_v54, %v11020_v54 }
 0x30e   :  { %v2562_v50 = vadd.f32 %v2561_v4, %v2525_v30  ;;  %v2487_v41 = vadd.f32 %v2486_v31, %v2451_v15  ;;  %v2527_v59 = vmul.f32 %v2451_v15, %v2451_v15 }
 0x30f   :  { %v2467_v5 = vrot.slane %v2466_v33, 4  ;;  %v2542_v35 = vadd.f32 %v2541_v38, %v2526_v40 }
 0x310   :  { %v2488_v6 = vrot.slane %v2487_v41, 4  ;;  %v2563_v9 = vadd.f32 %v2562_v50, %v2527_v59 }
 0x311   :  { %v2468_v11 = vadd.f32 %v2467_v5, %v2466_v33  ;;  %v2543_v13 = vrot.slane %v2542_v35, 4 }
 0x312   :  { %v2489_v17 = vadd.f32 %v2488_v6, %v2487_v41  ;;  %v2564_v19 = vrot.slane %v2563_v9, 4 }
 0x313   :  { %v2469_v61 = vrot.slane %v2468_v11, 2  ;;  %v2544_v49 = vadd.f32 %v2543_v13, %v2542_v35 }
 0x314   :  { %v2490_v42 = vrot.slane %v2489_v17, 2  ;;  %v2565_v1 = vadd.f32 %v2564_v19, %v2563_v9 }
 0x315   :  { %v2470_v2 = vadd.f32 %v2469_v61, %v2468_v11  ;;  %v2545_v63 = vrot.slane %v2544_v49, 2  ;;  %v10393_v61 = vmov 1966171168  }
 0x316   :  { %v2491_v22 = vadd.f32 %v2490_v42, %v2489_v17  ;;  %v2566_v28 = vrot.slane %v2565_v1, 2 }
 0x317   :  { %v2471_v37 = vrot.slane %v2470_v2, 1  ;;  %v2546_v4 = vadd.f32 %v2545_v63, %v2544_v49  ;;  %v2585_v49 = vunpack.c.l.s4 %v10393_v61 }
 0x318   :  { %v2492_v34 = vrot.slane %v2491_v22, 1  ;;  %v2567_v55 = vadd.f32 %v2566_v28, %v2565_v1 }
 0x319   :  { %v2472_v31 = vadd.f32 %v2471_v37, %v2470_v2  ;;  %v2547_v30 = vrot.slane %v2546_v4, 1  ;;  %v2586_v42 = vunpack.c.0.s8 %v2585_v49  ;;  %v2576_v37 = vld [vmem:[#allocation10] sm:$0x3] }
 0x31a   :  { %v2493_v38 = vadd.f32 %v2492_v34, %v2491_v22  ;;  %v2568_v40 = vrot.slane %v2567_v55, 1 }
 0x31b   :  { %v2494_v33 = vmul.f32 0.0078125, %v2472_v31  ;;  %v2548_v50 = vadd.f32 %v2547_v30, %v2546_v4  ;;  %v2589_v2 = vsub.s32 %v2586_v42, %v10828_v14 }
 0x31c   :  { %v2495_v41 = vmul.f32 0.0078125, %v2493_v38  ;;  %v2569_v59 = vadd.f32 %v2568_v40, %v2567_v55 }
 0x31d   :  { %v2570_v5 = vmul.f32 0.0078125, %v2548_v50  ;;  %v2572_v35 = vmul.f32 %v2494_v33, %v2494_v33 }
 0x31e   :  { %v2571_v6 = vmul.f32 0.0078125, %v2569_v59  ;;  %v2573_v9 = vmul.f32 %v2495_v41, %v2495_v41 }
 0x31f   :  { %v2574_v11 = vsub.f32 %v2570_v5, %v2572_v35 }
 0x320   :  { %v2575_v13 = vsub.f32 %v2571_v6, %v2573_v9 }
 0x321   :  { %v2577_v17 = vadd.f32 1e-05, %v2574_v11 }
 0x322   :  { %v2578_v19 = vadd.f32 1e-05, %v2575_v13 }
 0x323   :  { %10156 = vrsqrt.f32 %v2577_v17  ;;  %v2600_v17 = vld [vmem:[#allocation12] sm:$0x3] }
 0x324   :  { %10158 = vrsqrt.f32 %v2578_v19 }
 0x32d   :  { %v10157_v1 = vpop.eup %10156 }
 0x32e   :  { %v10159_v63 = vpop.eup %10158 }
 0x32f   :  { %v2583_v22 = vcombine.low %v10157_v1, %v10159_v63 }
 0x331   :  { %v2590_v28 = vrot.slane %v2583_v22, %v2589_v2 }
 0x333   :  { %v2597_v4 = vrot.slane %v2590_v28, %v2589_v2 }
 0x335   :  { %v2599_v34 = vmul.f32 %v2597_v4, %v2576_v37 }
 0x337   :  { %v2605_v55 = vrot.slane %v2599_v34, %v10831_v21  ;;  %v2609_v31 = vrot.slane %v2599_v34, %v10834_v23 }
 0x339   :  { %v2612_v30 = vmul.f32 %v2605_v55, %v2494_v33  ;;  %v2613_v38 = vmul.f32 %v2609_v31, %v2495_v41  ;;  %v2664_v40 = vmul.f32 %v2609_v31, %v2451_v15  ;;  %v2633_v59 = vmul.f32 %v2605_v55, %v10849_v46 }
 0x33a   :  { %v2634_v5 = vmul.f32 %v2609_v31, %v10855_v48  ;;  %v2636_v35 = vmul.f32 %v2609_v31, %v10846_v44  ;;  %v2638_v9 = vmul.f32 %v2609_v31, %v10858_v20  ;;  %v2635_v11 = vmul.f32 %v2605_v55, %v10843_v43 }
 0x33b   :  { %v2616_v50 = vcombine.low %v2612_v30, %v2613_v38  ;;  %v2637_v13 = vmul.f32 %v2605_v55, %v10852_v8  ;;  %v2640_v19 = vmul.f32 %v2609_v31, %v10880_v25  ;;  %v2642_v33 = vmul.f32 %v2609_v31, %v10888_v53 }
 0x33c   :  { %v11041_v15 = vmul.f32 %v2605_v55, %v10871_v24  ;;  %v11044_v46 = vmul.f32 %v2605_v55, %v10884_v57  ;;  %v11047_v44 = vmul.f32 %v2609_v31, %v10904_v12  ;;  %v11050_v20 = vmul.f32 %v2609_v31, %v10912_v45 }
 0x33d   :  { %v2623_v6 = vrot.slane %v2616_v50, %v2589_v2  ;;  %v11053_v43 = vmul.f32 %v2609_v31, %v10990_v39  ;;  %v11056_v8 = vmul.f32 %v2605_v55, %v10898_v10  ;;  %v11059_v25 = vmul.f32 %v2605_v55, %v10986_v29 }
 0x33e   :  { %v11062_v24 = vmul.f32 %v2609_v31, %v11002_v32  ;;  %v11065_v57 = vmul.f32 %v2609_v31, %v11014_v26  ;;  %v11068_v12 = vmul.f32 %v2605_v55, %v10908_v47  ;;  %v11071_v45 = vmul.f32 %v2605_v55, %v10996_v60 }
 0x33f   :  { %v2630_v48 = vrot.slane %v2623_v6, %v2589_v2  ;;  %v11074_v39 = vmul.f32 %v2605_v55, %v11011_v7  ;;  %v11077_v10 = vmul.f32 %v2605_v55, %v10932_v52  ;;  %v11080_v29 = vmul.f32 %v2609_v31, %v10936_v56 }
 0x340   :  { %v11083_v32 = vmul.f32 %v2609_v31, %v10952_v51  ;;  %v11086_v26 = vmul.f32 %v2605_v55, %v11020_v54  ;;  %v11095_v7 = vmul.f32 %v2609_v31, %v10964_v62  ;;  %v11098_v52 = vmul.f32 %v2605_v55, %v10946_v58 }
 0x341   :  { %v2632_v53 = vsub.f32 %v2600_v17, %v2630_v48  ;;  %v11101_v56 = vmul.f32 %v2605_v55, %v10959_v16  ;;  %v11104_v51 = vmul.f32 %v2609_v31, %v10976_v0  ;;  %v11107_v54 = vmul.f32 %v2605_v55, %v10970_v3 }
 0x342   :  { %v11110_v41 = vmul.f32 %v2605_v55, %v10922_v18  ;;  %v11129_v63 = vmul.f32 %v2609_v31, %v10928_v27 }
 0x343   :  { %v11089_v47 = vrot.slane %v2632_v53, %v10831_v21  ;;  %v11092_v60 = vrot.slane %v2632_v53, %v10834_v23  ;;  %v9852_v21 = vld [vmem:[#allocation13 + $0x254] ss:$8 sps:$4 sm:$0xff]  }
 0x345   :  { %v11113_v61 = vadd.f32 %v11092_v60, %v2664_v40  ;;  %v2676_v62 = vadd.f32 %v11089_v47, %v2633_v59  ;;  %v2677_v58 = vadd.f32 %v11092_v60, %v2634_v5  ;;  %v2679_v49 = vadd.f32 %v11092_v60, %v2636_v35  ;;  %v9820_v35 = vld [vmem:[#allocation13 + $0x200] ss:$8 sps:$4 sm:$0xff]  }
 0x346   :  { %v2681_v16 = vadd.f32 %v11092_v60, %v2638_v9  ;;  %v2678_v0 = vadd.f32 %v11089_v47, %v2635_v11  ;;  %v2680_v42 = vadd.f32 %v11089_v47, %v2637_v13  ;;  %v2683_v3 = vadd.f32 %v11092_v60, %v2640_v19  ;;  %v9828_v19 = vld [vmem:[#allocation13 + $0x214] ss:$8 sps:$4 sm:$0xff]  }
 0x347   :  { %v11122_v1 = vmax.f32 %v2676_v62, 0.0  ;;  %v11124_v18 = vmax.f32 %v2677_v58, 0.0  ;;  %v11126_v2 = vmax.f32 %v2679_v49, 0.0  ;;  %v2685_v4 = vadd.f32 %v11092_v60, %v2642_v33 }
 0x348   :  { %v11131_v22 = vmax.f32 %v2681_v16, 0.0  ;;  %v11133_v28 = vmax.f32 %v2678_v0, 0.0  ;;  %v11135_v37 = vmax.f32 %v2680_v42, 0.0  ;;  %v11152_v50 = vmax.f32 %v2683_v3, 0.0  ;;  %v9823_v42 = vld [vmem:[#allocation13 + $0x800] ss:$8 sps:$4 sm:$0xff]  }
 0x349   :  { %12531 = vst [vmem:[#allocation25_spill] sm:$0xff] %v11122_v1  ;;  %v8556_v34 = vpack.c.bf16 %v11124_v18, %v11122_v1  ;;  %v2785_v55 = vrot.slane %v11122_v1, 7  ;;  %v12469_v30 = vrot.slane %v11124_v18, 7  ;;  %v12468_v38 = vrot.slane %v11126_v2, 7  ;;  %v9826_v3 = vld [vmem:[#allocation13 + $0x210] ss:$8 sps:$4 sm:$0xff]  }
 0x34a   :  { %12532 = vst [vmem:[#allocation26_spill] sm:$0xff] %v11131_v22  ;;  %v11145_v27 = vpack.c.bf16 %v11131_v22, %v11126_v2  ;;  %v12465_v31 = vrot.slane %v11131_v22, 7  ;;  %v11150_v40 = vpack.c.bf16 %v11135_v37, %v11133_v28  ;;  %12535 = vst [vmem:[#allocation29_spill] sm:$0xff] %v11152_v50  ;;  %v11171_v33 = vmax.f32 %v2685_v4, 0.0 }
 0x34b   :  { %v8079_v59 = vcombine.high %v10810_v36, %v8556_v34  ;;  %v8078_v5 = vcombine.low %v10810_v36, %v8556_v34  ;;  %v2849_v6 = vsel %vm188_vm0, 0.0, %v2785_v55  ;;  %v2850_v9 = vsel %vm188_vm0, 0.0, %v12469_v30  ;;  %v9846_v30 = vld [vmem:[#allocation13 + $0x244] ss:$8 sps:$4 sm:$0xff]  }
 0x34c   :  { %12533 = vst [vmem:[#allocation27_spill] sm:$0xff] %v11145_v27  ;;  %12534 = vst [vmem:[#allocation28_spill] sm:$0xff] %v11150_v40  ;;  %v8540_v13 = vpack.c.bf16 %v2850_v9, %v2849_v6  ;;  %v11169_v17 = vpack.c.bf16 %v12465_v31, %v12468_v38  ;;  %v2787_v48 = vrot.slane %v11133_v28, 7  ;;  %v12461_v53 = vrot.slane %v11135_v37, 7  ;;  %v9834_v6 = vld [vmem:[#allocation13 + $0x224] ss:$8 sps:$4 sm:$0xff]  }
 0x34d   :  { %4564 = vmatprep.mubr.bf16.mxu1 %v8079_v59  ;;  %v12464_v62 = vrot.slane %v11152_v50, 7  ;;  %v2682_v58 = vadd.f32 %v11089_v47, %v11041_v15  ;;  %v2684_v49 = vadd.f32 %v11089_v47, %v11044_v46  ;;  %v11184_v4 = vpack.c.bf16 %v11171_v33, %v11152_v50  ;;  %v9831_v46 = vld [vmem:[#allocation13 + $0x814] ss:$8 sps:$4 sm:$0xff]   ;;  %v10165_v15 = vld [vmem:[#allocation13 + $0x804] ss:$8 sps:$4 sm:$0xff]  }
 0x34e   :  { %12538 = vst [vmem:[#allocation30_spill] sm:$0xff] %v11169_v17  ;;  %4565 = vmatmul.mubr.bf16.vlgmr.msra.gmra.mrb[0].mxu1 %v8078_v5  ;;  %v8076_v16 = vcombine.low %v10810_v36, %v8540_v13  ;;  %v8077_v0 = vcombine.high %v10810_v36, %v8540_v13  ;;  %v11186_v34 = vpack.c.bf16 %v2787_v48, %v2785_v55  ;;  %v12460_v59 = vrot.slane %v11171_v33, 7 }
 0x34f   :  { %12539 = vst [vmem:[#allocation31_spill] sm:$0xff] %v11184_v4  ;;  %4574 = vmatprep.mubr.bf16.mxu1 %v11145_v27  ;;  %4646 = vmatpush1.bf16.msra.mxu1 %v9820_v35  ;;  %v11198_v36 = vpack.c.bf16 %v12461_v53, %v2787_v48  ;;  %v11201_v5 = vmax.f32 %v2682_v58, 0.0  ;;  %v11203_v55 = vmax.f32 %v2684_v49, 0.0  ;;  %v2687_v9 = vadd.f32 %v11092_v60, %v11047_v44 }
 0x350   :  { %12540 = vst [vmem:[#allocation32_spill] sm:$0xff] %v11186_v34  ;;  %4451 = vmatprep.mubr.bf16.mxu0 %v8077_v0  ;;  %4647 = vmatprep.subr.bf16.mxu1 %v9828_v19  ;;  %v2689_v35 = vadd.f32 %v11092_v60, %v11050_v20  ;;  %v2686_v11 = vadd.f32 %v11089_v47, %v11056_v8  ;;  %v9829_v20 = vld [vmem:[#allocation13 + $0x810] ss:$8 sps:$4 sm:$0xff]   ;;  %v9832_v0 = vld [vmem:[#allocation13 + $0x220] ss:$8 sps:$4 sm:$0xff]  }
 0x351   :  { %12543 = vst [vmem:[#allocation33_spill] sm:$0xff] %v11198_v36  ;;  %12544 = vst [vmem:[#allocation34_spill] sm:$0xff] %v11203_v55  ;;  %4452 = vmatmul.mubr.bf16.vlgmr.msra.gmra.mrb[32].mxu0 %v8076_v16  ;;  %v11215_v13 = vpack.c.bf16 %v12460_v59, %v12464_v62  ;;  %v11219_v19 = vpack.c.bf16 %v11203_v55, %v11201_v5  ;;  %v12463_v48 = vrot.slane %v11201_v5, 7  ;;  %v12462_v44 = vrot.slane %v11203_v55, 7  ;;  %v9837_v59 = vld [vmem:[#allocation13 + $0x824] ss:$8 sps:$4 sm:$0xff]  }
 0x352   :  { %8628 = vmatprep.mubr.msk.bf16.mxu0 %vm11191_vm3, %v11169_v17  ;;  %6910 = vmatpush1.bf16.msra.mxu0 %v9823_v42  ;;  %v11226_v8 = vmax.f32 %v2687_v9, 0.0  ;;  %v11228_v58 = vmax.f32 %v2689_v35, 0.0  ;;  %v2688_v49 = vadd.f32 %v11089_v47, %v11068_v12  ;;  %v11232_v16 = vmax.f32 %v2686_v11, 0.0  ;;  %v9840_v12 = vld [vmem:[#allocation13 + $0x234] ss:$8 sps:$4 sm:$0xff]  }
 0x353   :  { %12545 = vst [vmem:[#allocation35_spill] sm:$0xff] %v11215_v13  ;;  %12546 = vst [vmem:[#allocation36_spill] sm:$0xff] %v11219_v19  ;;  %4648 = vmatpush1.bf16.msra.mxu1 %v9826_v3  ;;  %6911 = vmatprep.subr.bf16.mxu0 %v9831_v46  ;;  %v11238_v53 = vpack.c.bf16 %v12462_v44, %v12463_v48  ;;  %v2692_v42 = vadd.f32 %v11089_v47, %v11077_v10  ;;  %v9838_v62 = vld [vmem:[#allocation13 + $0x230] ss:$8 sps:$4 sm:$0xff]  }
 0x354   :  { %v2693_v9 = vadd.f32 %v11092_v60, %v11080_v29  ;;  %4649 = vmatprep.subr.bf16.mxu1 %v9834_v6  ;;  %v11246_v3 = vpack.c.bf16 %v11228_v58, %v11226_v8  ;;  %v12467_v46 = vrot.slane %v11226_v8, 7  ;;  %v12466_v35 = vrot.slane %v11228_v58, 7  ;;  %v9835_v6 = vld [vmem:[#allocation13 + $0x820] ss:$8 sps:$4 sm:$0xff]  }
 0x355   :  { %12547 = vst [vmem:[#allocation37_spill] sm:$0xff] %v11238_v53  ;;  %v11250_v11 = vmax.f32 %v2688_v49, 0.0  ;;  %v11252_v44 = vmax.f32 %v2692_v42, 0.0  ;;  %v12473_v10 = vrot.slane %v11232_v16, 7  ;;  %v2695_v29 = vadd.f32 %v11092_v60, %v11083_v32 }
 0x356   :  { %12548 = vst [vmem:[#allocation38_spill] sm:$0xff] %v11246_v3  ;;  %v11254_v48 = vmax.f32 %v2693_v9, 0.0  ;;  %4575 = vmatmul.mubr.bf16.gmra.mrb[4].mxu1 %v11150_v40  ;;  %6912 = vmatpush1.bf16.msra.mxu0 %v9829_v20  ;;  %v11264_v49 = vpack.c.bf16 %v12466_v35, %v12467_v46  ;;  %v2697_v32 = vadd.f32 %v11092_v60, %v11095_v7  ;;  %v9843_v20 = vld [vmem:[#allocation13 + $0x834] ss:$8 sps:$4 sm:$0xff]  }
 0x357   :  { %v11268_v42 = vpack.c.bf16 %v11250_v11, %v11232_v16  ;;  %v12472_v9 = vrot.slane %v11250_v11, 7  ;;  %4584 = vmatprep.mubr.bf16.mxu1 %v11184_v4  ;;  %4650 = vmatpush1.bf16.msra.mxu1 %v9832_v0  ;;  %v11280_v38 = vmax.f32 %v2695_v29, 0.0  ;;  %v2694_v14 = vadd.f32 %v11089_v47, %v11098_v52  ;;  %v9841_v52 = vld [vmem:[#allocation13 + $0x830] ss:$8 sps:$4 sm:$0xff]  }
 0x358   :  { %12549 = vst [vmem:[#allocation39_spill] sm:$0xff] %v11264_v49  ;;  %v11276_v31 = vpack.c.bf16 %v11254_v48, %v11252_v44  ;;  %v12474_v46 = vrot.slane %v11254_v48, 7  ;;  %6913 = vmatprep.subr.bf16.mxu0 %v9837_v59  ;;  %4651 = vmatprep.subr.bf16.mxu1 %v9840_v12  ;;  %v11288_v0 = vmax.f32 %v2697_v32, 0.0  ;;  %v2696_v35 = vadd.f32 %v11089_v47, %v11101_v56  ;;  %v9844_v32 = vld [vmem:[#allocation13 + $0x240] ss:$8 sps:$4 sm:$0xff]  }
 0x359   :  { %12550 = vst [vmem:[#allocation40_spill] sm:$0xff] %v11268_v42  ;;  %v11286_v7 = vpack.c.bf16 %v12472_v9, %v12473_v10  ;;  %8633 = vmatmul.mubr.msk.bf16.gmra.mrb[36].mxu0 %vm11191_vm3, %v11198_v36  ;;  %v12552_v59 = vrot.slane %v11252_v44, 7  ;;  %v11316_v9 = vmax.f32 %v2694_v14, 0.0  ;;  %v11324_v4 = vld [vmem:[#allocation2] sm:$0xff]  ;;  %v2703_v40 = vadd.f32 %v11092_v60, %v11062_v24 }
 0x35a   :  { %v2866_v29 = vsel %vm188_vm0, 0.0, %v12474_v46  ;;  %8638 = vmatprep.mubr.msk.bf16.mxu0 %vm11191_vm3, %v11215_v13  ;;  %6914 = vmatpush1.bf16.msra.mxu0 %v9835_v6  ;;  %v11312_v10 = vpack.c.bf16 %v11288_v0, %v11280_v38  ;;  %v12478_v46 = vrot.slane %v11288_v0, 7  ;;  %v11318_v23 = vmax.f32 %v2696_v35, 0.0  ;;  %v9847_v14 = vld [vmem:[#allocation13 + $0x840] ss:$8 sps:$4 sm:$0xff]  }
 0x35b   :  { %12551 = vst [vmem:[#allocation41_spill] sm:$0xff] %v11286_v7  ;;  %v2865_v12 = vsel %vm188_vm0, 0.0, %v12552_v59  ;;  %v12479_v59 = vrot.slane %v11280_v38, 7  ;;  %4652 = vmatpush1.bf16.msra.mxu1 %v9838_v62  ;;  %6915 = vmatprep.subr.bf16.mxu0 %v9843_v20  ;;  %v2699_v6 = vadd.f32 %v11092_v60, %v11104_v51  ;;  %v12557_v24 = vrot.slane %v11316_v9, 7 }
 0x35c   :  { %v11308_v56 = vpack.c.bf16 %v2866_v29, %v2865_v12  ;;  %12553 = vst [vmem:[#allocation42_spill] sm:$0xff] %v11312_v10  ;;  %v2701_v12 = vadd.f32 %v11092_v60, %v11053_v43  ;;  %4653 = vmatprep.subr.bf16.mxu1 %v9846_v30  ;;  %v9849_v29 = vld [vmem:[#allocation13 + $0x844] ss:$8 sps:$4 sm:$0xff]   ;;  %v2698_v43 = vadd.f32 %v11089_v47, %v11107_v54  ;;  %v11372_v27 = vmax.f32 %v2703_v40, 0.0 }
 0x35d   :  { %v11334_v35 = vpack.c.bf16 %v12478_v46, %v12479_v59  ;;  %v11340_v51 = vpack.c.bf16 %v11318_v23, %v11316_v9  ;;  %v11342_v30 = vmax.f32 %v2699_v6, 0.0  ;;  %v2700_v59 = vadd.f32 %v11089_v47, %v11059_v25  ;;  %v9850_v6 = vld [vmem:[#allocation13 + $0x250] ss:$8 sps:$4 sm:$0xff]  }
 0x35e   :  { %v11344_v20 = vmax.f32 %v2701_v12, 0.0  ;;  %4585 = vmatmul.mubr.bf16.gmra.mrb[8].mxu1 %v11219_v19  ;;  %6916 = vmatpush1.bf16.msra.mxu0 %v9841_v52  ;;  %v11351_v54 = vmax.f32 %v2698_v43, 0.0  ;;  %v9855_v12 = vld [vmem:[#allocation13 + $0x854] ss:$8 sps:$4 sm:$0xff]   ;;  %v2705_v25 = vadd.f32 %v11092_v60, %v11065_v57  ;;  %v9858_v43 = vld [vmem:[#allocation13 + $0x264] ss:$8 sps:$4 sm:$0xff]   ;;  %v2704_v40 = vadd.f32 %v11089_v47, %v11074_v39 }
 0x35f   :  { %12554 = vst [vmem:[#allocation43_spill] sm:$0xff] %v11334_v35  ;;  %12555 = vst [vmem:[#allocation44_spill] sm:$0xff] %v11340_v51  ;;  %4594 = vmatprep.mubr.bf16.mxu1 %v11246_v3  ;;  %4654 = vmatpush1.bf16.msra.mxu1 %v9844_v32  ;;  %v12558_v32 = vrot.slane %v11318_v23, 7  ;;  %v11370_v19 = vmax.f32 %v2700_v59, 0.0  ;;  %v9853_v57 = vld [vmem:[#allocation13 + $0x850] ss:$8 sps:$4 sm:$0xff]   ;;  %v2702_v59 = vadd.f32 %v11089_v47, %v11071_v45 }
 0x360   :  { %v11358_v62 = vpack.c.bf16 %v11344_v20, %v11342_v30  ;;  %v12485_v46 = vrot.slane %v11344_v20, 7  ;;  %6917 = vmatprep.subr.bf16.mxu0 %v9849_v29  ;;  %4655 = vmatprep.subr.bf16.mxu1 %v9852_v21  ;;  %v12560_v21 = vrot.slane %v11342_v30, 7  ;;  %v11384_v13 = vmax.f32 %v2705_v25, 0.0  ;;  %v9861_v45 = vld [vmem:[#allocation13 + $0x864] ss:$8 sps:$4 sm:$0xff]  }
 0x361   :  { %v11368_v3 = vpack.c.bf16 %v12558_v32, %v12557_v24  ;;  %8643 = vmatmul.mubr.msk.bf16.gmra.mrb[40].mxu0 %vm11191_vm3, %v11238_v53  ;;  %v9856_v24 = vld [vmem:[#allocation13 + $0x260] ss:$8 sps:$4 sm:$0xff]   ;;  %v11395_v32 = vpack.c.bf16 %v11370_v19, %v11351_v54  ;;  %v11405_v52 = vmax.f32 %v2702_v59, 0.0  ;;  %v9864_v53 = vld [vmem:[#allocation13 + $0x274] ss:$8 sps:$4 sm:$0xff]   ;;  %v12565_v25 = vrot.slane %v11370_v19, 7 }
 0x362   :  { %12556 = vst [vmem:[#allocation45_spill] sm:$0xff] %v11358_v62  ;;  %v11382_v29 = vpack.c.bf16 %v12485_v46, %v12560_v21  ;;  %8648 = vmatprep.mubr.msk.bf16.mxu0 %vm11191_vm3, %v11264_v49  ;;  %6918 = vmatpush1.bf16.msra.mxu0 %v9847_v14  ;;  %v3172_v46 = vrot.slane %v11133_v28, 1  ;;  %v11402_v39 = vpack.c.bf16 %v11384_v13, %v11372_v27  ;;  %v11407_v49 = vmax.f32 %v2704_v40, 0.0 }
 0x363   :  { %12559 = vst [vmem:[#allocation46_spill] sm:$0xff] %v11368_v3  ;;  %12562 = vst [vmem:[#allocation48_spill] sm:$0xff] %v11395_v32  ;;  %4656 = vmatpush1.bf16.msra.mxu1 %v9850_v6  ;;  %6919 = vmatprep.subr.bf16.mxu0 %v9855_v12  ;;  %v12564_v21 = vrot.slane %v11351_v54, 7  ;;  %v12567_v12 = vrot.slane %v11122_v1, 1  ;;  %v12568_v14 = vrot.slane %v11124_v18, 1  ;;  %v12569_v40 = vrot.slane %v11372_v27, 7 }
 0x364   :  { %12561 = vst [vmem:[#allocation47_spill] sm:$0xff] %v11382_v29  ;;  %12563 = vst [vmem:[#allocation49_spill] sm:$0xff] %v11402_v39  ;;  %4657 = vmatprep.subr.bf16.mxu1 %v9858_v43  ;;  %v12570_v43 = vrot.slane %v11384_v13, 7  ;;  %v12648_v1 = vrot.slane %v11201_v5, 1 }
 0x365   :  { %v11413_v36 = vpack.c.bf16 %v12565_v25, %v12564_v21  ;;  %v3234_v17 = vsel %vm302_vm1, %v12567_v12, 0.0  ;;  %v3235_v59 = vsel %vm302_vm1, %v12568_v14, 0.0  ;;  %v11430_v21 = vpack.c.bf16 %v11407_v49, %v11405_v52  ;;  %v9859_v14 = vld [vmem:[#allocation13 + $0x860] ss:$8 sps:$4 sm:$0xff]  }
 0x366   :  { %v11426_v34 = vpack.c.bf16 %v12570_v43, %v12569_v40  ;;  %v11432_v25 = vpack.c.bf16 %v3235_v59, %v3234_v17  ;;  %v12573_v6 = vmov %v12567_v12  ;;  %4595 = vmatmul.mubr.bf16.gmra.mrb[12].mxu1 %v11268_v42  ;;  %6920 = vmatpush1.bf16.msra.mxu0 %v9853_v57  ;;  %v12575_v12 = vrot.slane %v11135_v37, 1  ;;  %v9862_v57 = vld [vmem:[#allocation13 + $0x270] ss:$8 sps:$4 sm:$0xff]   ;;  %v9867_v59 = vld [vmem:[#allocation13 + $0x874] ss:$8 sps:$4 sm:$0xff]  }
 0x367   :  { %12566 = vst [vmem:[#allocation50_spill] sm:$0xff] %v11413_v36  ;;  %12572 = vst [vmem:[#allocation52_spill] sm:$0xff] %v11430_v21  ;;  %v11436_v36 = vpack.c.bf16 %v3172_v46, %v12573_v6  ;;  %v12577_v17 = vcombine.high %v11324_v4, %v11276_v31  ;;  %4658 = vmatpush1.bf16.msra.mxu1 %v9856_v24  ;;  %v8101_v6 = vcombine.high %v11324_v4, %v11308_v56  ;;  %v9870_v21 = vld [vmem:[#allocation13 + $0x284] ss:$8 sps:$4 sm:$0xff]  }
 0x368   :  { %12571 = vst [vmem:[#allocation51_spill] sm:$0xff] %v11426_v34  ;;  %v11441_v39 = vpack.c.bf16 %v12575_v12, %v3172_v46  ;;  %v8100_v46 = vcombine.low %v11324_v4, %v11308_v56  ;;  %v12496_v12 = vrot.slane %v11131_v22, 1  ;;  %v12498_v40 = vrot.slane %v11152_v50, 1  ;;  %6921 = vmatprep.subr.bf16.mxu0 %v9861_v45  ;;  %4659 = vmatprep.subr.bf16.mxu1 %v9864_v53  ;;  %v9876_v45 = vld [vmem:[#allocation13 + $0x294] ss:$8 sps:$4 sm:$0xff]  }
 0x369   :  { %12574 = vst [vmem:[#allocation53_spill] sm:$0xff] %v11436_v36  ;;  %4604 = vmatprep.mubr.bf16.mxu1 %v12577_v17  ;;  %v12578_v43 = vrot.slane %v11405_v52, 7  ;;  %v12579_v17 = vrot.slane %v11407_v49, 7  ;;  %v12497_v42 = vrot.slane %v11171_v33, 1  ;;  %8653 = vmatmul.mubr.msk.bf16.gmra.mrb[44].mxu0 %vm11191_vm3, %v11286_v7  ;;  %v12580_v56 = vrot.slane %v11126_v2, 1 }
 0x36a   :  { %12576 = vst [vmem:[#allocation54_spill] sm:$0xff] %v11441_v39  ;;  %4491 = vmatprep.mubr.bf16.mxu0 %v8101_v6  ;;  %6922 = vmatpush1.bf16.msra.mxu0 %v9859_v14  ;;  %v9865_v36 = vld [vmem:[#allocation13 + $0x870] ss:$8 sps:$4 sm:$0xff]   ;;  %v12582_v7 = vrot.slane %v11201_v5, 1  ;;  %v9868_v14 = vld [vmem:[#allocation13 + $0x280] ss:$8 sps:$4 sm:$0xff]  }
 0x36b   :  { %v11459_v24 = vpack.c.bf16 %v12579_v17, %v12578_v43  ;;  %v11471_v53 = vpack.c.bf16 %v12496_v12, %v12580_v56  ;;  %v11480_v39 = vpack.c.bf16 %v12497_v42, %v12498_v40  ;;  %v12583_v56 = vrot.slane %v11203_v55, 1  ;;  %4660 = vmatpush1.bf16.msra.mxu1 %v9862_v57  ;;  %6923 = vmatprep.subr.bf16.mxu0 %v9867_v59  ;;  %v9873_v6 = vld [vmem:[#allocation13 + $0x884] ss:$8 sps:$4 sm:$0xff]  }
 0x36c   :  { %v2690_v17 = vadd.f32 %v11089_v47, %v11110_v41  ;;  %v12585_v43 = vrot.slane %v11226_v8, 1  ;;  %v12586_v42 = vrot.slane %v11228_v58, 1  ;;  %4661 = vmatprep.subr.bf16.mxu1 %v9870_v21  ;;  %v12588_v41 = vrot.slane %v11232_v16, 1 }
 0x36d   :  { %12581 = vst [vmem:[#allocation55_spill] sm:$0xff] %v11480_v39  ;;  %v11486_v12 = vpack.c.bf16 %v12583_v56, %v12582_v7  ;;  %v2691_v39 = vadd.f32 %v11092_v60, %v11129_v63  ;;  %v12502_v7 = vrot.slane %v11252_v44, 1  ;;  %v12504_v56 = vrot.slane %v11254_v48, 1 }
 0x36e   :  { %v11495_v40 = vpack.c.bf16 %v12586_v42, %v12585_v43  ;;  %v12589_v57 = vrot.slane %v11250_v11, 1  ;;  %v12505_v42 = vrot.slane %v11280_v38, 1  ;;  %6924 = vmatpush1.bf16.msra.mxu0 %v9865_v36 }
 0x36f   :  { %12584 = vst [vmem:[#allocation56_spill] sm:$0xff] %v11486_v12  ;;  %v11507_v12 = vmax.f32 %v2690_v17, 0.0  ;;  %v3250_v60 = vsel %vm302_vm1, %v12502_v7, 0.0  ;;  %v3251_v63 = vsel %vm302_vm1, %v12504_v56, 0.0  ;;  %v12591_v17 = vcombine.low %v11324_v4, %v11276_v31  ;;  %4662 = vmatpush1.bf16.msra.mxu1 %v9868_v14  ;;  %v9879_v31 = vld [vmem:[#allocation13 + $0x894] ss:$8 sps:$4 sm:$0xff]   ;;  %6925 = vmatprep.subr.bf16.mxu0 %v9873_v6 }
 0x370   :  { %12587 = vst [vmem:[#allocation57_spill] sm:$0xff] %v11495_v40  ;;  %v11505_v59 = vpack.c.bf16 %v12589_v57, %v12588_v41  ;;  %v11511_v40 = vmax.f32 %v2691_v39, 0.0  ;;  %v9871_v41 = vld [vmem:[#allocation13 + $0x880] ss:$8 sps:$4 sm:$0xff]   ;;  %v9874_v57 = vld [vmem:[#allocation13 + $0x290] ss:$8 sps:$4 sm:$0xff]   ;;  %v11524_v43 = vpack.c.bf16 %v3251_v63, %v3250_v60  ;;  %4663 = vmatprep.subr.bf16.mxu1 %v9876_v45 }
 0x371   :  { %4605 = vmatmul.mubr.bf16.gmra.mrb[16].mxu1 %v12591_v17  ;;  %v12506_v39 = vrot.slane %v11507_v12, 1  ;;  %v12592_v7 = vrot.slane %v11288_v0, 1  ;;  %v12507_v56 = vrot.slane %v11318_v23, 1  ;;  %v12509_v17 = vrot.slane %v11342_v30, 1  ;;  %4492 = vmatmul.mubr.bf16.gmra.mrb[48].mxu0 %v8100_v46  ;;  %v9877_v46 = vld [vmem:[#allocation13 + $0x890] ss:$8 sps:$4 sm:$0xff]  }
 0x372   :  { %12590 = vst [vmem:[#allocation58_spill] sm:$0xff] %v11505_v59  ;;  %4614 = vmatprep.mubr.bf16.mxu1 %v11312_v10  ;;  %v11539_v63 = vmax.f32 %v11113_v61, 0.0  ;;  %v12593_v14 = vrot.slane %v11316_v9, 1  ;;  %v12594_v21 = vrot.slane %v11511_v40, 1  ;;  %v12595_v61 = vrot.slane %v11344_v20, 1  ;;  %8658 = vmatprep.mubr.msk.bf16.mxu0 %vm11191_vm3, %v11334_v35 }
 0x373   :  { %v11530_v59 = vpack.c.bf16 %v12592_v7, %v12505_v42  ;;  %v9882_v7 = vld [vmem:[#allocation13 + $0x2a4] ss:$8 sps:$4 sm:$0xff]   ;;  %v3248_v42 = vsel %vm302_vm1, %v12506_v39, 0.0  ;;  %v12511_v6 = vrot.slane %v11370_v19, 1  ;;  %6926 = vmatpush1.bf16.msra.mxu0 %v9871_v41  ;;  %4664 = vmatpush1.bf16.msra.mxu1 %v9874_v57  ;;  %v12599_v41 = vrot.slane %v11124_v18, 7 }
 0x374   :  { %v11548_v36 = vpack.c.bf16 %v12507_v56, %v12593_v14  ;;  %v3249_v60 = vsel %vm302_vm1, %v12594_v21, 0.0  ;;  %v11557_v45 = vpack.c.bf16 %v12595_v61, %v12509_v17  ;;  %6927 = vmatprep.subr.bf16.mxu0 %v9879_v31  ;;  %v9880_v61 = vld [vmem:[#allocation13 + $0x2a0] ss:$8 sps:$4 sm:$0xff]   ;;  %v12597_v17 = vrot.slane %v11351_v54, 1  ;;  %4665 = vmatprep.subr.bf16.mxu1 %v9882_v7  ;;  %v9885_v31 = vld [vmem:[#allocation13 + $0x8a4] ss:$8 sps:$4 sm:$0xff]  }
 0x375   :  { %v11564_v14 = vpack.c.bf16 %v3249_v60, %v3248_v42  ;;  %v12600_v42 = vrot.slane %v11126_v2, 7  ;;  %v12602_v21 = vrot.slane %v11131_v22, 7  ;;  %v12603_v56 = vrot.slane %v11152_v50, 7  ;;  %v9888_v35 = vld [vmem:[#allocation13 + $0x2b4] ss:$8 sps:$4 sm:$0xff]  }
 0x376   :  { %12596 = vst [vmem:[#allocation59_spill] sm:$0xff] %v11557_v45  ;;  %v11573_v39 = vpack.c.bf16 %v12511_v6, %v12597_v17  ;;  %v12605_v17 = vrot.slane %v11372_v27, 1  ;;  %v12606_v6 = vrot.slane %v11384_v13, 1  ;;  %v12613_v7 = vrot.slane %v11171_v33, 7 }
 0x377   :  { %v11579_v60 = vpack.c.bf16 %v12600_v42, %v12599_v41  ;;  %v11585_v10 = vpack.c.bf16 %v12603_v56, %v12602_v21  ;;  %v12608_v41 = vrot.slane %v11405_v52, 1  ;;  %v12609_v42 = vrot.slane %v11407_v49, 1  ;;  %6928 = vmatpush1.bf16.msra.mxu0 %v9877_v46  ;;  %4666 = vmatpush1.bf16.msra.mxu1 %v9880_v61 }
 0x378   :  { %12598 = vst [vmem:[#allocation60_spill] sm:$0xff] %v11573_v39  ;;  %v11592_v39 = vpack.c.bf16 %v12606_v6, %v12605_v17  ;;  %v12611_v56 = vrot.slane %v11135_v37, 7  ;;  %v12612_v21 = vrot.slane %v11201_v5, 7  ;;  %v12616_v6 = vrot.slane %v11203_v55, 7  ;;  %6929 = vmatprep.subr.bf16.mxu0 %v9885_v31  ;;  %4667 = vmatprep.subr.bf16.mxu1 %v9888_v35 }
 0x379   :  { %12601 = vst [vmem:[#allocation61_spill] sm:$0xff] %v11579_v60  ;;  %12604 = vst [vmem:[#allocation62_spill] sm:$0xff] %v11585_v10  ;;  %v11598_v60 = vpack.c.bf16 %v12609_v42, %v12608_v41  ;;  %v12614_v10 = vrot.slane %v11226_v8, 7  ;;  %v12617_v17 = vrot.slane %v11232_v16, 7  ;;  %v12619_v41 = vrot.slane %v11228_v58, 7  ;;  %4615 = vmatmul.mubr.bf16.gmra.mrb[20].mxu1 %v11340_v51  ;;  %8663 = vmatmul.mubr.msk.bf16.gmra.mrb[52].mxu0 %vm11191_vm3, %v11368_v3 }
 0x37a   :  { %12607 = vst [vmem:[#allocation63_spill] sm:$0xff] %v11592_v39  ;;  %v11604_v57 = vpack.c.bf16 %v12612_v21, %v12611_v56  ;;  %v12620_v42 = vrot.slane %v11511_v40, 7  ;;  %v9883_v56 = vld [vmem:[#allocation13 + $0x8a0] ss:$8 sps:$4 sm:$0xff]   ;;  %v2799_v21 = vrot.slane %v11507_v12, 7  ;;  %4624 = vmatprep.mubr.bf16.mxu1 %v11358_v62  ;;  %v12518_v61 = vrot.slane %v11539_v63, 7  ;;  %8668 = vmatprep.mubr.msk.bf16.mxu0 %vm11191_vm3, %v11382_v29 }
 0x37b   :  { %12610 = vst [vmem:[#allocation64_spill] sm:$0xff] %v11598_v60  ;;  %v11610_v45 = vpack.c.bf16 %v12614_v10, %v12613_v7  ;;  %v11616_v39 = vpack.c.bf16 %v12617_v17, %v12616_v6  ;;  %v12622_v10 = vrot.slane %v11254_v48, 7  ;;  %v12623_v7 = vrot.slane %v11280_v38, 7  ;;  %v9886_v51 = vld [vmem:[#allocation13 + $0x2b0] ss:$8 sps:$4 sm:$0xff]   ;;  %6930 = vmatpush1.bf16.msra.mxu0 %v9883_v56 }
 0x37c   :  { %v11622_v60 = vpack.c.bf16 %v12620_v42, %v12619_v41  ;;  %v12625_v6 = vrot.slane %v11252_v44, 7  ;;  %v12626_v17 = vrot.slane %v11316_v9, 7  ;;  %v12628_v41 = vrot.slane %v11288_v0, 7  ;;  %4668 = vmatpush1.bf16.msra.mxu1 %v9886_v51 }
 0x37d   :  { %12615 = vst [vmem:[#allocation65_spill] sm:$0xff] %v11610_v45  ;;  %12618 = vst [vmem:[#allocation66_spill] sm:$0xff] %v11616_v39  ;;  %v11630_v45 = vpack.c.bf16 %v12623_v7, %v12622_v10  ;;  %v12629_v42 = vrot.slane %v11342_v30, 7  ;;  %v12631_v10 = vrot.slane %v11318_v23, 7  ;;  %v12632_v7 = vrot.slane %v11351_v54, 7 }
 0x37e   :  { %12621 = vst [vmem:[#allocation67_spill] sm:$0xff] %v11622_v60  ;;  %v11636_v39 = vpack.c.bf16 %v12626_v17, %v12625_v6  ;;  %v9891_v60 = vld [vmem:[#allocation13 + $0x8b4] ss:$8 sps:$4 sm:$0xff]   ;;  %v12634_v6 = vrot.slane %v11344_v20, 7  ;;  %v12635_v17 = vrot.slane %v11372_v27, 7  ;;  %v12639_v31 = vrot.slane %v11384_v13, 7 }
 0x37f   :  { %12624 = vst [vmem:[#allocation68_spill] sm:$0xff] %v11630_v45  ;;  %v11642_v46 = vpack.c.bf16 %v12629_v42, %v12628_v41  ;;  %v11649_v45 = vpack.c.bf16 %v12632_v7, %v12631_v10  ;;  %v12636_v41 = vrot.slane %v11370_v19, 7  ;;  %v12637_v42 = vrot.slane %v11405_v52, 7  ;;  %6931 = vmatprep.subr.bf16.mxu0 %v9891_v60  ;;  %v9895_v60 = vld [vmem:[#allocation13 + $0x8c0] ss:$8 sps:$4 sm:$0xff]  }
 0x380   :  { %12627 = vst [vmem:[#allocation69_spill] sm:$0xff] %v11636_v39  ;;  %v11655_v39 = vpack.c.bf16 %v12635_v17, %v12634_v6  ;;  %v12638_v10 = vrot.slane %v11250_v11, 7  ;;  %v11680_v35 = vpack.c.bf16 %v12518_v61, %v12639_v31  ;;  %v2863_v31 = vsel %vm188_vm0, 0.0, %v2799_v21  ;;  %v9897_v61 = vld [vmem:[#allocation13 + $0x8c4] ss:$8 sps:$4 sm:$0xff]  }
 0x381   :  { %12630 = vst [vmem:[#allocation70_spill] sm:$0xff] %v11642_v46  ;;  %12633 = vst [vmem:[#allocation71_spill] sm:$0xff] %v11649_v45  ;;  %v11661_v62 = vpack.c.bf16 %v12637_v42, %v12636_v41  ;;  %v9894_v46 = vld [vmem:[#allocation13 + $0x2c4] ss:$8 sps:$4 sm:$0xff]   ;;  %v2706_v45 = vadd.f32 %v11089_v47, %v11086_v26  ;;  %v9889_v42 = vld [vmem:[#allocation13 + $0x8b0] ss:$8 sps:$4 sm:$0xff]   ;;  %4625 = vmatmul.mubr.bf16.gmra.mrb[24].mxu1 %v11395_v32 }
 0x382   :  { %v11666_v7 = vpack.c.bf16 %v2799_v21, %v12638_v10  ;;  %v9892_v47 = vld [vmem:[#allocation13 + $0x2c0] ss:$8 sps:$4 sm:$0xff]   ;;  %4669 = vmatprep.subr.bf16.mxu1 %v9894_v46  ;;  %v9900_v41 = vld [vmem:[#allocation13 + $0x2d4] ss:$8 sps:$4 sm:$0xff]   ;;  %v12641_v26 = vrot.slane %v11126_v2, 1  ;;  %6932 = vmatpush1.bf16.msra.mxu0 %v9889_v42  ;;  %v12643_v6 = vrot.slane %v11407_v49, 7 }
 0x383   :  { %v11691_v10 = vmax.f32 %v2706_v45, 0.0  ;;  %v12640_v45 = vrot.slane %v11124_v18, 1  ;;  %v12644_v56 = vrot.slane %v11131_v22, 1  ;;  %v12645_v21 = vrot.slane %v11152_v50, 1  ;;  %v12650_v42 = vld [vmem:[#allocation49_spill] sm:$0xff]  ;;  %4670 = vmatpush1.bf16.msra.mxu1 %v9892_v47  ;;  %6933 = vmatprep.subr.bf16.mxu0 %v9897_v61 }
 0x384   :  { %v12647_v46 = vrot.slane %v11135_v37, 1  ;;  %4634 = vmatprep.mubr.bf16.mxu1 %v12650_v42  ;;  %v9898_v32 = vld [vmem:[#allocation13 + $0x2d0] ss:$8 sps:$4 sm:$0xff]   ;;  %v12652_v22 = vrot.slane %v11226_v8, 1  ;;  %v12660_v47 = vrot.slane %v11511_v40, 7  ;;  %4671 = vmatprep.subr.bf16.mxu1 %v9900_v41  ;;  %v12670_v41 = vld [vmem:[#allocation50_spill] sm:$0xff] }
 0x385   :  { %v2815_v17 = vrot.slane %v11691_v10, 7  ;;  %v11723_v51 = vpack.c.bf16 %v12641_v26, %v12640_v45  ;;  %v11734_v3 = vpack.c.bf16 %v12645_v21, %v12644_v56  ;;  %v3200_v45 = vrot.slane %v11691_v10, 1  ;;  %8673 = vmatmul.mubr.msk.bf16.gmra.mrb[56].mxu0 %vm11191_vm3, %v12670_v41 }
 0x386   :  { %v11740_v26 = vpack.c.bf16 %v12648_v1, %v12647_v46  ;;  %v12654_v56 = vrot.slane %v11203_v55, 1  ;;  %v12655_v21 = vrot.slane %v11232_v16, 1  ;;  %v12657_v1 = vrot.slane %v11228_v58, 1  ;;  %8678 = vmatprep.mubr.msk.bf16.mxu0 %vm11191_vm3, %v11426_v34  ;;  %6934 = vmatpush1.bf16.msra.mxu0 %v9895_v60  ;;  %v9904_v60 = vld [vmem:[#allocation13 + $0x2e0] ss:$8 sps:$4 sm:$0xff]  }
 0x387   :  { %12642 = vst [vmem:[#allocation72_spill] sm:$0xff] %v11723_v51  ;;  %v11728_v29 = vpack.c.bf16 %v2815_v17, %v12643_v6  ;;  %12646 = vst [vmem:[#allocation73_spill] sm:$0xff] %v11734_v3  ;;  %v9903_v6 = vld [vmem:[#allocation13 + $0x8d4] ss:$8 sps:$4 sm:$0xff]   ;;  %v12651_v51 = vrot.slane %v11171_v33, 1  ;;  %v12658_v46 = vrot.slane %v11511_v40, 1  ;;  %4672 = vmatpush1.bf16.msra.mxu1 %v9898_v32 }
 0x388   :  { %12649 = vst [vmem:[#allocation74_spill] sm:$0xff] %v11740_v26  ;;  %v11754_v3 = vpack.c.bf16 %v12655_v21, %v12654_v56  ;;  %v2864_v26 = vsel %vm188_vm0, 0.0, %v12660_v47  ;;  %v12664_v56 = vrot.slane %v11254_v48, 1  ;;  %v12665_v21 = vrot.slane %v11280_v38, 1  ;;  %6935 = vmatprep.subr.bf16.mxu0 %v9903_v6 }
 0x389   :  { %v11748_v50 = vpack.c.bf16 %v12652_v22, %v12651_v51  ;;  %v11760_v42 = vpack.c.bf16 %v12658_v46, %v12657_v1  ;;  %v9906_v22 = vld [vmem:[#allocation13 + $0x2e4] ss:$8 sps:$4 sm:$0xff]   ;;  %v12661_v51 = vrot.slane %v11250_v11, 1  ;;  %v12667_v1 = vrot.slane %v11252_v44, 1 }
 0x38a   :  { %12656 = vst [vmem:[#allocation76_spill] sm:$0xff] %v11754_v3  ;;  %v11775_v3 = vpack.c.bf16 %v12665_v21, %v12664_v56  ;;  %v12668_v46 = vrot.slane %v11316_v9, 1  ;;  %v2879_v61 = vsel %vm188_vm0, 0.0, %v2815_v17  ;;  %v12673_v56 = vrot.slane %v11318_v23, 1  ;;  %4673 = vmatprep.subr.bf16.mxu1 %v9906_v22  ;;  %v9910_v22 = vld [vmem:[#allocation13 + $0x2f0] ss:$8 sps:$4 sm:$0xff]  }
 0x38b   :  { %12653 = vst [vmem:[#allocation75_spill] sm:$0xff] %v11748_v50  ;;  %12659 = vst [vmem:[#allocation77_spill] sm:$0xff] %v11760_v42  ;;  %v12662_v50 = vrot.slane %v11507_v12, 1  ;;  %v12674_v21 = vrot.slane %v11351_v54, 1  ;;  %v12676_v17 = vrot.slane %v11372_v27, 1  ;;  %v12678_v41 = vrot.slane %v11370_v19, 1  ;;  %4674 = vmatpush1.bf16.msra.mxu1 %v9904_v60 }
 0x38c   :  { %12666 = vst [vmem:[#allocation79_spill] sm:$0xff] %v11775_v3  ;;  %v11781_v47 = vpack.c.bf16 %v12668_v46, %v12667_v1  ;;  %v12675_v1 = vrot.slane %v11344_v20, 1  ;;  %v8081_v6 = vcombine.high %v11324_v4, %v11432_v25  ;;  %v8080_v60 = vcombine.low %v11324_v4, %v11432_v25  ;;  %v9922_v25 = vld [vmem:[#allocation13 + $0x320] ss:$8 sps:$4 sm:$0xff]  }
 0x38d   :  { %v11769_v55 = vpack.c.bf16 %v12662_v50, %v12661_v51  ;;  %v12671_v50 = vrot.slane %v11288_v0, 1  ;;  %v12672_v51 = vrot.slane %v11342_v30, 1  ;;  %v11797_v3 = vpack.c.bf16 %v12674_v21, %v12673_v56  ;;  %8683 = vmatmul.mubr.msk.bf16.gmra.mrb[60].mxu0 %vm11191_vm3, %v11459_v24 }
 0x38e   :  { %12669 = vst [vmem:[#allocation80_spill] sm:$0xff] %v11781_v47  ;;  %v11803_v46 = vpack.c.bf16 %v12676_v17, %v12675_v1  ;;  %v12679_v47 = vrot.slane %v11405_v52, 1  ;;  %v12682_v56 = vrot.slane %v11539_v63, 1  ;;  %v12683_v1 = vrot.slane %v11407_v49, 1  ;;  %8958 = vmatprep.mubr.msk.bf16.mxu0 %vm11850_vm4, %v11471_v53 }
 0x38f   :  { %12663 = vst [vmem:[#allocation78_spill] sm:$0xff] %v11769_v55  ;;  %v11791_v55 = vpack.c.bf16 %v12672_v51, %v12671_v50  ;;  %v9901_v50 = vld [vmem:[#allocation13 + $0x8d0] ss:$8 sps:$4 sm:$0xff]   ;;  %v12681_v51 = vrot.slane %v11384_v13, 1 }
 0x390   :  { %12677 = vst [vmem:[#allocation81_spill] sm:$0xff] %v11803_v46  ;;  %v11809_v42 = vpack.c.bf16 %v12679_v47, %v12678_v41  ;;  %v11822_v17 = vpack.c.bf16 %v3200_v45, %v12683_v1  ;;  %v11824_v46 = vpack.c.bf16 %v2864_v26, %v2863_v31  ;;  %v12684_v47 = vrot.slane %v11539_v63, 7  ;;  %v9909_v26 = vld [vmem:[#allocation13 + $0x8e4] ss:$8 sps:$4 sm:$0xff]   ;;  %6936 = vmatpush1.bf16.msra.mxu0 %v9901_v50  ;;  %v9913_v50 = vld [vmem:[#allocation13 + $0x8f0] ss:$8 sps:$4 sm:$0xff]  }
 0x391   :  { %v11818_v21 = vpack.c.bf16 %v12682_v56, %v12681_v51  ;;  %v11837_v51 = vpack.c.bf16 %v11539_v63, %v11691_v10  ;;  %v3264_v31 = vsel %vm302_vm1, %v3200_v45, 0.0  ;;  %v9912_v56 = vld [vmem:[#allocation13 + $0x2f4] ss:$8 sps:$4 sm:$0xff]   ;;  %v12686_v1 = vrot.slane %v11539_v63, 1  ;;  %6937 = vmatprep.subr.bf16.mxu0 %v9909_v26 }
 0x392   :  { %12680 = vst [vmem:[#allocation82_spill] sm:$0xff] %v11809_v42  ;;  %v2880_v41 = vsel %vm188_vm0, 0.0, %v12684_v47  ;;  %v11833_v42 = vpack.c.bf16 %v11511_v40, %v11507_v12  ;;  %v9907_v47 = vld [vmem:[#allocation13 + $0x8e0] ss:$8 sps:$4 sm:$0xff]   ;;  %4675 = vmatprep.subr.bf16.mxu1 %v9912_v56  ;;  %v9921_v26 = vld [vmem:[#allocation13 + $0x314] ss:$8 sps:$4 sm:$0xff]  }
 0x393   :  { %v11829_v34 = vpack.c.bf16 %v2880_v41, %v2879_v61  ;;  %12685 = vst [vmem:[#allocation83_spill] sm:$0xff] %v11837_v51  ;;  %v3265_v32 = vsel %vm302_vm1, %v12686_v1, 0.0  ;;  %v12687_v61 = vld [vmem:[#allocation52_spill] sm:$0xff]  ;;  %v9918_v1 = vld [vmem:[#allocation13 + $0x304] ss:$8 sps:$4 sm:$0xff]   ;;  %4676 = vmatpush1.bf16.msra.mxu1 %v9910_v22 }
 0x394   :  { %4635 = vmatmul.mubr.bf16.gmra.mrb[28].mxu1 %v12687_v61  ;;  %v11846_v41 = vpack.c.bf16 %v3265_v32, %v3264_v31  ;;  %v9915_v51 = vld [vmem:[#allocation13 + $0x8f4] ss:$8 sps:$4 sm:$0xff]   ;;  %6938 = vmatpush1.bf16.msra.mxu0 %v9907_v47  ;;  %v9916_v31 = vld [vmem:[#allocation13 + $0x300] ss:$8 sps:$4 sm:$0xff]   ;;  %v9919_v56 = vld [vmem:[#allocation13 + $0x310] ss:$8 sps:$4 sm:$0xff]  }
 0x395   :  { %4677 = vmatprep.mubr.bf16.mxu1 %v8081_v6  ;;  %6939 = vmatprep.subr.bf16.mxu0 %v9915_v51  ;;  %v9924_v32 = vld [vmem:[#allocation13 + $0x324] ss:$8 sps:$4 sm:$0xff]   ;;  %v9927_v47 = vld [vmem:[#allocation13 + $0x334] ss:$8 sps:$4 sm:$0xff]  }
 0x396   :  { %5478 = vmatprep.subr.bf16.mxu1 %v9918_v1  ;;  %v12690_v6 = vld [vmem:[#allocation54_spill] sm:$0xff]  ;;  %v12691_v51 = vld [vmem:[#allocation55_spill] sm:$0xff]  ;;  %v12692_v1 = vld [vmem:[#allocation56_spill] sm:$0xff] }
 0x397   :  { %v9930_v22 = vld [vmem:[#allocation13 + $0x344] ss:$8 sps:$4 sm:$0xff]  }
 0x398   :  { %6940 = vmatpush1.bf16.msra.mxu0 %v9913_v50  ;;  %v12693_v50 = vld [vmem:[#allocation57_spill] sm:$0xff] }
 0x39b   :  { %8961 = vmatmul.mubr.msk.bf16.vlgmr.msra.gmra.mrb[64].mxu0 %vm11850_vm4, %v12690_v6 }
 0x39c   :  { %4678 = vmatmul.mubr.bf16.vlgmr.msra.gmra.mrb[0].mxu1 %v8080_v60  ;;  %8964 = vmatprep.mubr.msk.bf16.mxu0 %vm11850_vm4, %v12691_v51  ;;  %v9933_v60 = vld [vmem:[#allocation13 + $0x354] ss:$8 sps:$4 sm:$0xff]  }
 0x39d   :  { %8686 = vmatprep.mubr.msk.bf16.mxu1 %vm11850_vm4, %v11471_v53  ;;  %5479 = vmatpush1.bf16.msra.mxu1 %v9916_v31  ;;  %v9925_v53 = vld [vmem:[#allocation13 + $0x330] ss:$8 sps:$4 sm:$0xff]   ;;  %v9928_v31 = vld [vmem:[#allocation13 + $0x340] ss:$8 sps:$4 sm:$0xff]  }
 0x39e   :  { %5480 = vmatprep.subr.bf16.mxu1 %v9921_v26  ;;  %v9931_v26 = vld [vmem:[#allocation13 + $0x350] ss:$8 sps:$4 sm:$0xff]  }
 0x3a1   :  { %5481 = vmatpush1.bf16.msra.mxu1 %v9919_v56  ;;  %v8387_v56 = vcombine.high %v11564_v14, %v11324_v4 }
 0x3a2   :  { %5482 = vmatprep.subr.bf16.mxu1 %v9924_v32  ;;  %v9936_v32 = vld [vmem:[#allocation13 + $0x364] ss:$8 sps:$4 sm:$0xff]  }
 0x3a3   :  { %8967 = vmatmul.mubr.msk.bf16.gmra.mrb[68].mxu0 %vm11850_vm4, %v12692_v1 }
 0x3a4   :  { %8689 = vmatmul.mubr.msk.bf16.gmra.mrb[4].mxu1 %vm11850_vm4, %v12690_v6  ;;  %8970 = vmatprep.mubr.msk.bf16.mxu0 %vm11850_vm4, %v12693_v50  ;;  %v12694_v6 = vld [vmem:[#allocation58_spill] sm:$0xff] }
 0x3a5   :  { %8692 = vmatprep.mubr.msk.bf16.mxu1 %vm11850_vm4, %v12691_v51  ;;  %5483 = vmatpush1.bf16.msra.mxu1 %v9922_v25  ;;  %v9934_v51 = vld [vmem:[#allocation13 + $0x360] ss:$8 sps:$4 sm:$0xff]   ;;  %v9939_v25 = vld [vmem:[#allocation13 + $0x374] ss:$8 sps:$4 sm:$0xff]  }
 0x3a6   :  { %5484 = vmatprep.subr.bf16.mxu1 %v9927_v47  ;;  %v8105_v47 = vcombine.high %v11324_v4, %v11524_v43 }
 0x3a9   :  { %5485 = vmatpush1.bf16.msra.mxu1 %v9925_v53  ;;  %v8386_v53 = vcombine.low %v11564_v14, %v11324_v4  ;;  %v9948_v14 = vld [vmem:[#allocation13 + $0x3a4] ss:$8 sps:$4 sm:$0xff]  }
 0x3aa   :  { %5486 = vmatprep.subr.bf16.mxu1 %v9930_v22  ;;  %v9937_v22 = vld [vmem:[#allocation13 + $0x370] ss:$8 sps:$4 sm:$0xff]  }
 0x3ab   :  { %8973 = vmatmul.mubr.msk.bf16.gmra.mrb[72].mxu0 %vm11850_vm4, %v12694_v6 }
 0x3ac   :  { %8695 = vmatmul.mubr.msk.bf16.gmra.mrb[8].mxu1 %vm11850_vm4, %v12692_v1  ;;  %6971 = vmatprep.mubr.bf16.mxu0 %v8387_v56  ;;  %v9942_v1 = vld [vmem:[#allocation13 + $0x384] ss:$8 sps:$4 sm:$0xff]   ;;  %v9946_v56 = vld [vmem:[#allocation13 + $0x3a0] ss:$8 sps:$4 sm:$0xff]  }
 0x3ad   :  { %8698 = vmatprep.mubr.msk.bf16.mxu1 %vm11850_vm4, %v12693_v50  ;;  %5487 = vmatpush1.bf16.msra.mxu1 %v9928_v31  ;;  %v9940_v50 = vld [vmem:[#allocation13 + $0x380] ss:$8 sps:$4 sm:$0xff]   ;;  %v8104_v31 = vcombine.low %v11324_v4, %v11524_v43  ;;  %v9949_v43 = vld [vmem:[#allocation13 + $0x3b0] ss:$8 sps:$4 sm:$0xff]  }
 0x3ae   :  { %5488 = vmatprep.subr.bf16.mxu1 %v9933_v60  ;;  %v9945_v60 = vld [vmem:[#allocation13 + $0x394] ss:$8 sps:$4 sm:$0xff]   ;;  %v12695_v4 = vld [vmem:[#allocation59_spill] sm:$0xff] }
 0x3b1   :  { %5489 = vmatpush1.bf16.msra.mxu1 %v9931_v26  ;;  %v9943_v26 = vld [vmem:[#allocation13 + $0x390] ss:$8 sps:$4 sm:$0xff]  }
 0x3b2   :  { %5490 = vmatprep.subr.bf16.mxu1 %v9936_v32  ;;  %v9951_v32 = vld [vmem:[#allocation13 + $0x3b4] ss:$8 sps:$4 sm:$0xff]  }
 0x3b3   :  { %6972 = vmatmul.mubr.bf16.gmra.mrb[76].mxu0 %v8386_v53  ;;  %v12697_v53 = vld [vmem:[#allocation63_spill] sm:$0xff] }
 0x3b4   :  { %8701 = vmatmul.mubr.msk.bf16.gmra.mrb[12].mxu1 %vm11850_vm4, %v12694_v6  ;;  %v9954_v6 = vld [vmem:[#allocation13 + $0x3c4] ss:$8 sps:$4 sm:$0xff]  }
 0x3b5   :  { %4717 = vmatprep.mubr.bf16.mxu1 %v8105_v47  ;;  %5491 = vmatpush1.bf16.msra.mxu1 %v9934_v51  ;;  %v9952_v51 = vld [vmem:[#allocation13 + $0x3c0] ss:$8 sps:$4 sm:$0xff]   ;;  %v12696_v47 = vld [vmem:[#allocation60_spill] sm:$0xff] }
 0x3b6   :  { %5492 = vmatprep.subr.bf16.mxu1 %v9939_v25  ;;  %v9957_v25 = vld [vmem:[#allocation13 + $0x3d4] ss:$8 sps:$4 sm:$0xff]  }
 0x3b9   :  { %5493 = vmatpush1.bf16.msra.mxu1 %v9937_v22  ;;  %v9955_v22 = vld [vmem:[#allocation13 + $0x3d0] ss:$8 sps:$4 sm:$0xff]  }
 0x3ba   :  { %5494 = vmatprep.subr.bf16.mxu1 %v9942_v1  ;;  %v9960_v1 = vld [vmem:[#allocation13 + $0x3e4] ss:$8 sps:$4 sm:$0xff]  }
 0x3bc   :  { %4718 = vmatmul.mubr.bf16.gmra.mrb[16].mxu1 %v8104_v31  ;;  %v9963_v31 = vld [vmem:[#allocation13 + $0x3f4] ss:$8 sps:$4 sm:$0xff]  }
 0x3bd   :  { %8704 = vmatprep.mubr.msk.bf16.mxu1 %vm11850_vm4, %v11530_v59  ;;  %5495 = vmatpush1.bf16.msra.mxu1 %v9940_v50  ;;  %v9958_v50 = vld [vmem:[#allocation13 + $0x3e0] ss:$8 sps:$4 sm:$0xff]  }
 0x3be   :  { %5496 = vmatprep.subr.bf16.mxu1 %v9945_v60  ;;  %v12698_v60 = vld [vmem:[#allocation64_spill] sm:$0xff] }
 0x3c1   :  { %5497 = vmatpush1.bf16.msra.mxu1 %v9943_v26  ;;  %v12699_v26 = vld [vmem:[#allocation61_spill] sm:$0xff] }
 0x3c2   :  { %5498 = vmatprep.subr.bf16.mxu1 %v9948_v14  ;;  %v9961_v14 = vld [vmem:[#allocation13 + $0x3f0] ss:$8 sps:$4 sm:$0xff]  }
 0x3c4   :  { %8707 = vmatmul.mubr.msk.bf16.gmra.mrb[20].mxu1 %vm11850_vm4, %v11548_v36 }
 0x3c5   :  { %8710 = vmatprep.mubr.msk.bf16.mxu1 %vm11850_vm4, %v12695_v4  ;;  %5499 = vmatpush1.bf16.msra.mxu1 %v9946_v56  ;;  %v9966_v56 = vld [vmem:[#allocation13 + $0x404] ss:$8 sps:$4 sm:$0xff]  }
 0x3c6   :  { %5500 = vmatprep.subr.bf16.mxu1 %v9951_v32  ;;  %v9964_v32 = vld [vmem:[#allocation13 + $0x400] ss:$8 sps:$4 sm:$0xff]  }
 0x3c9   :  { %5501 = vmatpush1.bf16.msra.mxu1 %v9949_v43  ;;  %v9969_v43 = vld [vmem:[#allocation13 + $0x414] ss:$8 sps:$4 sm:$0xff]  }
 0x3ca   :  { %5502 = vmatprep.subr.bf16.mxu1 %v9954_v6  ;;  %v12700_v6 = vld [vmem:[#allocation32_spill] sm:$0xff] }
 0x3cc   :  { %8713 = vmatmul.mubr.msk.bf16.gmra.mrb[24].mxu1 %vm11850_vm4, %v12696_v47 }
 0x3cd   :  { %8716 = vmatprep.mubr.msk.bf16.mxu1 %vm11850_vm4, %v12697_v53  ;;  %5503 = vmatpush1.bf16.msra.mxu1 %v9952_v51  ;;  %v12701_v51 = vld [vmem:[#allocation62_spill] sm:$0xff] }
 0x3ce   :  { %5504 = vmatprep.subr.bf16.mxu1 %v9957_v25  ;;  %v9967_v25 = vld [vmem:[#allocation13 + $0x410] ss:$8 sps:$4 sm:$0xff]  }
 0x3d1   :  { %5505 = vmatpush1.bf16.msra.mxu1 %v9955_v22  ;;  %v9972_v22 = vld [vmem:[#allocation13 + $0x424] ss:$8 sps:$4 sm:$0xff]  }
 0x3d2   :  { %5506 = vmatprep.subr.bf16.mxu1 %v9960_v1  ;;  %v9970_v1 = vld [vmem:[#allocation13 + $0x420] ss:$8 sps:$4 sm:$0xff]  }
 0x3d4   :  { %8719 = vmatmul.mubr.msk.bf16.gmra.mrb[28].mxu1 %vm11850_vm4, %v12698_v60 }
 0x3d5   :  { %5507 = vmatpush1.bf16.msra.mxu1 %v9958_v50  ;;  %8772 = vmatprep.mubr.msk.bf16.mxu1 %vm11191_vm3, %v12699_v26  ;;  %v9975_v50 = vld [vmem:[#allocation13 + $0x434] ss:$8 sps:$4 sm:$0xff]   ;;  %v9973_v26 = vld [vmem:[#allocation13 + $0x430] ss:$8 sps:$4 sm:$0xff]  }
 0x3d6   :  { %5508 = vmatprep.subr.bf16.mxu1 %v9963_v31  ;;  %v12702_v31 = vld [vmem:[#allocation65_spill] sm:$0xff] }
 0x3d9   :  { %5509 = vmatpush1.bf16.msra.mxu1 %v9961_v14  ;;  %v9978_v14 = vld [vmem:[#allocation13 + $0x444] ss:$8 sps:$4 sm:$0xff]  }
 0x3da   :  { %5591 = vmatprep.subr.bf16.mxu1 %v9966_v56  ;;  %v9976_v56 = vld [vmem:[#allocation13 + $0x440] ss:$8 sps:$4 sm:$0xff]  }
 0x3dc   :  { %8777 = vmatmul.mubr.msk.bf16.vlgmr.msra.gmra.mrb[0].mxu1 %vm11191_vm3, %v12700_v6  ;;  %v12704_v6 = vld [vmem:[#allocation67_spill] sm:$0xff] }
 0x3dd   :  { %8782 = vmatprep.mubr.msk.bf16.mxu1 %vm11191_vm3, %v12701_v51  ;;  %5592 = vmatpush1.bf16.msra.mxu1 %v9964_v32  ;;  %v9981_v32 = vld [vmem:[#allocation13 + $0x454] ss:$8 sps:$4 sm:$0xff]   ;;  %v9984_v51 = vld [vmem:[#allocation13 + $0x464] ss:$8 sps:$4 sm:$0xff]  }
 0x3de   :  { %5593 = vmatprep.subr.bf16.mxu1 %v9969_v43  ;;  %v12703_v43 = vld [vmem:[#allocation66_spill] sm:$0xff] }
 0x3e1   :  { %5594 = vmatpush1.bf16.msra.mxu1 %v9967_v25  ;;  %v9982_v25 = vld [vmem:[#allocation13 + $0x460] ss:$8 sps:$4 sm:$0xff]  }
 0x3e2   :  { %5595 = vmatprep.subr.bf16.mxu1 %v9972_v22  ;;  %v9987_v22 = vld [vmem:[#allocation13 + $0x474] ss:$8 sps:$4 sm:$0xff]  }
 0x3e4   :  { %8787 = vmatmul.mubr.msk.bf16.gmra.mrb[4].mxu1 %vm11191_vm3, %v11604_v57  ;;  %v9979_v57 = vld [vmem:[#allocation13 + $0x450] ss:$8 sps:$4 sm:$0xff]  }
 0x3e5   :  { %8792 = vmatprep.mubr.msk.bf16.mxu1 %vm11191_vm3, %v12702_v31  ;;  %5596 = vmatpush1.bf16.msra.mxu1 %v9970_v1  ;;  %v12705_v1 = vld [vmem:[#allocation68_spill] sm:$0xff]  ;;  %v9990_v31 = vld [vmem:[#allocation13 + $0x484] ss:$8 sps:$4 sm:$0xff]  }
 0x3e6   :  { %5597 = vmatprep.subr.bf16.mxu1 %v9975_v50  ;;  %v9985_v50 = vld [vmem:[#allocation13 + $0x470] ss:$8 sps:$4 sm:$0xff]  }
 0x3e9   :  { %5598 = vmatpush1.bf16.msra.mxu1 %v9973_v26  ;;  %v9988_v26 = vld [vmem:[#allocation13 + $0x480] ss:$8 sps:$4 sm:$0xff]  }
 0x3ea   :  { %5599 = vmatprep.subr.bf16.mxu1 %v9978_v14  ;;  %v9993_v14 = vld [vmem:[#allocation13 + $0x494] ss:$8 sps:$4 sm:$0xff]  }
 0x3ec   :  { %8797 = vmatmul.mubr.msk.bf16.gmra.mrb[8].mxu1 %vm11191_vm3, %v12703_v43  ;;  %v9996_v43 = vld [vmem:[#allocation13 + $0x4a4] ss:$8 sps:$4 sm:$0xff]  }
 0x3ed   :  { %8802 = vmatprep.mubr.msk.bf16.mxu1 %vm11191_vm3, %v12704_v6  ;;  %5600 = vmatpush1.bf16.msra.mxu1 %v9976_v56  ;;  %v12706_v56 = vld [vmem:[#allocation69_spill] sm:$0xff] }
 0x3ee   :  { %5601 = vmatprep.subr.bf16.mxu1 %v9981_v32  ;;  %v12707_v32 = vld [vmem:[#allocation70_spill] sm:$0xff] }
 0x3ef   :  { %v9994_v6 = vld [vmem:[#allocation13 + $0x4a0] ss:$8 sps:$4 sm:$0xff]  }
 0x3f1   :  { %5602 = vmatpush1.bf16.msra.mxu1 %v9979_v57  ;;  %v9999_v57 = vld [vmem:[#allocation13 + $0x4b4] ss:$8 sps:$4 sm:$0xff]  }
 0x3f2   :  { %5603 = vmatprep.subr.bf16.mxu1 %v9984_v51  ;;  %v12708_v51 = vld [vmem:[#allocation71_spill] sm:$0xff] }
 0x3f4   :  { %8807 = vmatmul.mubr.msk.bf16.gmra.mrb[12].mxu1 %vm11191_vm3, %v11666_v7  ;;  %v9991_v7 = vld [vmem:[#allocation13 + $0x490] ss:$8 sps:$4 sm:$0xff]  }
 0x3f5   :  { %8812 = vmatprep.mubr.msk.bf16.mxu1 %vm11191_vm3, %v12705_v1  ;;  %5604 = vmatpush1.bf16.msra.mxu1 %v9982_v25  ;;  %v9997_v25 = vld [vmem:[#allocation13 + $0x4b0] ss:$8 sps:$4 sm:$0xff]   ;;  %v10000_v1 = vld [vmem:[#allocation13 + $0x4c0] ss:$8 sps:$4 sm:$0xff]  }
 0x3f6   :  { %5605 = vmatprep.subr.bf16.mxu1 %v9987_v22  ;;  %v10002_v22 = vld [vmem:[#allocation13 + $0x4c4] ss:$8 sps:$4 sm:$0xff]  }
 0x3f9   :  { %5606 = vmatpush1.bf16.msra.mxu1 %v9985_v50  ;;  %v10005_v50 = vld [vmem:[#allocation13 + $0x4d4] ss:$8 sps:$4 sm:$0xff]  }
 0x3fa   :  { %5607 = vmatprep.subr.bf16.mxu1 %v9990_v31  ;;  %v10003_v31 = vld [vmem:[#allocation13 + $0x4d0] ss:$8 sps:$4 sm:$0xff]  }
 0x3fc   :  { %8817 = vmatmul.mubr.msk.bf16.gmra.mrb[16].mxu1 %vm11191_vm3, %v12706_v56  ;;  %v10009_v56 = vld [vmem:[#allocation13 + $0x4f0] ss:$8 sps:$4 sm:$0xff]  }
 0x3fd   :  { %8822 = vmatprep.mubr.msk.bf16.mxu1 %vm11191_vm3, %v12707_v32  ;;  %5608 = vmatpush1.bf16.msra.mxu1 %v9988_v26  ;;  %v10006_v26 = vld [vmem:[#allocation13 + $0x4e0] ss:$8 sps:$4 sm:$0xff]  }
 0x3fe   :  { %5609 = vmatprep.subr.bf16.mxu1 %v9993_v14  ;;  %v10011_v14 = vld [vmem:[#allocation13 + $0x4f4] ss:$8 sps:$4 sm:$0xff]   ;;  %v10012_v32 = vld [vmem:[#allocation13 + $0x500] ss:$8 sps:$4 sm:$0xff]  }
 0x401   :  { %5610 = vmatpush1.bf16.msra.mxu1 %v9991_v7  ;;  %v10017_v7 = vld [vmem:[#allocation13 + $0x514] ss:$8 sps:$4 sm:$0xff]  }
 0x402   :  { %5611 = vmatprep.subr.bf16.mxu1 %v9996_v43  ;;  %v12710_v43 = vld [vmem:[#allocation25_spill] sm:$0xff] }
 0x404   :  { %8827 = vmatmul.mubr.msk.bf16.gmra.mrb[20].mxu1 %vm11191_vm3, %v12708_v51  ;;  %v12713_v51 = vld [vmem:[#allocation26_spill] sm:$0xff] }
 0x405   :  { %8832 = vmatprep.mubr.msk.bf16.mxu1 %vm11191_vm3, %v11655_v39  ;;  %5612 = vmatpush1.bf16.msra.mxu1 %v9994_v6  ;;  %v10008_v39 = vld [vmem:[#allocation13 + $0x4e4] ss:$8 sps:$4 sm:$0xff]   ;;  %v12711_v6 = vpack.c.bf16 %v11133_v28, %v12710_v43  ;;  %v12716_v28 = vpack.c.bf16 %v11226_v8, %v11171_v33  ;;  %v10030_v8 = vld [vmem:[#allocation13 + $0x560] ss:$8 sps:$4 sm:$0xff]   ;;  %v10033_v43 = vld [vmem:[#allocation13 + $0x570] ss:$8 sps:$4 sm:$0xff]  }
 0x406   :  { %5613 = vmatprep.subr.bf16.mxu1 %v9999_v57  ;;  %v12712_v57 = vld [vmem:[#allocation29_spill] sm:$0xff]  ;;  %v10032_v33 = vld [vmem:[#allocation13 + $0x564] ss:$8 sps:$4 sm:$0xff]  }
 0x409   :  { %5614 = vmatpush1.bf16.msra.mxu1 %v9997_v25  ;;  %v12714_v25 = vpack.c.bf16 %v12712_v57, %v12713_v51  ;;  %v10036_v57 = vld [vmem:[#allocation13 + $0x580] ss:$8 sps:$4 sm:$0xff]  }
 0x40a   :  { %5615 = vmatprep.subr.bf16.mxu1 %v10002_v22  ;;  %v10023_v22 = vld [vmem:[#allocation13 + $0x534] ss:$8 sps:$4 sm:$0xff]  }
 0x40c   :  { %8837 = vmatmul.mubr.msk.bf16.gmra.mrb[24].mxu1 %vm11191_vm3, %v11661_v62  ;;  %v12709_v62 = vpack.c.bf16 %v11126_v2, %v11124_v18  ;;  %v10020_v18 = vld [vmem:[#allocation13 + $0x524] ss:$8 sps:$4 sm:$0xff]   ;;  %v10018_v2 = vld [vmem:[#allocation13 + $0x520] ss:$8 sps:$4 sm:$0xff]  }
 0x40d   :  { %8842 = vmatprep.mubr.msk.bf16.mxu1 %vm11191_vm3, %v11680_v35  ;;  %5616 = vmatpush1.bf16.msra.mxu1 %v10000_v1  ;;  %v10014_v35 = vld [vmem:[#allocation13 + $0x504] ss:$8 sps:$4 sm:$0xff]   ;;  %v12715_v1 = vpack.c.bf16 %v11201_v5, %v11135_v37  ;;  %v12719_v37 = vpack.c.bf16 %v11511_v40, %v11228_v58  ;;  %v10027_v5 = vld [vmem:[#allocation13 + $0x550] ss:$8 sps:$4 sm:$0xff]   ;;  %v12721_v40 = vpack.c.bf16 %v11280_v38, %v11254_v48 }
 0x40e   :  { %5617 = vmatprep.subr.bf16.mxu1 %v10005_v50  ;;  %v10021_v50 = vld [vmem:[#allocation13 + $0x530] ss:$8 sps:$4 sm:$0xff]   ;;  %v12723_v48 = vpack.c.bf16 %v11342_v30, %v11288_v0  ;;  %v12725_v30 = vpack.c.bf16 %v11372_v27, %v11344_v20  ;;  %v12727_v20 = vpack.c.bf16 %v11539_v63, %v11384_v13 }
 0x40f   :  { %v12729_v63 = vld [vmem:[#allocation72_spill] sm:$0xff] }
 0x411   :  { %5618 = vmatpush1.bf16.msra.mxu1 %v10003_v31  ;;  %v10026_v31 = vld [vmem:[#allocation13 + $0x544] ss:$8 sps:$4 sm:$0xff]  }
 0x412   :  { %5619 = vmatprep.subr.bf16.mxu1 %v10008_v39  ;;  %v10024_v39 = vld [vmem:[#allocation13 + $0x540] ss:$8 sps:$4 sm:$0xff]  }
 0x414   :  { %8847 = vmatmul.mubr.msk.bf16.gmra.mrb[28].mxu1 %vm11191_vm3, %v11728_v29  ;;  %v10015_v29 = vld [vmem:[#allocation13 + $0x510] ss:$8 sps:$4 sm:$0xff]  }
 0x415   :  { %5620 = vmatpush1.bf16.msra.mxu1 %v10006_v26  ;;  %5623 = vmatprep.mubr.bf16.mxu1 %v12709_v62  ;;  %v10029_v26 = vld [vmem:[#allocation13 + $0x554] ss:$8 sps:$4 sm:$0xff]  }
 0x416   :  { %5621 = vmatprep.subr.bf16.mxu1 %v10011_v14  ;;  %v12717_v14 = vld [vmem:[#allocation34_spill] sm:$0xff] }
 0x417   :  { %v12718_v62 = vpack.c.bf16 %v11232_v16, %v12717_v14  ;;  %v12720_v16 = vpack.c.bf16 %v11507_v12, %v11250_v11  ;;  %v12722_v12 = vpack.c.bf16 %v11316_v9, %v11252_v44  ;;  %v12724_v9 = vpack.c.bf16 %v11351_v54, %v11318_v23 }
 0x418   :  { %v12726_v54 = vpack.c.bf16 %v11405_v52, %v11370_v19  ;;  %v12728_v52 = vpack.c.bf16 %v11691_v10, %v11407_v49  ;;  %v12731_v10 = vld [vmem:[#allocation53_spill] sm:$0xff] }
 0x419   :  { %5622 = vmatpush1.bf16.msra.mxu1 %v10009_v56 }
 0x41a   :  { %5704 = vmatprep.subr.bf16.mxu1 %v10014_v35  ;;  %v10035_v35 = vld [vmem:[#allocation13 + $0x574] ss:$8 sps:$4 sm:$0xff]  }
 0x41c   :  { %5624 = vmatmul.mubr.bf16.vlgmr.msra.gmra.mrb[0].mxu1 %v12711_v6  ;;  %v10038_v6 = vld [vmem:[#allocation13 + $0x584] ss:$8 sps:$4 sm:$0xff]  }
 0x41d   :  { %5633 = vmatprep.mubr.bf16.mxu1 %v12714_v25  ;;  %5705 = vmatpush1.bf16.msra.mxu1 %v10012_v32  ;;  %v10041_v25 = vld [vmem:[#allocation13 + $0x594] ss:$8 sps:$4 sm:$0xff]  }
 0x41e   :  { %5706 = vmatprep.subr.bf16.mxu1 %v10017_v7 }
 0x421   :  { %5707 = vmatpush1.bf16.msra.mxu1 %v10015_v29 }
 0x422   :  { %5708 = vmatprep.subr.bf16.mxu1 %v10020_v18  ;;  %v10039_v18 = vld [vmem:[#allocation13 + $0x590] ss:$8 sps:$4 sm:$0xff]  }
 0x424   :  { %5634 = vmatmul.mubr.bf16.gmra.mrb[4].mxu1 %v12715_v1  ;;  %v11990_v56 = vpop.f32.mrb[32].mxu0 }
 0x425   :  { %5643 = vmatprep.mubr.bf16.mxu1 %v12716_v28  ;;  %5709 = vmatpush1.bf16.msra.mxu1 %v10018_v2  ;;  %v11992_v32 = vpop.f32.mrb[33].mxu0  ;;  %v10044_v2 = vld [vmem:[#allocation13 + $0x5a4] ss:$8 sps:$4 sm:$0xff]   ;;  %v10047_v28 = vld [vmem:[#allocation13 + $0x5b4] ss:$8 sps:$4 sm:$0xff]  }
 0x426   :  { %5710 = vmatprep.subr.bf16.mxu1 %v10023_v22  ;;  %v11994_v7 = vpop.f32.mrb[34].mxu0  ;;  %v10042_v22 = vld [vmem:[#allocation13 + $0x5a0] ss:$8 sps:$4 sm:$0xff]  }
 0x427   :  { %v11999_v58 = vpop.f32.mrb[35].mxu0 }
 0x429   :  { %5711 = vmatpush1.bf16.msra.mxu1 %v10021_v50 }
 0x42a   :  { %5712 = vmatprep.subr.bf16.mxu1 %v10026_v31  ;;  %v10045_v31 = vld [vmem:[#allocation13 + $0x5b0] ss:$8 sps:$4 sm:$0xff]  }
 0x42c   :  { %5644 = vmatmul.mubr.bf16.gmra.mrb[8].mxu1 %v12718_v62  ;;  %v12004_v51 = vpop.f32.mrb[36].mxu0  ;;  %v10053_v62 = vld [vmem:[#allocation13 + $0x5d4] ss:$8 sps:$4 sm:$0xff]  }
 0x42d   :  { %5653 = vmatprep.mubr.bf16.mxu1 %v12719_v37  ;;  %5713 = vmatpush1.bf16.msra.mxu1 %v10024_v39  ;;  %v12006_v29 = vpop.f32.mrb[37].mxu0  ;;  %v10050_v39 = vld [vmem:[#allocation13 + $0x5c4] ss:$8 sps:$4 sm:$0xff]  }
 0x42e   :  { %5714 = vmatprep.subr.bf16.mxu1 %v10029_v26  ;;  %v12008_v11 = vpop.f32.mrb[38].mxu0  ;;  %v10048_v26 = vld [vmem:[#allocation13 + $0x5c0] ss:$8 sps:$4 sm:$0xff]  }
 0x42f   :  { %v12013_v38 = vpop.f32.mrb[39].mxu0 }
 0x431   :  { %5715 = vmatpush1.bf16.msra.mxu1 %v10027_v5  ;;  %v10051_v5 = vld [vmem:[#allocation13 + $0x5d0] ss:$8 sps:$4 sm:$0xff]  }
 0x432   :  { %5716 = vmatprep.subr.bf16.mxu1 %v10032_v33  ;;  %v10056_v33 = vld [vmem:[#allocation13 + $0x5e4] ss:$8 sps:$4 sm:$0xff]  }
 0x434   :  { %5654 = vmatmul.mubr.bf16.gmra.mrb[12].mxu1 %v12720_v16  ;;  %v12018_v1 = vpop.f32.mrb[40].mxu0  ;;  %v10059_v16 = vld [vmem:[#allocation13 + $0x5f4] ss:$8 sps:$4 sm:$0xff]  }
 0x435   :  { %5663 = vmatprep.mubr.bf16.mxu1 %v12721_v40  ;;  %5717 = vmatpush1.bf16.msra.mxu1 %v10030_v8  ;;  %v12020_v50 = vpop.f32.mrb[41].mxu0  ;;  %v10054_v8 = vld [vmem:[#allocation13 + $0x5e0] ss:$8 sps:$4 sm:$0xff]  }
 0x436   :  { %5718 = vmatprep.subr.bf16.mxu1 %v10035_v35  ;;  %v12022_v44 = vpop.f32.mrb[42].mxu0 }
 0x437   :  { %v12027_v0 = vpop.f32.mrb[43].mxu0 }
 0x439   :  { %5719 = vmatpush1.bf16.msra.mxu1 %v10033_v43  ;;  %v10057_v43 = vld [vmem:[#allocation13 + $0x5f0] ss:$8 sps:$4 sm:$0xff]  }
 0x43a   :  { %5720 = vmatprep.subr.bf16.mxu1 %v10038_v6  ;;  %v10062_v6 = vld [vmem:[#allocation13 + $0x604] ss:$8 sps:$4 sm:$0xff]  }
 0x43c   :  { %5664 = vmatmul.mubr.bf16.gmra.mrb[16].mxu1 %v12722_v12  ;;  %v12032_v14 = vpop.f32.mrb[44].mxu0  ;;  %v10065_v12 = vld [vmem:[#allocation13 + $0x614] ss:$8 sps:$4 sm:$0xff]  }
 0x43d   :  { %5673 = vmatprep.mubr.bf16.mxu1 %v12723_v48  ;;  %5721 = vmatpush1.bf16.msra.mxu1 %v10036_v57  ;;  %v12034_v37 = vpop.f32.mrb[45].mxu0  ;;  %v10060_v57 = vld [vmem:[#allocation13 + $0x600] ss:$8 sps:$4 sm:$0xff]  }
 0x43e   :  { %5722 = vmatprep.subr.bf16.mxu1 %v10041_v25  ;;  %v12036_v23 = vpop.f32.mrb[46].mxu0 }
 0x43f   :  { %v12041_v27 = vpop.f32.mrb[47].mxu0 }
 0x441   :  { %5723 = vmatpush1.bf16.msra.mxu1 %v10039_v18 }
 0x442   :  { %5724 = vmatprep.subr.bf16.mxu1 %v10044_v2  ;;  %v12733_v2 = vld [vmem:[#allocation73_spill] sm:$0xff] }
 0x444   :  { %5674 = vmatmul.mubr.bf16.gmra.mrb[20].mxu1 %v12724_v9  ;;  %v12046_v35 = vpop.f32.mrb[48].mxu0  ;;  %v10066_v9 = vld [vmem:[#allocation13 + $0x620] ss:$8 sps:$4 sm:$0xff]  }
 0x445   :  { %5683 = vmatprep.mubr.bf16.mxu1 %v12725_v30  ;;  %5725 = vmatpush1.bf16.msra.mxu1 %v10042_v22  ;;  %v12048_v40 = vpop.f32.mrb[49].mxu0  ;;  %v10063_v22 = vld [vmem:[#allocation13 + $0x610] ss:$8 sps:$4 sm:$0xff]  }
 0x446   :  { %5726 = vmatprep.subr.bf16.mxu1 %v10047_v28  ;;  %v12050_v19 = vpop.f32.mrb[50].mxu0  ;;  %v10068_v28 = vld [vmem:[#allocation13 + $0x624] ss:$8 sps:$4 sm:$0xff]  }
 0x447   :  { %v12055_v13 = vpop.f32.mrb[51].mxu0 }
 0x449   :  { %5727 = vmatpush1.bf16.msra.mxu1 %v10045_v31  ;;  %v10071_v31 = vld [vmem:[#allocation13 + $0x634] ss:$8 sps:$4 sm:$0xff]  }
 0x44a   :  { %5728 = vmatprep.subr.bf16.mxu1 %v10050_v39 }
 0x44c   :  { %5684 = vmatmul.mubr.bf16.gmra.mrb[24].mxu1 %v12726_v54  ;;  %v12060_v25 = vpop.f32.mrb[52].mxu0 }
 0x44d   :  { %5693 = vmatprep.mubr.bf16.mxu1 %v12727_v20  ;;  %5729 = vmatpush1.bf16.msra.mxu1 %v10048_v26  ;;  %v12062_v48 = vpop.f32.mrb[53].mxu0  ;;  %v12739_v20 = vld [vmem:[#allocation75_spill] sm:$0xff] }
 0x44e   :  { %5730 = vmatprep.subr.bf16.mxu1 %v10053_v62  ;;  %v12064_v49 = vpop.f32.mrb[54].mxu0  ;;  %v12737_v62 = vld [vmem:[#allocation74_spill] sm:$0xff] }
 0x44f   :  { %12730 = vst [vmem:[#allocation52_spill] sm:$0xff] %v12064_v49  ;;  %v12069_v18 = vpop.f32.mrb[55].mxu0  ;;  %v10129_v49 = vld [vmem:[#allocation13 + $0x770] ss:$8 sps:$4 sm:$0xff]  }
 0x450   :  { %12732 = vst [vmem:[#allocation54_spill] sm:$0xff] %v12069_v18  ;;  %v12756_v18 = vld [vmem:[#allocation41_spill] sm:$0xff] }
 0x451   :  { %5731 = vmatpush1.bf16.msra.mxu1 %v10051_v5  ;;  %v10069_v5 = vld [vmem:[#allocation13 + $0x630] ss:$8 sps:$4 sm:$0xff]  }
 0x452   :  { %5732 = vmatprep.subr.bf16.mxu1 %v10056_v33  ;;  %v10074_v33 = vld [vmem:[#allocation13 + $0x644] ss:$8 sps:$4 sm:$0xff]  }
 0x454   :  { %5694 = vmatmul.mubr.bf16.gmra.mrb[28].mxu1 %v12728_v52  ;;  %v10077_v52 = vld [vmem:[#allocation13 + $0x654] ss:$8 sps:$4 sm:$0xff]  }
 0x455   :  { %5733 = vmatpush1.bf16.msra.mxu1 %v10054_v8  ;;  %8850 = vmatprep.mubr.msk.bf16.mxu1 %vm11850_vm4, %v12729_v63  ;;  %v10072_v8 = vld [vmem:[#allocation13 + $0x640] ss:$8 sps:$4 sm:$0xff]  }
 0x456   :  { %5734 = vmatprep.subr.bf16.mxu1 %v10059_v16 }
 0x458   :  { %v12074_v30 = vpop.f32.mrb[56].mxu0 }
 0x459   :  { %5735 = vmatpush1.bf16.msra.mxu1 %v10057_v43  ;;  %12734 = vst [vmem:[#allocation55_spill] sm:$0xff] %v12074_v30  ;;  %v12076_v39 = vpop.f32.mrb[57].mxu0  ;;  %v10108_v30 = vld [vmem:[#allocation13 + $0x700] ss:$8 sps:$4 sm:$0xff]  }
 0x45a   :  { %6683 = vmatprep.subr.bf16.mxu1 %v10062_v6  ;;  %12735 = vst [vmem:[#allocation56_spill] sm:$0xff] %v12076_v39  ;;  %v12078_v26 = vpop.f32.mrb[58].mxu0  ;;  %v12743_v6 = vld [vmem:[#allocation76_spill] sm:$0xff] }
 0x45b   :  { %12736 = vst [vmem:[#allocation57_spill] sm:$0xff] %v12078_v26  ;;  %v12083_v54 = vpop.f32.mrb[59].mxu0 }
 0x45c   :  { %8853 = vmatmul.mubr.msk.bf16.vlgmr.msra.gmra.mrb[0].mxu1 %vm11850_vm4, %v12731_v10  ;;  %12738 = vst [vmem:[#allocation58_spill] sm:$0xff] %v12083_v54  ;;  %v10075_v10 = vld [vmem:[#allocation13 + $0x650] ss:$8 sps:$4 sm:$0xff]   ;;  %v10101_v54 = vld [vmem:[#allocation13 + $0x6d4] ss:$8 sps:$4 sm:$0xff]  }
 0x45d   :  { %8856 = vmatprep.mubr.msk.bf16.mxu1 %vm11850_vm4, %v12733_v2  ;;  %6684 = vmatpush1.bf16.msra.mxu1 %v10060_v57  ;;  %v10080_v2 = vld [vmem:[#allocation13 + $0x664] ss:$8 sps:$4 sm:$0xff]  }
 0x45e   :  { %6685 = vmatprep.subr.bf16.mxu1 %v10065_v12  ;;  %v12745_v12 = vld [vmem:[#allocation77_spill] sm:$0xff] }
 0x460   :  { %v12088_v16 = vpop.f32.mrb[60].mxu0 }
 0x461   :  { %6686 = vmatpush1.bf16.msra.mxu1 %v10063_v22  ;;  %12740 = vst [vmem:[#allocation59_spill] sm:$0xff] %v12088_v16  ;;  %v12090_v63 = vpop.f32.mrb[61].mxu0  ;;  %v10078_v22 = vld [vmem:[#allocation13 + $0x660] ss:$8 sps:$4 sm:$0xff]  }
 0x462   :  { %6687 = vmatprep.subr.bf16.mxu1 %v10068_v28  ;;  %12741 = vst [vmem:[#allocation60_spill] sm:$0xff] %v12090_v63  ;;  %v12092_v43 = vpop.f32.mrb[62].mxu0 }
 0x463   :  { %12742 = vst [vmem:[#allocation63_spill] sm:$0xff] %v12092_v43  ;;  %v12097_v57 = vpop.f32.mrb[63].mxu0  ;;  %v10095_v43 = vld [vmem:[#allocation13 + $0x6b4] ss:$8 sps:$4 sm:$0xff]  }
 0x464   :  { %8859 = vmatmul.mubr.msk.bf16.gmra.mrb[4].mxu1 %vm11850_vm4, %v12737_v62  ;;  %12744 = vst [vmem:[#allocation64_spill] sm:$0xff] %v12097_v57  ;;  %v12746_v62 = vld [vmem:[#allocation78_spill] sm:$0xff] }
 0x465   :  { %8862 = vmatprep.mubr.msk.bf16.mxu1 %vm11850_vm4, %v12739_v20  ;;  %6688 = vmatpush1.bf16.msra.mxu1 %v10066_v9  ;;  %v10083_v9 = vld [vmem:[#allocation13 + $0x674] ss:$8 sps:$4 sm:$0xff]  }
 0x466   :  { %6689 = vmatprep.subr.bf16.mxu1 %v10071_v31 }
 0x469   :  { %6690 = vmatpush1.bf16.msra.mxu1 %v10069_v5  ;;  %v12747_v5 = vld [vmem:[#allocation79_spill] sm:$0xff] }
 0x46a   :  { %6691 = vmatprep.subr.bf16.mxu1 %v10074_v33 }
 0x46c   :  { %8865 = vmatmul.mubr.msk.bf16.gmra.mrb[8].mxu1 %vm11850_vm4, %v12743_v6  ;;  %v10084_v6 = vld [vmem:[#allocation13 + $0x680] ss:$8 sps:$4 sm:$0xff]  }
 0x46d   :  { %8868 = vmatprep.mubr.msk.bf16.mxu1 %vm11850_vm4, %v12745_v12  ;;  %6692 = vmatpush1.bf16.msra.mxu1 %v10072_v8  ;;  %v10081_v8 = vld [vmem:[#allocation13 + $0x670] ss:$8 sps:$4 sm:$0xff]  }
 0x46e   :  { %6693 = vmatprep.subr.bf16.mxu1 %v10077_v52  ;;  %v12102_v28 = vpop.f32.mrb[64].mxu0  ;;  %v10086_v52 = vld [vmem:[#allocation13 + $0x684] ss:$8 sps:$4 sm:$0xff]  }
 0x46f   :  { %v12104_v31 = vpop.f32.mrb[65].mxu0 }
 0x470   :  { %v12109_v20 = vpop.f32.mrb[66].mxu0 }
 0x471   :  { %6694 = vmatpush1.bf16.msra.mxu1 %v10075_v10  ;;  %v12114_v33 = vpop.f32.mrb[67].mxu0  ;;  %v10089_v10 = vld [vmem:[#allocation13 + $0x694] ss:$8 sps:$4 sm:$0xff]  }
 0x472   :  { %6695 = vmatprep.subr.bf16.mxu1 %v10080_v2 }
 0x474   :  { %8871 = vmatmul.mubr.msk.bf16.gmra.mrb[12].mxu1 %vm11850_vm4, %v12746_v62  ;;  %v12748_v62 = vld [vmem:[#allocation80_spill] sm:$0xff] }
 0x475   :  { %8874 = vmatprep.mubr.msk.bf16.mxu1 %vm11850_vm4, %v12747_v5  ;;  %6696 = vmatpush1.bf16.msra.mxu1 %v10078_v22  ;;  %v10092_v5 = vld [vmem:[#allocation13 + $0x6a4] ss:$8 sps:$4 sm:$0xff]  }
 0x476   :  { %6697 = vmatprep.subr.bf16.mxu1 %v10083_v9  ;;  %v12116_v12 = vpop.f32.mrb[68].mxu0  ;;  %v10087_v9 = vld [vmem:[#allocation13 + $0x690] ss:$8 sps:$4 sm:$0xff]  }
 0x477   :  { %v12118_v2 = vpop.f32.mrb[69].mxu0 }
 0x478   :  { %v12123_v57 = vpop.f32.mrb[70].mxu0 }
 0x479   :  { %6698 = vmatpush1.bf16.msra.mxu1 %v10081_v8  ;;  %v12128_v22 = vpop.f32.mrb[71].mxu0  ;;  %v10090_v8 = vld [vmem:[#allocation13 + $0x6a0] ss:$8 sps:$4 sm:$0xff]  }
 0x47a   :  { %6699 = vmatprep.subr.bf16.mxu1 %v10086_v52 }
 0x47c   :  { %8877 = vmatmul.mubr.msk.bf16.gmra.mrb[16].mxu1 %vm11850_vm4, %v12748_v62 }
 0x47d   :  { %8880 = vmatprep.mubr.msk.bf16.mxu1 %vm11850_vm4, %v11791_v55  ;;  %6700 = vmatpush1.bf16.msra.mxu1 %v10084_v6  ;;  %v12749_v55 = vld [vmem:[#allocation81_spill] sm:$0xff] }
 0x47e   :  { %6701 = vmatprep.subr.bf16.mxu1 %v10089_v10  ;;  %v12130_v52 = vpop.f32.mrb[72].mxu0  ;;  %v10093_v10 = vld [vmem:[#allocation13 + $0x6b0] ss:$8 sps:$4 sm:$0xff]  }
 0x47f   :  { %v12132_v63 = vpop.f32.mrb[73].mxu0 }
 0x480   :  { %v12137_v62 = vpop.f32.mrb[74].mxu0 }
 0x481   :  { %6702 = vmatpush1.bf16.msra.mxu1 %v10087_v9  ;;  %v12142_v6 = vpop.f32.mrb[75].mxu0  ;;  %v10098_v9 = vld [vmem:[#allocation13 + $0x6c4] ss:$8 sps:$4 sm:$0xff]  }
 0x482   :  { %6703 = vmatprep.subr.bf16.mxu1 %v10092_v5  ;;  %v10096_v5 = vld [vmem:[#allocation13 + $0x6c0] ss:$8 sps:$4 sm:$0xff]  }
 0x484   :  { %8883 = vmatmul.mubr.msk.bf16.gmra.mrb[20].mxu1 %vm11850_vm4, %v11797_v3  ;;  %v12750_v3 = vld [vmem:[#allocation82_spill] sm:$0xff] }
 0x485   :  { %8886 = vmatprep.mubr.msk.bf16.mxu1 %vm11850_vm4, %v12749_v55  ;;  %6704 = vmatpush1.bf16.msra.mxu1 %v10090_v8  ;;  %v10099_v8 = vld [vmem:[#allocation13 + $0x6d0] ss:$8 sps:$4 sm:$0xff]   ;;  %v10104_v55 = vld [vmem:[#allocation13 + $0x6e4] ss:$8 sps:$4 sm:$0xff]  }
 0x486   :  { %6705 = vmatprep.subr.bf16.mxu1 %v10095_v43  ;;  %v12144_v16 = vpop.f32.mrb[76].mxu0 }
 0x487   :  { %v12146_v26 = vpop.f32.mrb[77].mxu0 }
 0x488   :  { %v12151_v39 = vpop.f32.mrb[78].mxu0 }
 0x489   :  { %6706 = vmatpush1.bf16.msra.mxu1 %v10093_v10  ;;  %v12156_v43 = vpop.f32.mrb[79].mxu0  ;;  %v10102_v10 = vld [vmem:[#allocation13 + $0x6e0] ss:$8 sps:$4 sm:$0xff]  }
 0x48a   :  { %6707 = vmatprep.subr.bf16.mxu1 %v10098_v9  ;;  %v10107_v9 = vld [vmem:[#allocation13 + $0x6f4] ss:$8 sps:$4 sm:$0xff]  }
 0x48c   :  { %8889 = vmatmul.mubr.msk.bf16.gmra.mrb[24].mxu1 %vm11850_vm4, %v12750_v3  ;;  %v12751_v3 = vld [vmem:[#allocation30_spill] sm:$0xff] }
 0x48d   :  { %8892 = vmatprep.mubr.msk.bf16.mxu1 %vm11850_vm4, %v11818_v21  ;;  %6708 = vmatpush1.bf16.msra.mxu1 %v10096_v5  ;;  %v10105_v21 = vld [vmem:[#allocation13 + $0x6f0] ss:$8 sps:$4 sm:$0xff]   ;;  %v10110_v5 = vld [vmem:[#allocation13 + $0x704] ss:$8 sps:$4 sm:$0xff]  }
 0x48e   :  { %6709 = vmatprep.subr.bf16.mxu1 %v10101_v54  ;;  %v10113_v54 = vld [vmem:[#allocation13 + $0x714] ss:$8 sps:$4 sm:$0xff]  }
 0x491   :  { %6710 = vmatpush1.bf16.msra.mxu1 %v10099_v8  ;;  %v12752_v8 = vld [vmem:[#allocation33_spill] sm:$0xff] }
 0x492   :  { %6711 = vmatprep.subr.bf16.mxu1 %v10104_v55  ;;  %v12753_v55 = vld [vmem:[#allocation35_spill] sm:$0xff] }
 0x494   :  { %8895 = vmatmul.mubr.msk.bf16.gmra.mrb[28].mxu1 %vm11850_vm4, %v11822_v17  ;;  %v10111_v17 = vld [vmem:[#allocation13 + $0x710] ss:$8 sps:$4 sm:$0xff]  }
 0x495   :  { %6712 = vmatpush1.bf16.msra.mxu1 %v10102_v10  ;;  %8900 = vmatprep.mubr.msk.bf16.mxu1 %vm11191_vm3, %v12751_v3  ;;  %v10116_v10 = vld [vmem:[#allocation13 + $0x724] ss:$8 sps:$4 sm:$0xff]   ;;  %v10114_v3 = vld [vmem:[#allocation13 + $0x720] ss:$8 sps:$4 sm:$0xff]  }
 0x496   :  { %6713 = vmatprep.subr.bf16.mxu1 %v10107_v9  ;;  %v10119_v9 = vld [vmem:[#allocation13 + $0x734] ss:$8 sps:$4 sm:$0xff]  }
 0x499   :  { %6714 = vmatpush1.bf16.msra.mxu1 %v10105_v21  ;;  %v12754_v21 = vld [vmem:[#allocation37_spill] sm:$0xff] }
 0x49a   :  { %6796 = vmatprep.subr.bf16.mxu1 %v10110_v5  ;;  %v12755_v5 = vld [vmem:[#allocation39_spill] sm:$0xff] }
 0x49c   :  { %8905 = vmatmul.mubr.msk.bf16.vlgmr.msra.gmra.mrb[0].mxu1 %vm11191_vm3, %v12752_v8  ;;  %v10117_v8 = vld [vmem:[#allocation13 + $0x730] ss:$8 sps:$4 sm:$0xff]  }
 0x49d   :  { %8910 = vmatprep.mubr.msk.bf16.mxu1 %vm11191_vm3, %v12753_v55  ;;  %6797 = vmatpush1.bf16.msra.mxu1 %v10108_v30  ;;  %v10122_v55 = vld [vmem:[#allocation13 + $0x744] ss:$8 sps:$4 sm:$0xff]   ;;  %v10120_v30 = vld [vmem:[#allocation13 + $0x740] ss:$8 sps:$4 sm:$0xff]  }
 0x49e   :  { %6798 = vmatprep.subr.bf16.mxu1 %v10113_v54  ;;  %v10125_v54 = vld [vmem:[#allocation13 + $0x754] ss:$8 sps:$4 sm:$0xff]  }
 0x4a1   :  { %6799 = vmatpush1.bf16.msra.mxu1 %v10111_v17  ;;  %v12176_v17 = vld [vmem:[#allocation2] sm:$0xff] }
 0x4a2   :  { %6800 = vmatprep.subr.bf16.mxu1 %v10116_v10  ;;  %v8383_v10 = vcombine.high %v11824_v46, %v12176_v17 }
 0x4a4   :  { %8915 = vmatmul.mubr.msk.bf16.gmra.mrb[4].mxu1 %vm11191_vm3, %v12754_v21  ;;  %v10123_v21 = vld [vmem:[#allocation13 + $0x750] ss:$8 sps:$4 sm:$0xff]  }
 0x4a5   :  { %8920 = vmatprep.mubr.msk.bf16.mxu1 %vm11191_vm3, %v12755_v5  ;;  %6801 = vmatpush1.bf16.msra.mxu1 %v10114_v3  ;;  %v10128_v3 = vld [vmem:[#allocation13 + $0x764] ss:$8 sps:$4 sm:$0xff]   ;;  %v8382_v5 = vcombine.low %v11824_v46, %v12176_v17 }
 0x4a6   :  { %6802 = vmatprep.subr.bf16.mxu1 %v10119_v9  ;;  %v10126_v9 = vld [vmem:[#allocation13 + $0x760] ss:$8 sps:$4 sm:$0xff]  }
 0x4a7   :  { %v12759_v46 = vld [vmem:[#allocation47_spill] sm:$0xff] }
 0x4a9   :  { %6803 = vmatpush1.bf16.msra.mxu1 %v10117_v8  ;;  %v10131_v8 = vld [vmem:[#allocation13 + $0x774] ss:$8 sps:$4 sm:$0xff]  }
 0x4aa   :  { %6804 = vmatprep.subr.bf16.mxu1 %v10122_v55  ;;  %v12757_v55 = vld [vmem:[#allocation43_spill] sm:$0xff] }
 0x4ac   :  { %8925 = vmatmul.mubr.msk.bf16.gmra.mrb[8].mxu1 %vm11191_vm3, %v12756_v18  ;;  %v10134_v18 = vld [vmem:[#allocation13 + $0x784] ss:$8 sps:$4 sm:$0xff]  }
 0x4ad   :  { %6745 = vmatprep.mubr.bf16.mxu1 %v8383_v10  ;;  %6805 = vmatpush1.bf16.msra.mxu1 %v10120_v30  ;;  %v10132_v30 = vld [vmem:[#allocation13 + $0x780] ss:$8 sps:$4 sm:$0xff]  }
 0x4ae   :  { %6806 = vmatprep.subr.bf16.mxu1 %v10125_v54  ;;  %v10137_v54 = vld [vmem:[#allocation13 + $0x794] ss:$8 sps:$4 sm:$0xff]   ;;  %v12758_v10 = vld [vmem:[#allocation46_spill] sm:$0xff] }
 0x4b1   :  { %6807 = vmatpush1.bf16.msra.mxu1 %v10123_v21  ;;  %v10135_v21 = vld [vmem:[#allocation13 + $0x790] ss:$8 sps:$4 sm:$0xff]  }
 0x4b2   :  { %6808 = vmatprep.subr.bf16.mxu1 %v10128_v3  ;;  %v10140_v3 = vld [vmem:[#allocation13 + $0x7a4] ss:$8 sps:$4 sm:$0xff]  }
 0x4b4   :  { %6746 = vmatmul.mubr.bf16.gmra.mrb[12].mxu1 %v8382_v5  ;;  %v10143_v5 = vld [vmem:[#allocation13 + $0x7b4] ss:$8 sps:$4 sm:$0xff]  }
 0x4b5   :  { %8930 = vmatprep.mubr.msk.bf16.mxu1 %vm11191_vm3, %v12757_v55  ;;  %6809 = vmatpush1.bf16.msra.mxu1 %v10126_v9  ;;  %v10138_v9 = vld [vmem:[#allocation13 + $0x7a0] ss:$8 sps:$4 sm:$0xff]   ;;  %v10141_v55 = vld [vmem:[#allocation13 + $0x7b0] ss:$8 sps:$4 sm:$0xff]  }
 0x4b6   :  { %6810 = vmatprep.subr.bf16.mxu1 %v10131_v8  ;;  %v12761_v8 = vld [vmem:[#allocation51_spill] sm:$0xff] }
 0x4b9   :  { %6811 = vmatpush1.bf16.msra.mxu1 %v10129_v49  ;;  %v12760_v49 = vld [vmem:[#allocation50_spill] sm:$0xff] }
 0x4ba   :  { %6812 = vmatprep.subr.bf16.mxu1 %v10134_v18  ;;  %v10146_v18 = vld [vmem:[#allocation13 + $0x7c4] ss:$8 sps:$4 sm:$0xff]  }
 0x4bc   :  { %8935 = vmatmul.mubr.msk.bf16.gmra.mrb[16].mxu1 %vm11191_vm3, %v12758_v10  ;;  %v8407_v10 = vcombine.high %v11829_v34, %v12176_v17 }
 0x4bd   :  { %8940 = vmatprep.mubr.msk.bf16.mxu1 %vm11191_vm3, %v12759_v46  ;;  %6813 = vmatpush1.bf16.msra.mxu1 %v10132_v30  ;;  %v10144_v30 = vld [vmem:[#allocation13 + $0x7c0] ss:$8 sps:$4 sm:$0xff]   ;;  %v10147_v46 = vld [vmem:[#allocation13 + $0x7d0] ss:$8 sps:$4 sm:$0xff]  }
 0x4be   :  { %6814 = vmatprep.subr.bf16.mxu1 %v10137_v54  ;;  %v10149_v54 = vld [vmem:[#allocation13 + $0x7d4] ss:$8 sps:$4 sm:$0xff]  }
 0x4c1   :  { %6815 = vmatpush1.bf16.msra.mxu1 %v10135_v21  ;;  %v10152_v21 = vld [vmem:[#allocation13 + $0x7e4] ss:$8 sps:$4 sm:$0xff]  }
 0x4c2   :  { %6816 = vmatprep.subr.bf16.mxu1 %v10140_v3  ;;  %v10150_v3 = vld [vmem:[#allocation13 + $0x7e0] ss:$8 sps:$4 sm:$0xff]  }
 0x4c4   :  { %8945 = vmatmul.mubr.msk.bf16.gmra.mrb[20].mxu1 %vm11191_vm3, %v12760_v49  ;;  %v12762_v49 = vld [vmem:[#allocation27_spill] sm:$0xff] }
 0x4c5   :  { %8950 = vmatprep.mubr.msk.bf16.mxu1 %vm11191_vm3, %v12761_v8  ;;  %6817 = vmatpush1.bf16.msra.mxu1 %v10138_v9  ;;  %v8406_v9 = vcombine.low %v11829_v34, %v12176_v17  ;;  %v10153_v8 = vld [vmem:[#allocation13 + $0x7f0] ss:$8 sps:$4 sm:$0xff]  }
 0x4c6   :  { %6818 = vmatprep.subr.bf16.mxu1 %v10143_v5  ;;  %v10155_v5 = vld [vmem:[#allocation13 + $0x7f4] ss:$8 sps:$4 sm:$0xff]   ;;  %v10168_v34 = vld [vmem:[#allocation13 + $0x810] ss:$8 sps:$4 sm:$0xff]  }
 0x4c9   :  { %6819 = vmatpush1.bf16.msra.mxu1 %v10141_v55  ;;  %v12764_v55 = vld [vmem:[#allocation31_spill] sm:$0xff] }
 0x4ca   :  { %6820 = vmatprep.subr.bf16.mxu1 %v10146_v18  ;;  %v10166_v18 = vld [vmem:[#allocation13 + $0x800] ss:$8 sps:$4 sm:$0xff]  }
 0x4cc   :  { %8955 = vmatmul.mubr.msk.bf16.gmra.mrb[24].mxu1 %vm11191_vm3, %v11459_v24  ;;  %v12763_v24 = vld [vmem:[#allocation28_spill] sm:$0xff] }
 0x4cd   :  { %6785 = vmatprep.mubr.bf16.mxu1 %v8407_v10  ;;  %6821 = vmatpush1.bf16.msra.mxu1 %v10144_v30  ;;  %v10167_v30 = vld [vmem:[#allocation13 + $0x814] ss:$8 sps:$4 sm:$0xff]  }
 0x4ce   :  { %6822 = vmatprep.subr.bf16.mxu1 %v10149_v54  ;;  %v10169_v54 = vld [vmem:[#allocation13 + $0x824] ss:$8 sps:$4 sm:$0xff]   ;;  %v12765_v10 = vld [vmem:[#allocation36_spill] sm:$0xff] }
 0x4d1   :  { %6823 = vmatpush1.bf16.msra.mxu1 %v10147_v46  ;;  %v12766_v46 = vld [vmem:[#allocation38_spill] sm:$0xff] }
 0x4d2   :  { %6824 = vmatprep.subr.bf16.mxu1 %v10152_v21  ;;  %v10170_v21 = vld [vmem:[#allocation13 + $0x820] ss:$8 sps:$4 sm:$0xff]  }
 0x4d4   :  { %6786 = vmatmul.mubr.bf16.gmra.mrb[28].mxu1 %v8406_v9  ;;  %v10172_v9 = vld [vmem:[#allocation13 + $0x830] ss:$8 sps:$4 sm:$0xff]  }
 0x4d5   :  { %6825 = vmatpush1.bf16.msra.mxu1 %v10150_v3  ;;  %6828 = vmatprep.mubr.bf16.mxu1 %v12762_v49  ;;  %v10171_v3 = vld [vmem:[#allocation13 + $0x834] ss:$8 sps:$4 sm:$0xff]   ;;  %v8385_v49 = vcombine.high %v11833_v42, %v12176_v17 }
 0x4d6   :  { %6826 = vmatprep.subr.bf16.mxu1 %v10155_v5  ;;  %v10173_v5 = vld [vmem:[#allocation13 + $0x844] ss:$8 sps:$4 sm:$0xff]  }
 0x4d9   :  { %6827 = vmatpush1.bf16.msra.mxu1 %v10153_v8  ;;  %v12767_v8 = vld [vmem:[#allocation40_spill] sm:$0xff] }
 0x4da   :  { %8992 = vmatprep.subr.bf16.mxu1 %v10165_v15  ;;  %v10174_v15 = vld [vmem:[#allocation13 + $0x840] ss:$8 sps:$4 sm:$0xff]  }
 0x4dc   :  { %6829 = vmatmul.mubr.bf16.vlgmr.msra.gmra.mrb[0].mxu1 %v12763_v24  ;;  %v10175_v24 = vld [vmem:[#allocation13 + $0x854] ss:$8 sps:$4 sm:$0xff]  }
 0x4dd   :  { %6838 = vmatprep.mubr.bf16.mxu1 %v12764_v55  ;;  %9008 = vmatpush1.bf16.msra.mxu1 %v10166_v18  ;;  %v10176_v55 = vld [vmem:[#allocation13 + $0x850] ss:$8 sps:$4 sm:$0xff]   ;;  %v8384_v18 = vcombine.low %v11833_v42, %v12176_v17  ;;  %v10183_v42 = vld [vmem:[#allocation13 + $0x894] ss:$8 sps:$4 sm:$0xff]  }
 0x4de   :  { %8993 = vmatprep.subr.bf16.mxu1 %v10167_v30  ;;  %v10177_v30 = vld [vmem:[#allocation13 + $0x864] ss:$8 sps:$4 sm:$0xff]  }
 0x4e1   :  { %9009 = vmatpush1.bf16.msra.mxu1 %v10168_v34  ;;  %v12768_v34 = vld [vmem:[#allocation42_spill] sm:$0xff] }
 0x4e2   :  { %8994 = vmatprep.subr.bf16.mxu1 %v10169_v54  ;;  %v10178_v54 = vld [vmem:[#allocation13 + $0x860] ss:$8 sps:$4 sm:$0xff]  }
 0x4e4   :  { %6839 = vmatmul.mubr.bf16.gmra.mrb[4].mxu1 %v12765_v10  ;;  %v10179_v10 = vld [vmem:[#allocation13 + $0x874] ss:$8 sps:$4 sm:$0xff]  }
 0x4e5   :  { %6848 = vmatprep.mubr.bf16.mxu1 %v12766_v46  ;;  %9010 = vmatpush1.bf16.msra.mxu1 %v10170_v21  ;;  %v10180_v46 = vld [vmem:[#allocation13 + $0x870] ss:$8 sps:$4 sm:$0xff]   ;;  %v10181_v21 = vld [vmem:[#allocation13 + $0x884] ss:$8 sps:$4 sm:$0xff]  }
 0x4e6   :  { %8995 = vmatprep.subr.bf16.mxu1 %v10171_v3  ;;  %v12769_v3 = vld [vmem:[#allocation44_spill] sm:$0xff] }
 0x4e9   :  { %9011 = vmatpush1.bf16.msra.mxu1 %v10172_v9  ;;  %v12770_v9 = vld [vmem:[#allocation45_spill] sm:$0xff] }
 0x4ea   :  { %8996 = vmatprep.subr.bf16.mxu1 %v10173_v5  ;;  %v10182_v5 = vld [vmem:[#allocation13 + $0x880] ss:$8 sps:$4 sm:$0xff]  }
 0x4ec   :  { %6849 = vmatmul.mubr.bf16.gmra.mrb[8].mxu1 %v12767_v8  ;;  %v10185_v8 = vld [vmem:[#allocation13 + $0x8a4] ss:$8 sps:$4 sm:$0xff]  }
 0x4ed   :  { %6858 = vmatprep.mubr.bf16.mxu1 %v8385_v49  ;;  %9012 = vmatpush1.bf16.msra.mxu1 %v10174_v15  ;;  %v10184_v49 = vld [vmem:[#allocation13 + $0x890] ss:$8 sps:$4 sm:$0xff]  }
 0x4ee   :  { %8997 = vmatprep.subr.bf16.mxu1 %v10175_v24  ;;  %v12771_v15 = vld [vmem:[#allocation48_spill] sm:$0xff]  ;;  %v12772_v24 = vld [vmem:[#allocation49_spill] sm:$0xff] }
 0x4f1   :  { %9013 = vmatpush1.bf16.msra.mxu1 %v10176_v55  ;;  %v10186_v55 = vld [vmem:[#allocation13 + $0x8a0] ss:$8 sps:$4 sm:$0xff]  }
 0x4f2   :  { %8998 = vmatprep.subr.bf16.mxu1 %v10177_v30  ;;  %v10188_v30 = vld [vmem:[#allocation13 + $0x8b0] ss:$8 sps:$4 sm:$0xff]  }
 0x4f4   :  { %6859 = vmatmul.mubr.bf16.gmra.mrb[12].mxu1 %v8384_v18  ;;  %v10187_v18 = vld [vmem:[#allocation13 + $0x8b4] ss:$8 sps:$4 sm:$0xff]  }
 0x4f5   :  { %6868 = vmatprep.mubr.bf16.mxu1 %v12768_v34  ;;  %9014 = vmatpush1.bf16.msra.mxu1 %v10178_v54  ;;  %v10189_v34 = vld [vmem:[#allocation13 + $0x8c4] ss:$8 sps:$4 sm:$0xff]  }
 0x4f6   :  { %8999 = vmatprep.subr.bf16.mxu1 %v10179_v10  ;;  %v12773_v54 = vld [vmem:[#allocation83_spill] sm:$0xff] }
 0x4f7   :  { %v8409_v10 = vcombine.high %v12773_v54, %v12176_v17 }
 0x4f9   :  { %9015 = vmatpush1.bf16.msra.mxu1 %v10180_v46  ;;  %v10190_v46 = vld [vmem:[#allocation13 + $0x8c0] ss:$8 sps:$4 sm:$0xff]  }
 0x4fa   :  { %9000 = vmatprep.subr.bf16.mxu1 %v10181_v21  ;;  %v10191_v21 = vld [vmem:[#allocation13 + $0x8d4] ss:$8 sps:$4 sm:$0xff]  }
 0x4fc   :  { %6869 = vmatmul.mubr.bf16.gmra.mrb[16].mxu1 %v12769_v3  ;;  %v10192_v3 = vld [vmem:[#allocation13 + $0x8d0] ss:$8 sps:$4 sm:$0xff]  }
 0x4fd   :  { %6878 = vmatprep.mubr.bf16.mxu1 %v12770_v9  ;;  %9016 = vmatpush1.bf16.msra.mxu1 %v10182_v5  ;;  %v8408_v9 = vcombine.low %v12773_v54, %v12176_v17  ;;  %v10193_v5 = vld [vmem:[#allocation13 + $0x8e4] ss:$8 sps:$4 sm:$0xff]  }
 0x4fe   :  { %9001 = vmatprep.subr.bf16.mxu1 %v10183_v42  ;;  %v10194_v42 = vld [vmem:[#allocation13 + $0x8e0] ss:$8 sps:$4 sm:$0xff]  }
 0x501   :  { %9017 = vmatpush1.bf16.msra.mxu1 %v10184_v49  ;;  %v10196_v49 = vld [vmem:[#allocation13 + $0x8f0] ss:$8 sps:$4 sm:$0xff]  }
 0x502   :  { %9002 = vmatprep.subr.bf16.mxu1 %v10185_v8 }
 0x504   :  { %6879 = vmatmul.mubr.bf16.gmra.mrb[20].mxu1 %v12771_v15  ;;  %v12774_v15 = vld [vmem:[#allocation23_spill] sm:$0xff] }
 0x505   :  { %6888 = vmatprep.mubr.bf16.mxu1 %v12772_v24  ;;  %9018 = vmatpush1.bf16.msra.mxu1 %v10186_v55 }
 0x506   :  { %9003 = vmatprep.subr.bf16.mxu1 %v10187_v18  ;;  %v12775_v18 = vld [vmem:[#allocation24_spill] sm:$0xff] }
 0x509   :  { %9019 = vmatpush1.bf16.msra.mxu1 %v10188_v30 }
 0x50a   :  { %9004 = vmatprep.subr.bf16.mxu1 %v10189_v34 }
 0x50c   :  { %6889 = vmatmul.mubr.bf16.gmra.mrb[24].mxu1 %v12687_v61  ;;  %v10195_v61 = vld [vmem:[#allocation13 + $0x8f4] ss:$8 sps:$4 sm:$0xff]  }
 0x50d   :  { %6898 = vmatprep.mubr.bf16.mxu1 %v8409_v10  ;;  %9020 = vmatpush1.bf16.msra.mxu1 %v10190_v46 }
 0x50e   :  { %9005 = vmatprep.subr.bf16.mxu1 %v10191_v21 }
 0x511   :  { %9021 = vmatpush1.bf16.msra.mxu1 %v10192_v3 }
 0x512   :  { %9006 = vmatprep.subr.bf16.mxu1 %v10193_v5  ;;  %v10395_v5 = vmov 572653568  }
 0x514   :  { %6899 = vmatmul.mubr.bf16.gmra.mrb[28].mxu1 %v8408_v9 }
 0x515   :  { %9022 = vmatpush1.bf16.msra.mxu1 %v10194_v42  ;;  %8976 = vmatprep.mubr.msk.bf16.mxu1 %vm11850_vm4, %v11530_v59  ;;  %v8411_v59 = vcombine.high %v11846_v41, %v12176_v17  ;;  %v7499_v42 = vunpack.c.l.s4 %v10395_v5 }
 0x516   :  { %9007 = vmatprep.subr.bf16.mxu1 %v10195_v61 }
 0x519   :  { %9023 = vmatpush1.bf16.msra.mxu1 %v10196_v49 }
 0x51c   :  { %8979 = vmatmul.mubr.msk.bf16.vlgmr.msra.gmra.mrb[16].mxu1 %vm11850_vm4, %v11548_v36  ;;  %v8410_v36 = vcombine.low %v11846_v41, %v12176_v17  ;;  %v10394_v17 = vmov 1983009808  }
 0x51d   :  { %8982 = vmatprep.mubr.msk.bf16.mxu1 %vm11850_vm4, %v12695_v4  ;;  %v7054_v4 = vld [vmem:[#allocation15] sm:$0x3]  ;;  %v7165_v54 = vunpack.c.l.s4 %v10394_v17 }
 0x51e   :  { %v12251_v24 = vrot.slane %v7054_v4, %v12774_v15  ;;  %v12255_v30 = vrot.slane %v7054_v4, %v12775_v18 }
 0x524   :  { %8985 = vmatmul.mubr.msk.bf16.gmra.mrb[20].mxu1 %vm11850_vm4, %v12696_v47 }
 0x525   :  { %8988 = vmatprep.mubr.msk.bf16.mxu1 %vm11850_vm4, %v12697_v53 }
 0x52c   :  { %8991 = vmatmul.mubr.msk.bf16.gmra.mrb[24].mxu1 %vm11850_vm4, %v12698_v60 }
 0x52d   :  { %7011 = vmatprep.mubr.bf16.mxu1 %v8411_v59 }
 0x534   :  { %7012 = vmatmul.mubr.bf16.gmra.mrb[28].mxu1 %v8410_v36 }
 0x5af   :  { %v6830_v8 = vpop.f32.mrb[0].mxu1 }
 0x5b0   :  { %v9024_v47 = vadd.f32 %v6830_v8, %v11990_v56  ;;  %v6832_v53 = vpop.f32.mrb[1].mxu1 }
 0x5b1   :  { %v9026_v55 = vadd.f32 %v6832_v53, %v11992_v32  ;;  %v6834_v45 = vpop.f32.mrb[2].mxu1 }
 0x5b2   :  { %v9025_v60 = vadd.f32 %v9024_v47, %v12102_v28  ;;  %v9028_v34 = vadd.f32 %v6834_v45, %v11994_v7  ;;  %v6836_v41 = vpop.f32.mrb[3].mxu1  ;;  %v7166_v28 = vunpack.c.0.s8 %v7165_v54 }
 0x5b3   :  { %v9027_v10 = vadd.f32 %v9026_v55, %v12104_v31  ;;  %v9030_v56 = vadd.f32 %v6836_v41, %v11999_v58 }
 0x5b4   :  { %v7066_v46 = vadd.f32 %v9025_v60, %v12251_v24  ;;  %v9029_v21 = vadd.f32 %v9028_v34, %v12109_v20  ;;  %v7500_v60 = vunpack.c.0.s8 %v7499_v42 }
 0x5b5   :  { %v7067_v32 = vadd.f32 %v9027_v10, %v12255_v30  ;;  %v9031_v3 = vadd.f32 %v9030_v56, %v12114_v33  ;;  %v12776_v33 = vld [vmem:[#allocation22_spill] sm:$0xff] }
 0x5b6   :  { %v7068_v9 = vadd.f32 %v9029_v21, %v12251_v24  ;;  %v7098_v49 = vmax.f32 %v7066_v46, 0.0  ;;  %v12270_v15 = vsub.s32 %v7166_v28, %v12776_v33 }
 0x5b7   :  { %v7069_v7 = vadd.f32 %v9031_v3, %v12255_v30  ;;  %v6840_v61 = vpop.f32.mrb[4].mxu1  ;;  %v7099_v36 = vmax.f32 %v7067_v32, 0.0 }
 0x5b8   :  { %v7100_v31 = vmax.f32 %v7068_v9, 0.0  ;;  %v9032_v58 = vadd.f32 %v6840_v61, %v12004_v51  ;;  %v6842_v59 = vpop.f32.mrb[5].mxu1 }
 0x5b9   :  { %v7101_v4 = vmax.f32 %v7069_v7, 0.0  ;;  %v9034_v20 = vadd.f32 %v6842_v59, %v12006_v29  ;;  %v6844_v8 = vpop.f32.mrb[6].mxu1 }
 0x5ba   :  { %v7130_v47 = vmax.f32 %v7098_v49, %v7100_v31  ;;  %v9033_v53 = vadd.f32 %v9032_v58, %v12116_v12  ;;  %v9036_v55 = vadd.f32 %v6844_v8, %v12008_v11  ;;  %v6846_v18 = vpop.f32.mrb[7].mxu1 }
 0x5bb   :  { %v7131_v45 = vmax.f32 %v7099_v36, %v7101_v4  ;;  %v9035_v34 = vadd.f32 %v9034_v20, %v12118_v2  ;;  %v9038_v51 = vadd.f32 %v6846_v18, %v12013_v38  ;;  %v12284_v2 = vsub.s32 %v7500_v60, %v12776_v33 }
 0x5bc   :  { %v7070_v41 = vadd.f32 %v9033_v53, %v12251_v24  ;;  %v9037_v29 = vadd.f32 %v9036_v55, %v12123_v57 }
 0x5bd   :  { %v7162_v17 = vcombine.low %v7130_v47, %v7131_v45  ;;  %v7163_v54 = vcombine.high %v7130_v47, %v7131_v45  ;;  %v7071_v10 = vadd.f32 %v9035_v34, %v12255_v30  ;;  %v9039_v56 = vadd.f32 %v9038_v51, %v12128_v22 }
 0x5be   :  { %v7072_v11 = vadd.f32 %v9037_v29, %v12251_v24  ;;  %v7102_v21 = vmax.f32 %v7070_v41, 0.0 }
 0x5bf   :  { %v7170_v12 = vrot.slane %v7162_v17, %v12270_v15  ;;  %v7177_v46 = vrot.slane %v7163_v54, %v12270_v15  ;;  %v7073_v38 = vadd.f32 %v9039_v56, %v12255_v30  ;;  %v6850_v57 = vpop.f32.mrb[8].mxu1  ;;  %v7103_v32 = vmax.f32 %v7071_v10, 0.0 }
 0x5c0   :  { %v7104_v3 = vmax.f32 %v7072_v11, 0.0  ;;  %v9040_v22 = vadd.f32 %v6850_v57, %v12018_v1  ;;  %v6852_v9 = vpop.f32.mrb[9].mxu1 }
 0x5c1   :  { %v7178_v28 = vcombine.high %v7170_v12, %v7170_v12  ;;  %v7179_v7 = vcombine.high %v7177_v46, %v7177_v46  ;;  %v8508_v5 = vrot.slane %v7170_v12, 9  ;;  %v8510_v42 = vrot.slane %v7177_v46, 9  ;;  %v6854_v61 = vpop.f32.mrb[10].mxu1 }
 0x5c2   :  { %v7132_v49 = vmax.f32 %v7102_v21, %v7104_v3  ;;  %v7105_v31 = vmax.f32 %v7073_v38, 0.0  ;;  %v9041_v58 = vadd.f32 %v9040_v22, %v12130_v52  ;;  %v9042_v59 = vadd.f32 %v6852_v9, %v12020_v50  ;;  %v6856_v36 = vpop.f32.mrb[11].mxu1 }
 0x5c3   :  { %v8509_v4 = vrot.slane %v7178_v28, 9  ;;  %v8511_v20 = vrot.slane %v7179_v7, 9  ;;  %v7434_v8 = vmax.f32 %v7170_v12, %v8508_v5  ;;  %v7436_v47 = vmax.f32 %v7177_v46, %v8510_v42 }
 0x5c4   :  { %v7133_v1 = vmax.f32 %v7103_v32, %v7105_v31  ;;  %v7074_v33 = vadd.f32 %v9041_v58, %v12251_v24  ;;  %v9043_v53 = vadd.f32 %v9042_v59, %v12132_v63  ;;  %v9044_v55 = vadd.f32 %v6854_v61, %v12022_v44 }
 0x5c5   :  { %v7435_v18 = vmax.f32 %v7178_v28, %v8509_v4  ;;  %v7437_v45 = vmax.f32 %v7179_v7, %v8511_v20  ;;  %v7504_v60 = vrot.slane %v7434_v8, %v12284_v2  ;;  %v7518_v52 = vrot.slane %v7436_v47, %v12284_v2 }
 0x5c6   :  { %v7180_v50 = vcombine.low %v7132_v49, %v7133_v1  ;;  %v7181_v34 = vcombine.high %v7132_v49, %v7133_v1  ;;  %v7106_v51 = vmax.f32 %v7074_v33, 0.0  ;;  %v7075_v41 = vadd.f32 %v9043_v53, %v12255_v30 }
 0x5c7   :  { %v7511_v29 = vrot.slane %v7435_v18, %v12284_v2  ;;  %v7525_v17 = vrot.slane %v7437_v45, %v12284_v2  ;;  %v9045_v54 = vadd.f32 %v9044_v55, %v12137_v62  ;;  %v9046_v63 = vadd.f32 %v6856_v36, %v12027_v0  ;;  %v6860_v44 = vpop.f32.mrb[12].mxu1 }
 0x5c8   :  { %v7188_v10 = vrot.slane %v7180_v50, %v12270_v15  ;;  %v7195_v56 = vrot.slane %v7181_v34, %v12270_v15  ;;  %v7107_v11 = vmax.f32 %v7075_v41, 0.0  ;;  %v9048_v12 = vadd.f32 %v6860_v44, %v12032_v14  ;;  %v6862_v46 = vpop.f32.mrb[13].mxu1 }
 0x5c9   :  { %v7723_v38 = vsel %vm7722_vm5, %v7511_v29, %v7504_v60  ;;  %v7076_v57 = vadd.f32 %v9045_v54, %v12251_v24  ;;  %v9047_v21 = vadd.f32 %v9046_v63, %v12142_v6  ;;  %v9050_v32 = vadd.f32 %v6862_v46, %v12034_v37  ;;  %v6864_v62 = vpop.f32.mrb[14].mxu1 }
 0x5ca   :  { %v7725_v0 = vsel %vm7724_vm6, %v7511_v29, %v7723_v38  ;;  %v7196_v3 = vcombine.high %v7188_v10, %v7188_v10  ;;  %v7197_v22 = vcombine.high %v7195_v56, %v7195_v56  ;;  %v8512_v9 = vrot.slane %v7188_v10, 9  ;;  %v6866_v28 = vpop.f32.mrb[15].mxu1 }
 0x5cb   :  { %v7727_v7 = vsel %vm7726_vm7, %v7518_v52, %v7725_v0  ;;  %v8514_v5 = vrot.slane %v7195_v56, 9  ;;  %v7108_v14 = vmax.f32 %v7076_v57, 0.0  ;;  %v7077_v42 = vadd.f32 %v9047_v21, %v12255_v30 }
 0x5cc   :  { %v7729_v61 = vsel %vm7728_vm8, %v7518_v52, %v7727_v7  ;;  %v8513_v49 = vrot.slane %v7196_v3, 9  ;;  %v8515_v31 = vrot.slane %v7197_v22, 9  ;;  %v7438_v6 = vmax.f32 %v7188_v10, %v8512_v9 }
 0x5cd   :  { %v7731_v37 = vsel %vm7730_vm9, %v7525_v17, %v7729_v61  ;;  %v7440_v58 = vmax.f32 %v7195_v56, %v8514_v5  ;;  %v7134_v59 = vmax.f32 %v7106_v51, %v7108_v14  ;;  %v7109_v36 = vmax.f32 %v7077_v42, 0.0 }
 0x5ce   :  { %v7733_v4 = vsel %vm7732_vm10, %v7525_v17, %v7731_v37  ;;  %v7439_v20 = vmax.f32 %v7196_v3, %v8513_v49  ;;  %v7441_v8 = vmax.f32 %v7197_v22, %v8515_v31  ;;  %v7532_v47 = vrot.slane %v7438_v6, %v12284_v2 }
 0x5cf   :  { %7784 = vst [vmem:[#allocation16] sm:$0xff] %v7733_v4  ;;  %v7135_v1 = vmax.f32 %v7107_v11, %v7109_v36  ;;  %v9049_v33 = vadd.f32 %v9048_v12, %v12144_v16  ;;  %v9051_v53 = vadd.f32 %v9050_v32, %v12146_v26  ;;  %v7546_v18 = vrot.slane %v7440_v58, %v12284_v2 }
 0x5d0   :  { %v7539_v55 = vrot.slane %v7439_v20, %v12284_v2  ;;  %v9052_v45 = vadd.f32 %v6864_v62, %v12036_v23  ;;  %v9054_v60 = vadd.f32 %v6866_v28, %v12041_v27  ;;  %v7553_v41 = vrot.slane %v7441_v8, %v12284_v2 }
 0x5d1   :  { %v7198_v52 = vcombine.low %v7134_v59, %v7135_v1  ;;  %v7199_v50 = vcombine.high %v7134_v59, %v7135_v1  ;;  %v7078_v34 = vadd.f32 %v9049_v33, %v12251_v24  ;;  %v7079_v51 = vadd.f32 %v9051_v53, %v12255_v30 }
 0x5d2   :  { %v7734_v16 = vsel %vm7722_vm5, %v7539_v55, %v7532_v47  ;;  %v9053_v26 = vadd.f32 %v9052_v45, %v12151_v39  ;;  %v9055_v29 = vadd.f32 %v9054_v60, %v12156_v43 }
 0x5d3   :  { %v7735_v17 = vsel %vm7724_vm6, %v7539_v55, %v7734_v16  ;;  %v7206_v23 = vrot.slane %v7198_v52, %v12270_v15  ;;  %v7213_v27 = vrot.slane %v7199_v50, %v12270_v15  ;;  %v7110_v54 = vmax.f32 %v7078_v34, 0.0 }
 0x5d4   :  { %v7736_v63 = vsel %vm7726_vm7, %v7546_v18, %v7735_v17  ;;  %v7111_v44 = vmax.f32 %v7079_v51, 0.0  ;;  %v7080_v10 = vadd.f32 %v9053_v26, %v12251_v24  ;;  %v7081_v56 = vadd.f32 %v9055_v29, %v12255_v30 }
 0x5d5   :  { %v7737_v11 = vsel %vm7728_vm8, %v7546_v18, %v7736_v63  ;;  %v7214_v12 = vcombine.high %v7206_v23, %v7206_v23  ;;  %v7215_v39 = vcombine.high %v7213_v27, %v7213_v27  ;;  %v8516_v46 = vrot.slane %v7206_v23, 9 }
 0x5d6   :  { %v7738_v43 = vsel %vm7730_vm9, %v7553_v41, %v7737_v11  ;;  %v8518_v38 = vrot.slane %v7213_v27, 9  ;;  %v7112_v57 = vmax.f32 %v7080_v10, 0.0  ;;  %v7113_v21 = vmax.f32 %v7081_v56, 0.0 }
 0x5d7   :  { %v7739_v32 = vsel %vm7732_vm10, %v7553_v41, %v7738_v43  ;;  %v8517_v62 = vrot.slane %v7214_v12, 9  ;;  %v8519_v0 = vrot.slane %v7215_v39, 9  ;;  %v7442_v3 = vmax.f32 %v7206_v23, %v8516_v46 }
 0x5d8   :  { %7785 = vst [vmem:[#allocation16 + $0x8] sm:$0xff] %v7739_v32  ;;  %v7136_v22 = vmax.f32 %v7110_v54, %v7112_v57  ;;  %v7137_v9 = vmax.f32 %v7111_v44, %v7113_v21  ;;  %v7444_v7 = vmax.f32 %v7213_v27, %v8518_v38 }
 0x5d9   :  { %v7443_v28 = vmax.f32 %v7214_v12, %v8517_v62  ;;  %v7445_v42 = vmax.f32 %v7215_v39, %v8519_v0  ;;  %v7560_v61 = vrot.slane %v7442_v3, %v12284_v2 }
 0x5da   :  { %v7216_v5 = vcombine.low %v7136_v22, %v7137_v9  ;;  %v7217_v14 = vcombine.high %v7136_v22, %v7137_v9  ;;  %v7574_v37 = vrot.slane %v7444_v7, %v12284_v2 }
 0x5db   :  { %v7567_v49 = vrot.slane %v7443_v28, %v12284_v2  ;;  %v7581_v8 = vrot.slane %v7445_v42, %v12284_v2 }
 0x5dc   :  { %v7224_v31 = vrot.slane %v7216_v5, %v12270_v15  ;;  %v7231_v6 = vrot.slane %v7217_v14, %v12270_v15 }
 0x5dd   :  { %v7740_v58 = vsel %vm7722_vm5, %v7567_v49, %v7560_v61 }
 0x5de   :  { %v7741_v59 = vsel %vm7724_vm6, %v7567_v49, %v7740_v58  ;;  %v7232_v36 = vcombine.high %v7224_v31, %v7224_v31  ;;  %v7233_v4 = vcombine.high %v7231_v6, %v7231_v6  ;;  %v8520_v20 = vrot.slane %v7224_v31, 9 }
 0x5df   :  { %v7742_v47 = vsel %vm7726_vm7, %v7574_v37, %v7741_v59  ;;  %v8522_v1 = vrot.slane %v7231_v6, 9 }
 0x5e0   :  { %v7743_v33 = vsel %vm7728_vm8, %v7574_v37, %v7742_v47  ;;  %v8521_v53 = vrot.slane %v7232_v36, 9  ;;  %v8523_v55 = vrot.slane %v7233_v4, 9  ;;  %v7446_v18 = vmax.f32 %v7224_v31, %v8520_v20 }
 0x5e1   :  { %v7744_v45 = vsel %vm7730_vm9, %v7581_v8, %v7743_v33  ;;  %v7448_v50 = vmax.f32 %v7231_v6, %v8522_v1  ;;  %v12778_v6 = vld [vmem:[#allocation54_spill] sm:$0xff] }
 0x5e2   :  { %v7745_v60 = vsel %vm7732_vm10, %v7581_v8, %v7744_v45  ;;  %v7447_v52 = vmax.f32 %v7232_v36, %v8521_v53  ;;  %v7449_v34 = vmax.f32 %v7233_v4, %v8523_v55  ;;  %v7588_v51 = vrot.slane %v7446_v18, %v12284_v2 }
 0x5e3   :  { %7786 = vst [vmem:[#allocation16 + $0x10] sm:$0xff] %v7745_v60  ;;  %v7602_v16 = vrot.slane %v7448_v50, %v12284_v2  ;;  %v12779_v60 = vld [vmem:[#allocation55_spill] sm:$0xff] }
 0x5e4   :  { %v7595_v41 = vrot.slane %v7447_v52, %v12284_v2  ;;  %v7609_v17 = vrot.slane %v7449_v34, %v12284_v2 }
 0x5e6   :  { %v7746_v26 = vsel %vm7722_vm5, %v7595_v41, %v7588_v51 }
 0x5e7   :  { %v7747_v29 = vsel %vm7724_vm6, %v7595_v41, %v7746_v26 }
 0x5e8   :  { %v7748_v23 = vsel %vm7726_vm7, %v7602_v16, %v7747_v29 }
 0x5e9   :  { %v7749_v27 = vsel %vm7728_vm8, %v7602_v16, %v7748_v23  ;;  %v12780_v23 = vld [vmem:[#allocation56_spill] sm:$0xff] }
 0x5ea   :  { %v7750_v54 = vsel %vm7730_vm9, %v7609_v17, %v7749_v27 }
 0x5eb   :  { %v7751_v63 = vsel %vm7732_vm10, %v7609_v17, %v7750_v54  ;;  %v12781_v54 = vld [vmem:[#allocation57_spill] sm:$0xff] }
 0x5ec   :  { %7787 = vst [vmem:[#allocation16 + $0x18] sm:$0xff] %v7751_v63 }
 0x5ef   :  { %v6983_v44 = vpop.f32.mrb[16].mxu1 }
 0x5f0   :  { %v9056_v10 = vadd.f32 %v6983_v44, %v12046_v35  ;;  %v6985_v56 = vpop.f32.mrb[17].mxu1 }
 0x5f1   :  { %v9057_v11 = vadd.f32 %v6985_v56, %v12048_v40  ;;  %v6987_v12 = vpop.f32.mrb[18].mxu1 }
 0x5f2   :  { %v7082_v39 = vadd.f32 %v9056_v10, %v12251_v24  ;;  %v9058_v46 = vadd.f32 %v6987_v12, %v12050_v19  ;;  %v6989_v43 = vpop.f32.mrb[19].mxu1 }
 0x5f3   :  { %v7083_v38 = vadd.f32 %v9057_v11, %v12255_v30  ;;  %v9059_v57 = vadd.f32 %v6989_v43, %v12055_v13  ;;  %v12777_v13 = vld [vmem:[#allocation52_spill] sm:$0xff] }
 0x5f4   :  { %v7084_v21 = vadd.f32 %v9058_v46, %v12251_v24  ;;  %v7114_v62 = vmax.f32 %v7082_v39, 0.0 }
 0x5f5   :  { %v7085_v32 = vadd.f32 %v9059_v57, %v12255_v30  ;;  %v7115_v35 = vmax.f32 %v7083_v38, 0.0 }
 0x5f6   :  { %v7116_v0 = vmax.f32 %v7084_v21, 0.0  ;;  %v12782_v21 = vld [vmem:[#allocation58_spill] sm:$0xff] }
 0x5f7   :  { %v7117_v3 = vmax.f32 %v7085_v32, 0.0  ;;  %v6993_v22 = vpop.f32.mrb[20].mxu1 }
 0x5f8   :  { %v7138_v40 = vmax.f32 %v7114_v62, %v7116_v0  ;;  %v9060_v9 = vadd.f32 %v6993_v22, %v12060_v25  ;;  %v6995_v28 = vpop.f32.mrb[21].mxu1 }
 0x5f9   :  { %v7139_v7 = vmax.f32 %v7115_v35, %v7117_v3  ;;  %v9061_v19 = vadd.f32 %v6995_v28, %v12062_v48  ;;  %v6997_v5 = vpop.f32.mrb[22].mxu1 }
 0x5fa   :  { %v7086_v14 = vadd.f32 %v9060_v9, %v12251_v24  ;;  %v9062_v42 = vadd.f32 %v6997_v5, %v12777_v13  ;;  %v6999_v61 = vpop.f32.mrb[23].mxu1 }
 0x5fb   :  { %v7234_v49 = vcombine.low %v7138_v40, %v7139_v7  ;;  %v7235_v31 = vcombine.high %v7138_v40, %v7139_v7  ;;  %v9063_v37 = vadd.f32 %v6999_v61, %v12778_v6  ;;  %v7087_v58 = vadd.f32 %v9061_v19, %v12255_v30 }
 0x5fc   :  { %v7088_v59 = vadd.f32 %v9062_v42, %v12251_v24  ;;  %v7118_v4 = vmax.f32 %v7086_v14, 0.0 }
 0x5fd   :  { %v7242_v25 = vrot.slane %v7234_v49, %v12270_v15  ;;  %v7249_v36 = vrot.slane %v7235_v31, %v12270_v15  ;;  %v7089_v48 = vadd.f32 %v9063_v37, %v12255_v30  ;;  %v7119_v55 = vmax.f32 %v7087_v58, 0.0 }
 0x5fe   :  { %v7120_v20 = vmax.f32 %v7088_v59, 0.0 }
 0x5ff   :  { %v7250_v8 = vcombine.high %v7242_v25, %v7242_v25  ;;  %v7251_v47 = vcombine.high %v7249_v36, %v7249_v36  ;;  %v8524_v1 = vrot.slane %v7242_v25, 9  ;;  %v8526_v33 = vrot.slane %v7249_v36, 9  ;;  %v7003_v53 = vpop.f32.mrb[24].mxu1 }
 0x600   :  { %v7140_v18 = vmax.f32 %v7118_v4, %v7120_v20  ;;  %v7121_v45 = vmax.f32 %v7089_v48, 0.0  ;;  %v9064_v52 = vadd.f32 %v7003_v53, %v12779_v60  ;;  %v7005_v50 = vpop.f32.mrb[25].mxu1 }
 0x601   :  { %v8525_v34 = vrot.slane %v7250_v8, 9  ;;  %v8527_v51 = vrot.slane %v7251_v47, 9  ;;  %v7450_v41 = vmax.f32 %v7242_v25, %v8524_v1  ;;  %v7452_v16 = vmax.f32 %v7249_v36, %v8526_v33  ;;  %v7007_v26 = vpop.f32.mrb[26].mxu1 }
 0x602   :  { %v7141_v29 = vmax.f32 %v7119_v55, %v7121_v45  ;;  %v7090_v17 = vadd.f32 %v9064_v52, %v12251_v24  ;;  %v9065_v27 = vadd.f32 %v7005_v50, %v12780_v23  ;;  %v9066_v63 = vadd.f32 %v7007_v26, %v12781_v54  ;;  %v7009_v44 = vpop.f32.mrb[27].mxu1  ;;  %v12786_v23 = vld [vmem:[#allocation64_spill] sm:$0xff] }
 0x603   :  { %v7451_v10 = vmax.f32 %v7250_v8, %v8525_v34  ;;  %v7453_v56 = vmax.f32 %v7251_v47, %v8527_v51  ;;  %v7616_v11 = vrot.slane %v7450_v41, %v12284_v2  ;;  %v7630_v38 = vrot.slane %v7452_v16, %v12284_v2  ;;  %v12783_v47 = vld [vmem:[#allocation59_spill] sm:$0xff]  ;;  %v12784_v34 = vld [vmem:[#allocation60_spill] sm:$0xff] }
 0x604   :  { %v7252_v12 = vcombine.low %v7140_v18, %v7141_v29  ;;  %v7253_v39 = vcombine.high %v7140_v18, %v7141_v29  ;;  %v7091_v46 = vadd.f32 %v9065_v27, %v12255_v30  ;;  %v7092_v57 = vadd.f32 %v9066_v63, %v12251_v24  ;;  %v12785_v41 = vld [vmem:[#allocation63_spill] sm:$0xff] }
 0x605   :  { %v7623_v43 = vrot.slane %v7451_v10, %v12284_v2  ;;  %v9067_v32 = vadd.f32 %v7009_v44, %v12782_v21  ;;  %v7637_v62 = vrot.slane %v7453_v56, %v12284_v2  ;;  %v7122_v3 = vmax.f32 %v7090_v17, 0.0 }
 0x606   :  { %v7260_v0 = vrot.slane %v7252_v12, %v12270_v15  ;;  %v7267_v35 = vrot.slane %v7253_v39, %v12270_v15  ;;  %v7123_v40 = vmax.f32 %v7091_v46, 0.0  ;;  %v7124_v9 = vmax.f32 %v7092_v57, 0.0 }
 0x607   :  { %v7752_v22 = vsel %vm7722_vm5, %v7623_v43, %v7616_v11  ;;  %v7093_v28 = vadd.f32 %v9067_v32, %v12255_v30  ;;  %v7013_v7 = vpop.f32.mrb[28].mxu1 }
 0x608   :  { %v7753_v19 = vsel %vm7724_vm6, %v7623_v43, %v7752_v22  ;;  %v7268_v5 = vcombine.high %v7260_v0, %v7260_v0  ;;  %v7269_v14 = vcombine.high %v7267_v35, %v7267_v35  ;;  %v8528_v13 = vrot.slane %v7260_v0, 9  ;;  %v7015_v42 = vpop.f32.mrb[29].mxu1 }
 0x609   :  { %v7754_v61 = vsel %vm7726_vm7, %v7630_v38, %v7753_v19  ;;  %v8530_v49 = vrot.slane %v7267_v35, 9  ;;  %v7142_v31 = vmax.f32 %v7122_v3, %v7124_v9  ;;  %v7125_v6 = vmax.f32 %v7093_v28, 0.0  ;;  %v7017_v37 = vpop.f32.mrb[30].mxu1 }
 0x60a   :  { %v7755_v58 = vsel %vm7728_vm8, %v7630_v38, %v7754_v61  ;;  %v8529_v59 = vrot.slane %v7268_v5, 9  ;;  %v8531_v25 = vrot.slane %v7269_v14, 9  ;;  %v7454_v36 = vmax.f32 %v7260_v0, %v8528_v13  ;;  %v7019_v48 = vpop.f32.mrb[31].mxu1 }
 0x60b   :  { %v7756_v4 = vsel %vm7730_vm9, %v7637_v62, %v7755_v58  ;;  %v7456_v20 = vmax.f32 %v7267_v35, %v8530_v49  ;;  %v7143_v8 = vmax.f32 %v7123_v40, %v7125_v6  ;;  %v9068_v1 = vadd.f32 %v7013_v7, %v12783_v47 }
 0x60c   :  { %v7757_v33 = vsel %vm7732_vm10, %v7637_v62, %v7756_v4  ;;  %v7455_v53 = vmax.f32 %v7268_v5, %v8529_v59  ;;  %v7457_v55 = vmax.f32 %v7269_v14, %v8531_v25  ;;  %v7644_v52 = vrot.slane %v7454_v36, %v12284_v2 }
 0x60d   :  { %7788 = vst [vmem:[#allocation16 + $0x20] sm:$0xff] %v7757_v33  ;;  %v7270_v18 = vcombine.low %v7142_v31, %v7143_v8  ;;  %v7271_v45 = vcombine.high %v7142_v31, %v7143_v8  ;;  %v7094_v60 = vadd.f32 %v9068_v1, %v12251_v24  ;;  %v9069_v51 = vadd.f32 %v7015_v42, %v12784_v34 }
 0x60e   :  { %v7651_v50 = vrot.slane %v7455_v53, %v12284_v2  ;;  %v9070_v16 = vadd.f32 %v7017_v37, %v12785_v41  ;;  %v7658_v26 = vrot.slane %v7456_v20, %v12284_v2  ;;  %v9071_v27 = vadd.f32 %v7019_v48, %v12786_v23 }
 0x60f   :  { %v7278_v29 = vrot.slane %v7270_v18, %v12270_v15  ;;  %v7285_v17 = vrot.slane %v7271_v45, %v12270_v15  ;;  %v7665_v54 = vrot.slane %v7457_v55, %v12284_v2  ;;  %v7126_v44 = vmax.f32 %v7094_v60, 0.0 }
 0x610   :  { %v7758_v63 = vsel %vm7722_vm5, %v7651_v50, %v7644_v52  ;;  %v7096_v10 = vadd.f32 %v9070_v16, %v12251_v24  ;;  %v7095_v38 = vadd.f32 %v9069_v51, %v12255_v30  ;;  %v7097_v24 = vadd.f32 %v9071_v27, %v12255_v30 }
 0x611   :  { %v7759_v56 = vsel %vm7724_vm6, %v7651_v50, %v7758_v63  ;;  %v7286_v11 = vcombine.high %v7278_v29, %v7278_v29  ;;  %v7287_v12 = vcombine.high %v7285_v17, %v7285_v17  ;;  %v8532_v39 = vrot.slane %v7278_v29, 9 }
 0x612   :  { %v7760_v46 = vsel %vm7726_vm7, %v7658_v26, %v7759_v56  ;;  %v8534_v43 = vrot.slane %v7285_v17, 9  ;;  %v7128_v57 = vmax.f32 %v7096_v10, 0.0  ;;  %v7127_v28 = vmax.f32 %v7095_v38, 0.0 }
 0x613   :  { %v7761_v21 = vsel %vm7728_vm8, %v7658_v26, %v7760_v46  ;;  %v8533_v32 = vrot.slane %v7286_v11, 9  ;;  %v8535_v62 = vrot.slane %v7287_v12, 9  ;;  %v7458_v0 = vmax.f32 %v7278_v29, %v8532_v39 }
 0x614   :  { %v7762_v35 = vsel %vm7730_vm9, %v7665_v54, %v7761_v21  ;;  %v7144_v3 = vmax.f32 %v7126_v44, %v7128_v57  ;;  %v7460_v9 = vmax.f32 %v7285_v17, %v8534_v43  ;;  %v7129_v7 = vmax.f32 %v7097_v24, 0.0 }
 0x615   :  { %v7763_v22 = vsel %vm7732_vm10, %v7665_v54, %v7762_v35  ;;  %v7459_v40 = vmax.f32 %v7286_v11, %v8533_v32  ;;  %v7461_v19 = vmax.f32 %v7287_v12, %v8535_v62  ;;  %v7672_v5 = vrot.slane %v7458_v0, %v12284_v2 }
 0x616   :  { %7789 = vst [vmem:[#allocation16 + $0x28] sm:$0xff] %v7763_v22  ;;  %v7145_v13 = vmax.f32 %v7127_v28, %v7129_v7  ;;  %v7686_v42 = vrot.slane %v7460_v9, %v12284_v2 }
 0x617   :  { %v7679_v14 = vrot.slane %v7459_v40, %v12284_v2  ;;  %v7693_v6 = vrot.slane %v7461_v19, %v12284_v2 }
 0x618   :  { %v7288_v30 = vcombine.low %v7144_v3, %v7145_v13  ;;  %v7289_v31 = vcombine.high %v7144_v3, %v7145_v13 }
 0x619   :  { %v7764_v61 = vsel %vm7722_vm5, %v7679_v14, %v7672_v5 }
 0x61a   :  { %v7765_v49 = vsel %vm7724_vm6, %v7679_v14, %v7764_v61  ;;  %v7296_v59 = vrot.slane %v7288_v30, %v12270_v15  ;;  %v7303_v25 = vrot.slane %v7289_v31, %v12270_v15 }
 0x61b   :  { %v7766_v37 = vsel %vm7726_vm7, %v7686_v42, %v7765_v49 }
 0x61c   :  { %v7767_v58 = vsel %vm7728_vm8, %v7686_v42, %v7766_v37  ;;  %v7304_v4 = vcombine.high %v7296_v59, %v7296_v59  ;;  %v7305_v20 = vcombine.high %v7303_v25, %v7303_v25  ;;  %v8536_v8 = vrot.slane %v7296_v59, 9 }
 0x61d   :  { %v7768_v36 = vsel %vm7730_vm9, %v7693_v6, %v7767_v58  ;;  %v8538_v47 = vrot.slane %v7303_v25, 9 }
 0x61e   :  { %v7769_v48 = vsel %vm7732_vm10, %v7693_v6, %v7768_v36  ;;  %v8537_v1 = vrot.slane %v7304_v4, 9  ;;  %v8539_v33 = vrot.slane %v7305_v20, 9  ;;  %v7462_v53 = vmax.f32 %v7296_v59, %v8536_v8 }
 0x61f   :  { %7790 = vst [vmem:[#allocation16 + $0x30] sm:$0xff] %v7769_v48  ;;  %v7464_v18 = vmax.f32 %v7303_v25, %v8538_v47 }
 0x620   :  { %v7463_v55 = vmax.f32 %v7304_v4, %v8537_v1  ;;  %v7465_v45 = vmax.f32 %v7305_v20, %v8539_v33  ;;  %v7700_v60 = vrot.slane %v7462_v53, %v12284_v2 }
 0x621   :  { %v7714_v15 = vrot.slane %v7464_v18, %v12284_v2 }
 0x622   :  { %v7707_v52 = vrot.slane %v7463_v55, %v12284_v2  ;;  %v7721_v51 = vrot.slane %v7465_v45, %v12284_v2 }
 0x624   :  { %v7770_v50 = vsel %vm7722_vm5, %v7707_v52, %v7700_v60 }
 0x625   :  { %v7771_v34 = vsel %vm7724_vm6, %v7707_v52, %v7770_v50 }
 0x626   :  { %v7772_v41 = vsel %vm7726_vm7, %v7714_v15, %v7771_v34 }
 0x627   :  { %v7773_v16 = vsel %vm7728_vm8, %v7714_v15, %v7772_v41 }
 0x628   :  { %v7774_v26 = vsel %vm7730_vm9, %v7721_v51, %v7773_v16 }
 0x629   :  { %v7775_v29 = vsel %vm7732_vm10, %v7721_v51, %v7774_v26 }
 0x62a   :  { %7791 = vst [vmem:[#allocation16 + $0x38] sm:$0xff] %v7775_v29 }
 0x62b   :  { %10362 = shalt.err (!%p10359_p4)
}
 0x62c   :  { %s10363_s27 = scalar_lea.hbm %s12459_s7, 1024 }
 0x62d   :  { %p10364_p5 = scmp.ne.s32.totalorder %s12459_s7, %s10363_s27  ;;  %p10367_p6 = scmp.lt.u32.totalorder %s10363_s27, %s12459_s7 }
 0x62f   :  { %p10369_p7 = pnand %p10367_p6, %p10364_p5 }
 0x631   :  { %10372 = shalt.err (!%p10369_p7)
}
 0x632   :  { %7803 = dma.vmem_to_hbm [thread:$0]  %s7798_s16, 1024, %s12459_s7, [#allocation6], %s10385_s13, %s10385_s13, %s10386_s14  }
 0x633   :  { %10381 = dma.done.wait [#allocation6], 1024  }
 0x634   :  { %10382 = vsyncadd [#allocation6], 4294966272 }
 0x635   :  { %7807 = vsyncpa [#allocation5], 1 }
 0x636   :  { %7808 = vsyncpa [#allocation8], 1 }
 0x637   :  { %7809 = vsyncpa [#allocation11], 1 }
 0x638   :  { %7810 = vsyncpa [#allocation14], 1 }
 0x639   :  { %7811 = vsyncpa [#allocation6], 1 }

</bundles_post_ra>
